<compile_context>
chip_gen: v7x
topology: tpu7x:2x2x1
jax: 0.10.0
libtpu: 0.0.40
codegen_flags: <defaults>
</compile_context>

<pallas_src>
import functools

import jax
import jax.numpy as jnp
from jax.experimental import pallas as pl
from jax.experimental.pallas import tpu as pltpu


# -----------------------------------------------------------------------------
# Synthetic mesh: regular triangulated grid over [0,1]^2 (continuous tris only)
# -----------------------------------------------------------------------------
def make_grid_mesh(G):
    xs = jnp.linspace(0.0, 1.0, G + 1, dtype=jnp.float32)
    vy, vx = jnp.meshgrid(xs, xs, indexing="ij")            # vertex id = iy*(G+1)+ix
    V = jnp.stack([vx.ravel(), vy.ravel()], axis=-1)         # [(G+1)^2, 2]
    tris = []
    for iy in range(G):
        for ix in range(G):
            v00 = iy * (G + 1) + ix
            v10 = v00 + 1
            v01 = v00 + (G + 1)
            v11 = v01 + 1
            tris.append([v00, v10, v01])                      # lower triangle
            tris.append([v11, v01, v10])                      # upper triangle
    T = jnp.array(tris, dtype=jnp.int32)                      # [2*G*G, 3]
    return V, T


def point_in_triangle(Q, G):
    """Analytic replacement for slang_point_in_triangle on the regular mesh."""
    eps = 1e-6
    q = jnp.clip(Q, 0.0, 1.0 - eps)
    s = q * G
    cell = jnp.floor(s).astype(jnp.int32)                     # (ix, iy)
    frac = s - cell.astype(jnp.float32)                       # (u, v) in cell
    u, v = frac[:, 0], frac[:, 1]
    ix, iy = cell[:, 0], cell[:, 1]
    cell_id = iy * G + ix
    upper = (u + v) > 1.0
    qt_idx = cell_id * 2 + upper.astype(jnp.int32)            # triangle index
    uv_lower = jnp.stack([1.0 - u - v, u, v], axis=-1)
    uv_upper = jnp.stack([u + v - 1.0, 1.0 - u, 1.0 - v], axis=-1)
    qt_uv = jnp.where(upper[:, None], uv_upper, uv_lower).astype(jnp.float32)
    return qt_idx, qt_uv


# -----------------------------------------------------------------------------
# Pallas kernel: in-kernel gather/blend of the pre-projected vertex table
# (one-hot matmul on the MXU) + remaining MLP layers, lane-dense output.
# -----------------------------------------------------------------------------
def dann_kernel(tri_ref, uv_ref, h1tab_ref,
                b1_ref, w2_ref, b2_ref, w3_ref, b3_ref,
                out_ref):
    tri = tri_ref[...]                                        # [TQ, 3] int32 vertex ids
    uv = uv_ref[...]                                          # [TQ, 3] f32 barycentric
    tq = tri.shape[0]
    v_pad = h1tab_ref.shape[0]

    # Build the sparse blend matrix S[q, v] = sum_k uv[q,k] * (tri[q,k] == v).
    vid = jax.lax.broadcasted_iota(jnp.int32, (tq, v_pad), 1)
    s = jnp.zeros((tq, v_pad), jnp.float32)
    for k in range(3):                                        # static unroll
        s = s + jnp.where(vid == tri[:, k:k + 1], uv[:, k:k + 1], 0.0)

    # h1 = (blend of pre-projected vertex rows) + b1
    #    == (barycentric-interp features) @ W1 + b1   (linearity)
    h = jnp.dot(s, h1tab_ref[...], preferred_element_type=jnp.float32) + b1_ref[...]
    h = jnp.maximum(h, 0.0)
    h = jnp.dot(h, w2_ref[...], preferred_element_type=jnp.float32) + b2_ref[...]
    h = jnp.maximum(h, 0.0)
    # W3/b3 are zero-padded to 128 output lanes -> unmasked, lane-dense store.
    out = jnp.dot(h, w3_ref[...], preferred_element_type=jnp.float32) + b3_ref[...]
    out_ref[...] = out.astype(out_ref.dtype)


def dann_forward_pallas(tri, uv, h1_table, b1, w2, b2, w3p, b3p, *, tile_q=512):
    """tri: [N,3] int32; uv: [N,3] f32; h1_table: [V_PAD,H]; w3p/b3p padded to 128."""
    n = tri.shape[0]
    n_pad = ((n + tile_q - 1) // tile_q) * tile_q
    if n_pad != n:                                            # pad ragged tail
        tri = jnp.pad(tri, ((0, n_pad - n), (0, 0)))
        uv = jnp.pad(uv, ((0, n_pad - n), (0, 0)))

    v_pad, hidden = h1_table.shape
    out_pad = w3p.shape[1]

    row = lambda i: (i, 0)
    full = lambda i: (0, 0)

    out = pl.pallas_call(
        dann_kernel,
        out_shape=jax.ShapeDtypeStruct((n_pad, out_pad), jnp.float32),
        grid_spec=pltpu.PrefetchScalarGridSpec(
            num_scalar_prefetch=0,
            grid=(n_pad // tile_q,),
            in_specs=[
                pl.BlockSpec((tile_q, 3), row),               # tri ids
                pl.BlockSpec((tile_q, 3), row),               # barycentric uv
                pl.BlockSpec((v_pad, hidden), full),          # pre-projected table
                pl.BlockSpec((1, hidden), full),              # b1
                pl.BlockSpec((hidden, hidden), full),         # w2
                pl.BlockSpec((1, hidden), full),              # b2
                pl.BlockSpec((hidden, out_pad), full),        # w3 (padded to 128)
                pl.BlockSpec((1, out_pad), full),             # b3 (padded to 128)
            ],
            out_specs=pl.BlockSpec((tile_q, out_pad), row),   # lane-dense output slab
        ),
        compiler_params=pltpu.CompilerParams(
            dimension_semantics=("parallel",)),
    )(tri, uv, h1_table, b1, w2, b2, w3p, b3p)
    return out[:n]                                            # drop tail padding


# -----------------------------------------------------------------------------
# DANN module (JAX version)
# -----------------------------------------------------------------------------
class DANNJax:
    def __init__(self, grid_size=4, feature_dim=5, out_dim=3, key=None, tile_q=512):
        self.G = grid_size
        self.FEATURE_DIM = feature_dim
        self.OUT_DIM = out_dim
        self.OUT_PAD = ((out_dim + 127) // 128) * 128         # lane-dense output width
        self.TILE_Q = tile_q
        self.V, self.T = make_grid_mesh(grid_size)
        v_num = self.V.shape[0]
        self.V_PAD = ((v_num + 127) // 128) * 128             # pad table rows to 128

        key = jax.random.PRNGKey(0) if key is None else key
        k_feat, k1, k2, k3, kb1, kb2, kb3 = jax.random.split(key, 7)

        UR = 0.002
        # V_continuous_feat: uniform(-UR, UR), [V_NUM, F]
        self.V_continuous_feat = jax.random.uniform(
            k_feat, (v_num, feature_dim), jnp.float32, minval=-UR, maxval=UR)

        def linear_init(kw, kb, fan_in, fan_out):
            bound = 1.0 / jnp.sqrt(fan_in)
            w = jax.random.uniform(kw, (fan_in, fan_out), jnp.float32, -bound, bound)
            b = jax.random.uniform(kb, (1, fan_out), jnp.float32, -bound, bound)
            return w, b

        w1, b1 = linear_init(k1, kb1, feature_dim, 64)
        w2, b2 = linear_init(k2, kb2, 64, 64)
        w3, b3 = linear_init(k3, kb3, 64, out_dim)
        self.params = dict(w1=w1, b1=b1, w2=w2, b2=b2, w3=w3, b3=b3)

    @functools.partial(jax.jit, static_argnums=0)
    def _forward_jit(self, Q):
        p = self.params
        hidden = p["w1"].shape[1]
        v_num = self.V_continuous_feat.shape[0]

        # glue (plain JAX): point-in-triangle + triangle-vertex lookup.
        qt_idx, qt_uv = point_in_triangle(Q, self.G)
        tri = self.T[qt_idx]                                  # [N,3] int32 vertex ids

        # Pre-project vertex features through W1 (tiny, constant-folded under jit),
        # zero-pad rows to V_PAD so the in-kernel one-hot matmul is 128-aligned.
        h1_rows = self.V_continuous_feat @ p["w1"]            # [v_num, hidden]
        h1_table = jnp.zeros((self.V_PAD, hidden), jnp.float32).at[:v_num].set(h1_rows)

        # Zero-pad the last layer to 128 output lanes (lane-dense store).
        w3p = jnp.zeros((hidden, self.OUT_PAD), jnp.float32).at[:, :self.OUT_DIM].set(p["w3"])
        b3p = jnp.zeros((1, self.OUT_PAD), jnp.float32).at[:, :self.OUT_DIM].set(p["b3"])

        out_pad = dann_forward_pallas(
            tri, qt_uv, h1_table, p["b1"], p["w2"], p["b2"], w3p, b3p,
            tile_q=self.TILE_Q)
        out = out_pad[:, :self.OUT_DIM]
        return out, qt_idx, qt_uv

    def forward(self, Q, debug_checks=False):
        out, qt_idx, qt_uv = self._forward_jit(Q)
        if debug_checks:
            # mirrors the PyTorch asserts; host-blocking, so off by default
            assert bool(jnp.all(qt_idx >= 0)), "PIT: didn't find a triangle"
            assert bool(jnp.all(qt_uv >= -1e-5) & jnp.all(qt_uv <= 1 + 1e-5)), "PIT: UV out of bounds"
            assert bool(jnp.allclose(qt_uv.sum(axis=-1), 1.0, atol=1e-5)), "PIT: UV sum not one"
        return out


# -----------------------------------------------------------------------------
if __name__ == "__main__":
    key = jax.random.PRNGKey(0)
    k_model, k_q = jax.random.split(key)
    model = DANNJax(grid_size=4, feature_dim=5, out_dim=3, key=k_model, tile_q=512)

    n_queries = 2048                                          # 4 grid steps at tile_q=512
    Q = jax.random.uniform(k_q, (n_queries, 2), jnp.float32)

    res = model.forward(Q)
    jax.block_until_ready(res)

    # reference check in plain JAX (original op order: interp features, then MLP)
    qt_idx, qt_uv = point_in_triangle(Q, model.G)
    tri = model.T[qt_idx]
    feat = (qt_uv[:, 0:1] * model.V_continuous_feat[tri[:, 0]] +
            qt_uv[:, 1:2] * model.V_continuous_feat[tri[:, 1]] +
            qt_uv[:, 2:3] * model.V_continuous_feat[tri[:, 2]])
    p = model.params
    ref = jnp.maximum(feat @ p["w1"] + p["b1"], 0.0)
    ref = jnp.maximum(ref @ p["w2"] + p["b2"], 0.0)
    ref = ref @ p["w3"] + p["b3"]

    assert res.shape == (n_queries, 3) and res.dtype == jnp.float32
    assert jnp.allclose(res, ref, atol=1e-5), "mismatch vs reference"

    print("KERNEL_OK")
</pallas_src>

<mosaic_0001>
module attributes {stable_mosaic.version = 11 : i64} {
  func.func @dann_kernel(%arg0: i32, %arg1: memref<512x3xi32, #tpu.memory_space<vmem>>, %arg2: memref<512x3xf32, #tpu.memory_space<vmem>>, %arg3: memref<128x64xf32, #tpu.memory_space<vmem>>, %arg4: memref<1x64xf32, #tpu.memory_space<vmem>>, %arg5: memref<64x64xf32, #tpu.memory_space<vmem>>, %arg6: memref<1x64xf32, #tpu.memory_space<vmem>>, %arg7: memref<64x128xf32, #tpu.memory_space<vmem>>, %arg8: memref<1x128xf32, #tpu.memory_space<vmem>>, %arg9: memref<512x128xf32, #tpu.memory_space<vmem>>) attributes {dimension_semantics = [#tpu.dimension_semantics<parallel>], iteration_bounds = array<i64: 4>, scalar_prefetch = 0 : i64, scratch_operands = 0 : i64, tpu.core_type = #tpu.core_type<tc>, window_params = [{transform_indices = @transform_0, window_bounds = array<i64: 512, 3>}, {transform_indices = @transform_1, window_bounds = array<i64: 512, 3>}, {pipeline_mode = #tpu.pipeline_mode<synchronous>, transform_indices = @transform_2, window_bounds = array<i64: 128, 64>}, {pipeline_mode = #tpu.pipeline_mode<synchronous>, transform_indices = @transform_3, window_bounds = array<i64: 1, 64>}, {pipeline_mode = #tpu.pipeline_mode<synchronous>, transform_indices = @transform_4, window_bounds = array<i64: 64, 64>}, {pipeline_mode = #tpu.pipeline_mode<synchronous>, transform_indices = @transform_5, window_bounds = array<i64: 1, 64>}, {pipeline_mode = #tpu.pipeline_mode<synchronous>, transform_indices = @transform_6, window_bounds = array<i64: 64, 128>}, {pipeline_mode = #tpu.pipeline_mode<synchronous>, transform_indices = @transform_7, window_bounds = array<i64: 1, 128>}, {transform_indices = @transform_8, window_bounds = array<i64: 512, 128>}]} {
    %c0 = arith.constant 0 : index
    %c0_0 = arith.constant 0 : index
    %0 = vector.load %arg1[%c0, %c0_0] : memref<512x3xi32, #tpu.memory_space<vmem>>, vector<512x3xi32>
    %c0_1 = arith.constant 0 : index
    %c0_2 = arith.constant 0 : index
    %1 = vector.load %arg2[%c0_1, %c0_2] : memref<512x3xf32, #tpu.memory_space<vmem>>, vector<512x3xf32>
    %2 = tpu.iota {dimensions = array<i32: 1>} : vector<512x128xi32>
    %cst = arith.constant 0.000000e+00 : f32
    %3 = vector.broadcast %cst : f32 to vector<512x128xf32>
    %4 = vector.extract_strided_slice %0 {offsets = [0, 0], sizes = [512, 1], strides = [1, 1]} : vector<512x3xi32> to vector<512x1xi32>
    %5 = vector.broadcast %4 : vector<512x1xi32> to vector<512x128xi32>
    %6 = arith.cmpi eq, %2, %5 : vector<512x128xi32>
    %7 = vector.extract_strided_slice %1 {offsets = [0, 0], sizes = [512, 1], strides = [1, 1]} : vector<512x3xf32> to vector<512x1xf32>
    %cst_3 = arith.constant 0.000000e+00 : f32
    %8 = vector.shape_cast %7 : vector<512x1xf32> to vector<512x1xf32>
    %9 = vector.broadcast %8 : vector<512x1xf32> to vector<512x128xf32>
    %10 = vector.broadcast %cst_3 : f32 to vector<512x128xf32>
    %11 = arith.select %6, %9, %10 : vector<512x128xi1>, vector<512x128xf32>
    %12 = arith.addf %3, %11 : vector<512x128xf32>
    %13 = vector.extract_strided_slice %0 {offsets = [0, 1], sizes = [512, 1], strides = [1, 1]} : vector<512x3xi32> to vector<512x1xi32>
    %14 = vector.broadcast %13 : vector<512x1xi32> to vector<512x128xi32>
    %15 = arith.cmpi eq, %2, %14 : vector<512x128xi32>
    %16 = vector.extract_strided_slice %1 {offsets = [0, 1], sizes = [512, 1], strides = [1, 1]} : vector<512x3xf32> to vector<512x1xf32>
    %cst_4 = arith.constant 0.000000e+00 : f32
    %17 = vector.shape_cast %16 : vector<512x1xf32> to vector<512x1xf32>
    %18 = vector.broadcast %17 : vector<512x1xf32> to vector<512x128xf32>
    %19 = vector.broadcast %cst_4 : f32 to vector<512x128xf32>
    %20 = arith.select %15, %18, %19 : vector<512x128xi1>, vector<512x128xf32>
    %21 = arith.addf %12, %20 : vector<512x128xf32>
    %22 = vector.extract_strided_slice %0 {offsets = [0, 2], sizes = [512, 1], strides = [1, 1]} : vector<512x3xi32> to vector<512x1xi32>
    %23 = vector.broadcast %22 : vector<512x1xi32> to vector<512x128xi32>
    %24 = arith.cmpi eq, %2, %23 : vector<512x128xi32>
    %25 = vector.extract_strided_slice %1 {offsets = [0, 2], sizes = [512, 1], strides = [1, 1]} : vector<512x3xf32> to vector<512x1xf32>
    %cst_5 = arith.constant 0.000000e+00 : f32
    %26 = vector.shape_cast %25 : vector<512x1xf32> to vector<512x1xf32>
    %27 = vector.broadcast %26 : vector<512x1xf32> to vector<512x128xf32>
    %28 = vector.broadcast %cst_5 : f32 to vector<512x128xf32>
    %29 = arith.select %24, %27, %28 : vector<512x128xi1>, vector<512x128xf32>
    %30 = arith.addf %21, %29 : vector<512x128xf32>
    %c0_6 = arith.constant 0 : index
    %c0_7 = arith.constant 0 : index
    %31 = vector.load %arg3[%c0_6, %c0_7] : memref<128x64xf32, #tpu.memory_space<vmem>>, vector<128x64xf32>
    %cst_8 = arith.constant dense<0.000000e+00> : vector<512x64xf32>
    %32 = tpu.matmul %30, %31, %cst_8 {dimension_numbers = #tpu.dot_dimension_numbers<[1], [0], [0], [1], [0, 0, 1, 1], [], []>} : vector<512x128xf32>, vector<128x64xf32>, vector<512x64xf32> -> vector<512x64xf32>
    %c0_9 = arith.constant 0 : index
    %c0_10 = arith.constant 0 : index
    %33 = vector.load %arg4[%c0_9, %c0_10] : memref<1x64xf32, #tpu.memory_space<vmem>>, vector<1x64xf32>
    %34 = vector.broadcast %33 : vector<1x64xf32> to vector<512x64xf32>
    %35 = arith.addf %32, %34 : vector<512x64xf32>
    %cst_11 = arith.constant 0.000000e+00 : f32
    %36 = vector.broadcast %cst_11 : f32 to vector<512x64xf32>
    %37 = arith.maximumf %35, %36 : vector<512x64xf32>
    %c0_12 = arith.constant 0 : index
    %c0_13 = arith.constant 0 : index
    %38 = vector.load %arg5[%c0_12, %c0_13] : memref<64x64xf32, #tpu.memory_space<vmem>>, vector<64x64xf32>
    %cst_14 = arith.constant dense<0.000000e+00> : vector<512x64xf32>
    %39 = tpu.matmul %37, %38, %cst_14 {dimension_numbers = #tpu.dot_dimension_numbers<[1], [0], [0], [1], [0, 0, 1, 1], [], []>} : vector<512x64xf32>, vector<64x64xf32>, vector<512x64xf32> -> vector<512x64xf32>
    %c0_15 = arith.constant 0 : index
    %c0_16 = arith.constant 0 : index
    %40 = vector.load %arg6[%c0_15, %c0_16] : memref<1x64xf32, #tpu.memory_space<vmem>>, vector<1x64xf32>
    %41 = vector.broadcast %40 : vector<1x64xf32> to vector<512x64xf32>
    %42 = arith.addf %39, %41 : vector<512x64xf32>
    %cst_17 = arith.constant 0.000000e+00 : f32
    %43 = vector.broadcast %cst_17 : f32 to vector<512x64xf32>
    %44 = arith.maximumf %42, %43 : vector<512x64xf32>
    %c0_18 = arith.constant 0 : index
    %c0_19 = arith.constant 0 : index
    %45 = vector.load %arg7[%c0_18, %c0_19] : memref<64x128xf32, #tpu.memory_space<vmem>>, vector<64x128xf32>
    %cst_20 = arith.constant dense<0.000000e+00> : vector<512x128xf32>
    %46 = tpu.matmul %44, %45, %cst_20 {dimension_numbers = #tpu.dot_dimension_numbers<[1], [0], [0], [1], [0, 0, 1, 1], [], []>} : vector<512x64xf32>, vector<64x128xf32>, vector<512x128xf32> -> vector<512x128xf32>
    %c0_21 = arith.constant 0 : index
    %c0_22 = arith.constant 0 : index
    %47 = vector.load %arg8[%c0_21, %c0_22] : memref<1x128xf32, #tpu.memory_space<vmem>>, vector<1x128xf32>
    %48 = vector.broadcast %47 : vector<1x128xf32> to vector<512x128xf32>
    %49 = arith.addf %46, %48 : vector<512x128xf32>
    %c0_23 = arith.constant 0 : index
    %c0_24 = arith.constant 0 : index
    %50 = vector.load %arg9[%c0_23, %c0_24] : memref<512x128xf32, #tpu.memory_space<vmem>>, vector<512x128xf32>
    tpu.vector_store %arg9[%c0_23, %c0_24], %49 {strides = array<i32>} : memref<512x128xf32, #tpu.memory_space<vmem>>, vector<512x128xf32>,
    return
  }
  func.func @transform_0(%arg0: i32) -> (i32, i32) {
    %c0_i32 = arith.constant 0 : i32
    %c0_i32_0 = arith.constant 0 : i32
    return %arg0, %c0_i32 : i32, i32
  }
  func.func @transform_1(%arg0: i32) -> (i32, i32) {
    %c0_i32 = arith.constant 0 : i32
    %c0_i32_0 = arith.constant 0 : i32
    return %arg0, %c0_i32 : i32, i32
  }
  func.func @transform_2(%arg0: i32) -> (i32, i32) {
    %c0_i32 = arith.constant 0 : i32
    %c0_i32_0 = arith.constant 0 : i32
    %c0_i32_1 = arith.constant 0 : i32
    return %c0_i32, %c0_i32_0 : i32, i32
  }
  func.func @transform_3(%arg0: i32) -> (i32, i32) {
    %c0_i32 = arith.constant 0 : i32
    %c0_i32_0 = arith.constant 0 : i32
    %c0_i32_1 = arith.constant 0 : i32
    return %c0_i32, %c0_i32_0 : i32, i32
  }
  func.func @transform_4(%arg0: i32) -> (i32, i32) {
    %c0_i32 = arith.constant 0 : i32
    %c0_i32_0 = arith.constant 0 : i32
    %c0_i32_1 = arith.constant 0 : i32
    return %c0_i32, %c0_i32_0 : i32, i32
  }
  func.func @transform_5(%arg0: i32) -> (i32, i32) {
    %c0_i32 = arith.constant 0 : i32
    %c0_i32_0 = arith.constant 0 : i32
    %c0_i32_1 = arith.constant 0 : i32
    return %c0_i32, %c0_i32_0 : i32, i32
  }
  func.func @transform_6(%arg0: i32) -> (i32, i32) {
    %c0_i32 = arith.constant 0 : i32
    %c0_i32_0 = arith.constant 0 : i32
    %c0_i32_1 = arith.constant 0 : i32
    return %c0_i32, %c0_i32_0 : i32, i32
  }
  func.func @transform_7(%arg0: i32) -> (i32, i32) {
    %c0_i32 = arith.constant 0 : i32
    %c0_i32_0 = arith.constant 0 : i32
    %c0_i32_1 = arith.constant 0 : i32
    return %c0_i32, %c0_i32_0 : i32, i32
  }
  func.func @transform_8(%arg0: i32) -> (i32, i32) {
    %c0_i32 = arith.constant 0 : i32
    %c0_i32_0 = arith.constant 0 : i32
    return %arg0, %c0_i32 : i32, i32
  }
}

</mosaic_0001>

<bundles_post_ra>
// kernel: _forward_jit.1
= control target key start
LH: loop header
LB: loop body
LE: loop exit
PB: predicated region body
PF: predicated region fallthrough
CT: control target
= control target key end

     0   :  { %s5324_s27 = smov 0   ;;  %s7720_s0 = inlined_call_operand.vmem [shape: s32[2048,3], index: 0, kind: input, shape index: {}]   ;;  %s7721_s1 = inlined_call_operand.vmem [shape: f32[2048,3], index: 1, kind: input, shape index: {}]   ;;  %s7722_s2 = inlined_call_operand.vmem [shape: f32[128,64], index: 2, kind: input, shape index: {}]   ;;  %s7723_s3 = inlined_call_operand.vmem [shape: f32[1,64], index: 3, kind: input, shape index: {}]   ;;  %s7724_s4 = inlined_call_operand.vmem [shape: f32[64,64], index: 4, kind: input, shape index: {}]   ;;  %s7725_s5 = inlined_call_operand.vmem [shape: f32[1,64], index: 5, kind: input, shape index: {}]   ;;  %s7726_s6 = inlined_call_operand.vmem [shape: f32[64,128], index: 6, kind: input, shape index: {}]   ;;  %s7727_s7 = inlined_call_operand.vmem [shape: f32[1,128], index: 7, kind: input, shape index: {}]   ;;  %s7728_s8 = inlined_call_operand.vmem [shape: f32[2048,128], index: 8, kind: output, shape index: {}]  }
   0x1 LB: > { %s4298_s28 = sadd.s32 4294967295, %s5274_s27   ;;  %p4302_p0 = scmp.ge.s32.totalorder %s5274_s27, 1  ;;  %s5274_s27 = sphi %s5324_s27, %s18_s27  }
   0x2   : > { %p274_p1 = scmp.lt.s32.totalorder %s5274_s27, 5 }
   0x4   : > { %p275_p2 = pnand %p4302_p0, %p274_p1 }
   0x6   : > { %278 = sbr.rel (%p275_p2) target bundleno = 1759 (0x6df), region = 52 }
   0xd   : > { %s4303_s29 = sshll.u32 %s4298_s28, 6  ;;  %v5276_v0 = vmov 0  }
   0xe   : > { %5102 = vset.pattern.permute.xlu1 %v5276_v0  ;;  %5101 = vset.pattern.permute.xlu0 %v5276_v0  ;;  %p314_p3 = scmp.lt.s32.totalorder %s4303_s29, 255 }
  0x10   : > { %s8281_s29 = smov (!%p314_p3, %s4303_s29), 255 }
  0x11   : > { %s5332_s30 = sshll.u32 %s8281_s29, 3 }
  0x12   : > { %s5338_s11 = scalar_lea.vmem %s7720_s0, %s5332_s30  ;;  %s5543_s14 = scalar_lea.vmem %s7721_s1, %s5332_s30 }
  0x13   : > { %v5341_v1 = vld [vmem:[%s5338_s11 + $0x10] sm:$0xff]  ;;  %v5344_v2 = vld [vmem:[%s5338_s11] sm:$0xff]  ;;  %v5349_v3 = vld [vmem:[%s5338_s11 + $0x18] sm:$0xff]  ;;  %s7585_s9 = scalar_lea.vmem %s7728_s8, %s5332_s30 }
  0x14   : > { %468 = vperm.xlu1 %5102, %v5341_v1   ;;  %462 = vperm.xlu0 %5101, %v5344_v2   ;;  %v5352_v4 = vld [vmem:[%s5338_s11 + $0x8] sm:$0xff]  ;;  %v5360_v6 = vld [vmem:[%s5338_s11 + $0x20] sm:$0xff]  ;;  %v5365_v7 = vld [vmem:[%s5338_s11 + $0x38] sm:$0xff] }
  0x15   : > { %v5357_v5 = vld [vmem:[%s5338_s11 + $0x28] sm:$0xff]  ;;  %v5368_v8 = vld [vmem:[%s5338_s11 + $0x30] sm:$0xff]  ;;  %v5376_v10 = vld [vmem:[%s5338_s11 + $0x40] sm:$0xff] }
  0x16   : > { %v5373_v9 = vld [vmem:[%s5338_s11 + $0x48] sm:$0xff]  ;;  %v5381_v11 = vld [vmem:[%s5338_s11 + $0x58] sm:$0xff]  ;;  %v5384_v12 = vld [vmem:[%s5338_s11 + $0x50] sm:$0xff] }
  0x17   : > { %v5389_v13 = vld [vmem:[%s5338_s11 + $0x68] sm:$0xff]  ;;  %v5392_v14 = vld [vmem:[%s5338_s11 + $0x60] sm:$0xff]  ;;  %v5397_v15 = vld [vmem:[%s5338_s11 + $0x78] sm:$0xff] }
  0x18   : > { %471 = vperm.xlu1 %5102, %v5349_v3   ;;  %465 = vperm.xlu0 %5101, %v5352_v4   ;;  %v5400_v16 = vld [vmem:[%s5338_s11 + $0x70] sm:$0xff]  ;;  %v5405_v17 = vld [vmem:[%s5338_s11 + $0x88] sm:$0xff]  ;;  %v5408_v18 = vld [vmem:[%s5338_s11 + $0x80] sm:$0xff] }
  0x19   : > { %v5413_v19 = vld [vmem:[%s5338_s11 + $0x98] sm:$0xff]  ;;  %v5416_v20 = vld [vmem:[%s5338_s11 + $0x90] sm:$0xff]  ;;  %v5421_v21 = vld [vmem:[%s5338_s11 + $0xa8] sm:$0xff] }
  0x1a   : > { %v5424_v22 = vld [vmem:[%s5338_s11 + $0xa0] sm:$0xff]  ;;  %v5429_v23 = vld [vmem:[%s5338_s11 + $0xb8] sm:$0xff]  ;;  %v5432_v24 = vld [vmem:[%s5338_s11 + $0xb0] sm:$0xff] }
  0x1b   : > { %v5437_v25 = vld [vmem:[%s5338_s11 + $0xc8] sm:$0xff]  ;;  %v5440_v26 = vld [vmem:[%s5338_s11 + $0xc0] sm:$0xff]  ;;  %v5445_v27 = vld [vmem:[%s5338_s11 + $0xd8] sm:$0xff] }
  0x1c   : > { %477 = vperm.xlu1 %5102, %v5357_v5   ;;  %474 = vperm.xlu0 %5101, %v5360_v6   ;;  %v5448_v28 = vld [vmem:[%s5338_s11 + $0xd0] sm:$0xff]  ;;  %v5453_v29 = vld [vmem:[%s5338_s11 + $0xe8] sm:$0xff]  ;;  %v5456_v30 = vld [vmem:[%s5338_s11 + $0xe0] sm:$0xff] }
  0x1d   : > { %v5461_v31 = vld [vmem:[%s5338_s11 + $0xf8] sm:$0xff]  ;;  %v5464_v32 = vld [vmem:[%s5338_s11 + $0xf0] sm:$0xff]  ;;  %v5469_v33 = vld [vmem:[%s5338_s11 + $0x108] sm:$0xff] }
  0x1e   : > { %v5472_v34 = vld [vmem:[%s5338_s11 + $0x100] sm:$0xff]  ;;  %v5477_v35 = vld [vmem:[%s5338_s11 + $0x118] sm:$0xff]  ;;  %v5480_v36 = vld [vmem:[%s5338_s11 + $0x110] sm:$0xff] }
  0x1f   : > { %v5485_v37 = vld [vmem:[%s5338_s11 + $0x128] sm:$0xff]  ;;  %v5488_v38 = vld [vmem:[%s5338_s11 + $0x120] sm:$0xff]  ;;  %v5493_v39 = vld [vmem:[%s5338_s11 + $0x138] sm:$0xff] }
  0x20   : > { %483 = vperm.xlu1 %5102, %v5365_v7   ;;  %480 = vperm.xlu0 %5101, %v5368_v8   ;;  %v5496_v40 = vld [vmem:[%s5338_s11 + $0x130] sm:$0xff]  ;;  %v5501_v41 = vld [vmem:[%s5338_s11 + $0x148] sm:$0xff]  ;;  %v5504_v42 = vld [vmem:[%s5338_s11 + $0x140] sm:$0xff] }
  0x21   : > { %v5509_v43 = vld [vmem:[%s5338_s11 + $0x158] sm:$0xff]  ;;  %v5512_v44 = vld [vmem:[%s5338_s11 + $0x150] sm:$0xff]  ;;  %v376_v45 = vld [vmem:[%s5338_s11 + $0x168] sm:$0xff] }
  0x22   : > { %v5518_v46 = vld [vmem:[%s5338_s11 + $0x160] sm:$0xff]  ;;  %v378_v47 = vld [vmem:[%s5338_s11 + $0x178] sm:$0xff]  ;;  %v377_v48 = vld [vmem:[%s5338_s11 + $0x170] sm:$0xff] }
  0x23   : > { %v380_v49 = vld [vmem:[%s5338_s11 + $0x188] sm:$0xff]  ;;  %v379_v50 = vld [vmem:[%s5338_s11 + $0x180] sm:$0xff]  ;;  %v382_v51 = vld [vmem:[%s5338_s11 + $0x198] sm:$0xff] }
  0x24   : > { %489 = vperm.xlu1 %5102, %v5373_v9   ;;  %486 = vperm.xlu0 %5101, %v5376_v10   ;;  %v381_v52 = vld [vmem:[%s5338_s11 + $0x190] sm:$0xff]  ;;  %v384_v53 = vld [vmem:[%s5338_s11 + $0x1a8] sm:$0xff]  ;;  %v383_v54 = vld [vmem:[%s5338_s11 + $0x1a0] sm:$0xff] }
  0x25   : > { %v386_v55 = vld [vmem:[%s5338_s11 + $0x1b8] sm:$0xff]  ;;  %v385_v56 = vld [vmem:[%s5338_s11 + $0x1b0] sm:$0xff]  ;;  %v388_v57 = vld [vmem:[%s5338_s11 + $0x1c8] sm:$0xff] }
  0x26   : > { %v387_v58 = vld [vmem:[%s5338_s11 + $0x1c0] sm:$0xff]  ;;  %v390_v59 = vld [vmem:[%s5338_s11 + $0x1d8] sm:$0xff]  ;;  %v389_v60 = vld [vmem:[%s5338_s11 + $0x1d0] sm:$0xff] }
  0x27   : > { %v392_v61 = vld [vmem:[%s5338_s11 + $0x1e8] sm:$0xff]  ;;  %v391_v62 = vld [vmem:[%s5338_s11 + $0x1e0] sm:$0xff]  ;;  %v394_v63 = vld [vmem:[%s5338_s11 + $0x1f8] sm:$0xff] }
  0x28   : > { %495 = vperm.xlu1 %5102, %v5381_v11   ;;  %492 = vperm.xlu0 %5101, %v5384_v12   ;;  %v393_v0 = vld [vmem:[%s5338_s11 + $0x1f0] sm:$0xff] }
  0x2c   : > { %501 = vperm.xlu1 %5102, %v5389_v13   ;;  %498 = vperm.xlu0 %5101, %v5392_v14  }
  0x30   : > { %507 = vperm.xlu1 %5102, %v5397_v15   ;;  %504 = vperm.xlu0 %5101, %v5400_v16  }
  0x34   : > { %513 = vperm.xlu1 %5102, %v5405_v17   ;;  %510 = vperm.xlu0 %5101, %v5408_v18  }
  0x38   : > { %519 = vperm.xlu1 %5102, %v5413_v19   ;;  %516 = vperm.xlu0 %5101, %v5416_v20  }
  0x3c   : > { %525 = vperm.xlu1 %5102, %v5421_v21   ;;  %522 = vperm.xlu0 %5101, %v5424_v22  }
  0x40   : > { %531 = vperm.xlu1 %5102, %v5429_v23   ;;  %528 = vperm.xlu0 %5101, %v5432_v24  }
  0x44   : > { %537 = vperm.xlu1 %5102, %v5437_v25   ;;  %534 = vperm.xlu0 %5101, %v5440_v26  }
  0x48   : > { %543 = vperm.xlu1 %5102, %v5445_v27   ;;  %540 = vperm.xlu0 %5101, %v5448_v28  }
  0x4c   : > { %549 = vperm.xlu1 %5102, %v5453_v29   ;;  %546 = vperm.xlu0 %5101, %v5456_v30  }
  0x50   : > { %555 = vperm.xlu1 %5102, %v5461_v31   ;;  %552 = vperm.xlu0 %5101, %v5464_v32  }
  0x54   : > { %561 = vperm.xlu1 %5102, %v5469_v33   ;;  %558 = vperm.xlu0 %5101, %v5472_v34  }
  0x58   : > { %567 = vperm.xlu1 %5102, %v5477_v35   ;;  %564 = vperm.xlu0 %5101, %v5480_v36  }
  0x5c   : > { %573 = vperm.xlu1 %5102, %v5485_v37   ;;  %570 = vperm.xlu0 %5101, %v5488_v38  }
  0x60   : > { %579 = vperm.xlu1 %5102, %v5493_v39   ;;  %576 = vperm.xlu0 %5101, %v5496_v40  }
  0x64   : > { %585 = vperm.xlu1 %5102, %v5501_v41   ;;  %582 = vperm.xlu0 %5101, %v5504_v42  }
  0x68   : > { %591 = vperm.xlu1 %5102, %v5509_v43   ;;  %588 = vperm.xlu0 %5101, %v5512_v44  }
  0x6c   : > { %597 = vperm.xlu1 %5102, %v376_v45   ;;  %594 = vperm.xlu0 %5101, %v5518_v46   ;;  %v5546_v45 = vld [vmem:[%s5543_s14 + $0x8] sm:$0xff] }
  0x70   : > { %603 = vperm.xlu1 %5102, %v378_v47   ;;  %600 = vperm.xlu0 %5101, %v377_v48   ;;  %v5549_v47 = vld [vmem:[%s5543_s14] sm:$0xff] }
  0x74   : > { %609 = vperm.xlu1 %5102, %v380_v49   ;;  %606 = vperm.xlu0 %5101, %v379_v50   ;;  %v5558_v50 = vld [vmem:[%s5543_s14 + $0x18] sm:$0xff] }
  0x78   : > { %615 = vperm.xlu1 %5102, %v382_v51   ;;  %612 = vperm.xlu0 %5101, %v381_v52   ;;  %v5561_v51 = vld [vmem:[%s5543_s14 + $0x10] sm:$0xff] }
  0x7c   : > { %621 = vperm.xlu1 %5102, %v384_v53   ;;  %618 = vperm.xlu0 %5101, %v383_v54   ;;  %v5570_v54 = vld [vmem:[%s5543_s14 + $0x28] sm:$0xff] }
  0x80   : > { %627 = vperm.xlu1 %5102, %v386_v55   ;;  %624 = vperm.xlu0 %5101, %v385_v56   ;;  %v5573_v55 = vld [vmem:[%s5543_s14 + $0x20] sm:$0xff] }
  0x81   : > { %7818 = vst [vmem:[#allocation6_spill] sm:$0xff] %v5573_v55 }
  0x84   : > { %633 = vperm.xlu1 %5102, %v388_v57   ;;  %630 = vperm.xlu0 %5101, %v387_v58   ;;  %v5582_v58 = vld [vmem:[%s5543_s14 + $0x38] sm:$0xff] }
  0x88   : > { %639 = vperm.xlu1 %5102, %v390_v59   ;;  %636 = vperm.xlu0 %5101, %v389_v60   ;;  %v5585_v59 = vld [vmem:[%s5543_s14 + $0x30] sm:$0xff] }
  0x89   : > { %7821 = vst [vmem:[#allocation9_spill] sm:$0xff] %v5585_v59 }
  0x8c   : > { %645 = vperm.xlu1 %5102, %v392_v61   ;;  %642 = vperm.xlu0 %5101, %v391_v62   ;;  %v5594_v62 = vld [vmem:[%s5543_s14 + $0x48] sm:$0xff] }
  0x90   : > { %651 = vperm.xlu1 %5102, %v394_v63   ;;  %648 = vperm.xlu0 %5101, %v393_v0   ;;  %v5597_v63 = vld [vmem:[%s5543_s14 + $0x40] sm:$0xff] }
  0x91   : > { %7824 = vst [vmem:[#allocation12_spill] sm:$0xff] %v5597_v63 }
  0x93   : > { %v5551_v48 = vpop.permute.xlu1 %468  ;;  %v5553_v49 = vpop.permute.xlu0 %462 }
  0x94   : > { %7814 = vst [vmem:[#allocation2_spill] sm:$0xff] %v5551_v48  ;;  %7815 = vst [vmem:[#allocation3_spill] sm:$0xff] %v5553_v49  ;;  %724 = vperm.xlu1 %5102, %v5546_v45   ;;  %719 = vperm.xlu0 %5101, %v5549_v47  }
  0x97   : > { %v5563_v52 = vpop.permute.xlu1 %471  ;;  %v5565_v53 = vpop.permute.xlu0 %465 }
  0x98   : > { %7816 = vst [vmem:[#allocation4_spill] sm:$0xff] %v5563_v52  ;;  %7817 = vst [vmem:[#allocation5_spill] sm:$0xff] %v5565_v53  ;;  %734 = vperm.xlu1 %5102, %v5558_v50   ;;  %729 = vperm.xlu0 %5101, %v5561_v51  }
  0x9b   : > { %v5575_v56 = vpop.permute.xlu1 %477  ;;  %v5577_v57 = vpop.permute.xlu0 %474 }
  0x9c   : > { %7819 = vst [vmem:[#allocation7_spill] sm:$0xff] %v5575_v56  ;;  %7820 = vst [vmem:[#allocation8_spill] sm:$0xff] %v5577_v57  ;;  %744 = vperm.xlu1 %5102, %v5570_v54   ;;  %739 = vperm.xlu0 %5101, %v5573_v55  }
  0x9f   : > { %v5587_v60 = vpop.permute.xlu1 %483  ;;  %v5589_v61 = vpop.permute.xlu0 %480 }
  0xa0   : > { %7822 = vst [vmem:[#allocation10_spill] sm:$0xff] %v5587_v60  ;;  %7823 = vst [vmem:[#allocation11_spill] sm:$0xff] %v5589_v61  ;;  %754 = vperm.xlu1 %5102, %v5582_v58   ;;  %749 = vperm.xlu0 %5101, %v5585_v59   ;;  %v5606_v60 = vld [vmem:[%s5543_s14 + $0x58] sm:$0xff]  ;;  %v5609_v61 = vld [vmem:[%s5543_s14 + $0x50] sm:$0xff] }
  0xa1   : > { %7827 = vst [vmem:[#allocation15_spill] sm:$0xff] %v5609_v61 }
  0xa3   : > { %v5599_v0 = vpop.permute.xlu1 %489  ;;  %v5601_v56 = vpop.permute.xlu0 %486 }
  0xa4   : > { %7825 = vst [vmem:[#allocation13_spill] sm:$0xff] %v5599_v0  ;;  %7826 = vst [vmem:[#allocation14_spill] sm:$0xff] %v5601_v56  ;;  %764 = vperm.xlu1 %5102, %v5594_v62   ;;  %759 = vperm.xlu0 %5101, %v5597_v63   ;;  %v5618_v0 = vld [vmem:[%s5543_s14 + $0x68] sm:$0xff]  ;;  %v5621_v56 = vld [vmem:[%s5543_s14 + $0x60] sm:$0xff] }
  0xa5   : > { %7830 = vst [vmem:[#allocation18_spill] sm:$0xff] %v5618_v0  ;;  %7831 = vst [vmem:[#allocation19_spill] sm:$0xff] %v5621_v56 }
  0xa7   : > { %v5611_v57 = vpop.permute.xlu1 %495  ;;  %v5613_v52 = vpop.permute.xlu0 %492 }
  0xa8   : > { %7828 = vst [vmem:[#allocation16_spill] sm:$0xff] %v5611_v57  ;;  %7829 = vst [vmem:[#allocation17_spill] sm:$0xff] %v5613_v52  ;;  %774 = vperm.xlu1 %5102, %v5606_v60   ;;  %769 = vperm.xlu0 %5101, %v5609_v61   ;;  %v5630_v57 = vld [vmem:[%s5543_s14 + $0x78] sm:$0xff]  ;;  %v5633_v52 = vld [vmem:[%s5543_s14 + $0x70] sm:$0xff] }
  0xa9   : > { %7834 = vst [vmem:[#allocation22_spill] sm:$0xff] %v5630_v57  ;;  %7835 = vst [vmem:[#allocation23_spill] sm:$0xff] %v5633_v52 }
  0xab   : > { %v5623_v48 = vpop.permute.xlu1 %501  ;;  %v5625_v53 = vpop.permute.xlu0 %498 }
  0xac   : > { %7832 = vst [vmem:[#allocation20_spill] sm:$0xff] %v5623_v48  ;;  %7833 = vst [vmem:[#allocation21_spill] sm:$0xff] %v5625_v53  ;;  %784 = vperm.xlu1 %5102, %v5618_v0   ;;  %779 = vperm.xlu0 %5101, %v5621_v56   ;;  %v5642_v48 = vld [vmem:[%s5543_s14 + $0x88] sm:$0xff]  ;;  %v5645_v53 = vld [vmem:[%s5543_s14 + $0x80] sm:$0xff] }
  0xad   : > { %7838 = vst [vmem:[#allocation26_spill] sm:$0xff] %v5642_v48  ;;  %7839 = vst [vmem:[#allocation27_spill] sm:$0xff] %v5645_v53 }
  0xaf   : > { %v5635_v49 = vpop.permute.xlu1 %507  ;;  %v5637_v61 = vpop.permute.xlu0 %504 }
  0xb0   : > { %7836 = vst [vmem:[#allocation24_spill] sm:$0xff] %v5635_v49  ;;  %7837 = vst [vmem:[#allocation25_spill] sm:$0xff] %v5637_v61  ;;  %794 = vperm.xlu1 %5102, %v5630_v57   ;;  %789 = vperm.xlu0 %5101, %v5633_v52   ;;  %v5654_v49 = vld [vmem:[%s5543_s14 + $0x98] sm:$0xff]  ;;  %v5657_v61 = vld [vmem:[%s5543_s14 + $0x90] sm:$0xff] }
  0xb1   : > { %7842 = vst [vmem:[#allocation30_spill] sm:$0xff] %v5654_v49  ;;  %7843 = vst [vmem:[#allocation31_spill] sm:$0xff] %v5657_v61  ;;  %v5901_v57 = vld [vmem:[%s5543_s14 + $0x1e0] sm:$0xff] }
  0xb3   : > { %v5647_v63 = vpop.permute.xlu1 %513  ;;  %v5649_v56 = vpop.permute.xlu0 %510 }
  0xb4   : > { %7840 = vst [vmem:[#allocation28_spill] sm:$0xff] %v5647_v63  ;;  %7841 = vst [vmem:[#allocation29_spill] sm:$0xff] %v5649_v56  ;;  %804 = vperm.xlu1 %5102, %v5642_v48   ;;  %799 = vperm.xlu0 %5101, %v5645_v53   ;;  %v5666_v63 = vld [vmem:[%s5543_s14 + $0xa8] sm:$0xff]  ;;  %v5669_v56 = vld [vmem:[%s5543_s14 + $0xa0] sm:$0xff] }
  0xb5   : > { %7846 = vst [vmem:[#allocation34_spill] sm:$0xff] %v5666_v63  ;;  %7847 = vst [vmem:[#allocation35_spill] sm:$0xff] %v5669_v56  ;;  %v5892_v48 = vld [vmem:[%s5543_s14 + $0x1d0] sm:$0xff] }
  0xb7   : > { %v5659_v59 = vpop.permute.xlu1 %519  ;;  %v5661_v52 = vpop.permute.xlu0 %516 }
  0xb8   : > { %7844 = vst [vmem:[#allocation32_spill] sm:$0xff] %v5659_v59  ;;  %7845 = vst [vmem:[#allocation33_spill] sm:$0xff] %v5661_v52  ;;  %814 = vperm.xlu1 %5102, %v5654_v49   ;;  %809 = vperm.xlu0 %5101, %v5657_v61   ;;  %v5678_v59 = vld [vmem:[%s5543_s14 + $0xb8] sm:$0xff]  ;;  %v5681_v52 = vld [vmem:[%s5543_s14 + $0xb0] sm:$0xff] }
  0xb9   : > { %7850 = vst [vmem:[#allocation38_spill] sm:$0xff] %v5678_v59  ;;  %7851 = vst [vmem:[#allocation39_spill] sm:$0xff] %v5681_v52 }
  0xbb   : > { %v5671_v55 = vpop.permute.xlu1 %525  ;;  %v5673_v53 = vpop.permute.xlu0 %522 }
  0xbc   : > { %7848 = vst [vmem:[#allocation36_spill] sm:$0xff] %v5671_v55  ;;  %7849 = vst [vmem:[#allocation37_spill] sm:$0xff] %v5673_v53  ;;  %824 = vperm.xlu1 %5102, %v5666_v63   ;;  %819 = vperm.xlu0 %5101, %v5669_v56   ;;  %v5690_v55 = vld [vmem:[%s5543_s14 + $0xc8] sm:$0xff]  ;;  %v5693_v53 = vld [vmem:[%s5543_s14 + $0xc0] sm:$0xff] }
  0xbd   : > { %7854 = vst [vmem:[#allocation42_spill] sm:$0xff] %v5690_v55  ;;  %7855 = vst [vmem:[#allocation43_spill] sm:$0xff] %v5693_v53 }
  0xbf   : > { %v5683_v49 = vpop.permute.xlu1 %531  ;;  %v5685_v61 = vpop.permute.xlu0 %528 }
  0xc0   : > { %7852 = vst [vmem:[#allocation40_spill] sm:$0xff] %v5683_v49  ;;  %7853 = vst [vmem:[#allocation41_spill] sm:$0xff] %v5685_v61  ;;  %834 = vperm.xlu1 %5102, %v5678_v59   ;;  %829 = vperm.xlu0 %5101, %v5681_v52   ;;  %v5702_v49 = vld [vmem:[%s5543_s14 + $0xd8] sm:$0xff]  ;;  %v5705_v61 = vld [vmem:[%s5543_s14 + $0xd0] sm:$0xff] }
  0xc1   : > { %7858 = vst [vmem:[#allocation46_spill] sm:$0xff] %v5702_v49  ;;  %7859 = vst [vmem:[#allocation47_spill] sm:$0xff] %v5705_v61 }
  0xc3   : > { %v5695_v63 = vpop.permute.xlu1 %537  ;;  %v5697_v56 = vpop.permute.xlu0 %534 }
  0xc4   : > { %7856 = vst [vmem:[#allocation44_spill] sm:$0xff] %v5695_v63  ;;  %7857 = vst [vmem:[#allocation45_spill] sm:$0xff] %v5697_v56  ;;  %844 = vperm.xlu1 %5102, %v5690_v55   ;;  %839 = vperm.xlu0 %5101, %v5693_v53   ;;  %v5714_v63 = vld [vmem:[%s5543_s14 + $0xe8] sm:$0xff]  ;;  %v5717_v56 = vld [vmem:[%s5543_s14 + $0xe0] sm:$0xff] }
  0xc5   : > { %7862 = vst [vmem:[#allocation50_spill] sm:$0xff] %v5714_v63  ;;  %7863 = vst [vmem:[#allocation51_spill] sm:$0xff] %v5717_v56 }
  0xc7   : > { %v5707_v59 = vpop.permute.xlu1 %543  ;;  %v5709_v52 = vpop.permute.xlu0 %540 }
  0xc8   : > { %7860 = vst [vmem:[#allocation48_spill] sm:$0xff] %v5707_v59  ;;  %7861 = vst [vmem:[#allocation49_spill] sm:$0xff] %v5709_v52  ;;  %854 = vperm.xlu1 %5102, %v5702_v49   ;;  %849 = vperm.xlu0 %5101, %v5705_v61   ;;  %v5726_v59 = vld [vmem:[%s5543_s14 + $0xf8] sm:$0xff]  ;;  %v5729_v52 = vld [vmem:[%s5543_s14 + $0xf0] sm:$0xff] }
  0xc9   : > { %7866 = vst [vmem:[#allocation54_spill] sm:$0xff] %v5726_v59  ;;  %7867 = vst [vmem:[#allocation55_spill] sm:$0xff] %v5729_v52 }
  0xcb   : > { %v5719_v55 = vpop.permute.xlu1 %549  ;;  %v5721_v53 = vpop.permute.xlu0 %546 }
  0xcc   : > { %7864 = vst [vmem:[#allocation52_spill] sm:$0xff] %v5719_v55  ;;  %7865 = vst [vmem:[#allocation53_spill] sm:$0xff] %v5721_v53  ;;  %864 = vperm.xlu1 %5102, %v5714_v63   ;;  %859 = vperm.xlu0 %5101, %v5717_v56   ;;  %v5738_v55 = vld [vmem:[%s5543_s14 + $0x108] sm:$0xff]  ;;  %v5741_v53 = vld [vmem:[%s5543_s14 + $0x100] sm:$0xff] }
  0xcd   : > { %7870 = vst [vmem:[#allocation58_spill] sm:$0xff] %v5738_v55  ;;  %7871 = vst [vmem:[#allocation59_spill] sm:$0xff] %v5741_v53 }
  0xcf   : > { %v5731_v49 = vpop.permute.xlu1 %555  ;;  %v5733_v61 = vpop.permute.xlu0 %552 }
  0xd0   : > { %7868 = vst [vmem:[#allocation56_spill] sm:$0xff] %v5731_v49  ;;  %7869 = vst [vmem:[#allocation57_spill] sm:$0xff] %v5733_v61  ;;  %874 = vperm.xlu1 %5102, %v5726_v59   ;;  %869 = vperm.xlu0 %5101, %v5729_v52   ;;  %v5750_v49 = vld [vmem:[%s5543_s14 + $0x118] sm:$0xff]  ;;  %v5753_v61 = vld [vmem:[%s5543_s14 + $0x110] sm:$0xff] }
  0xd1   : > { %7874 = vst [vmem:[#allocation62_spill] sm:$0xff] %v5750_v49  ;;  %7875 = vst [vmem:[#allocation63_spill] sm:$0xff] %v5753_v61 }
  0xd3   : > { %v5743_v63 = vpop.permute.xlu1 %561  ;;  %v5745_v56 = vpop.permute.xlu0 %558 }
  0xd4   : > { %7872 = vst [vmem:[#allocation60_spill] sm:$0xff] %v5743_v63  ;;  %7873 = vst [vmem:[#allocation61_spill] sm:$0xff] %v5745_v56  ;;  %884 = vperm.xlu1 %5102, %v5738_v55   ;;  %879 = vperm.xlu0 %5101, %v5741_v53   ;;  %v5762_v63 = vld [vmem:[%s5543_s14 + $0x128] sm:$0xff]  ;;  %v5765_v56 = vld [vmem:[%s5543_s14 + $0x120] sm:$0xff] }
  0xd5   : > { %7878 = vst [vmem:[#allocation66_spill] sm:$0xff] %v5762_v63  ;;  %7879 = vst [vmem:[#allocation67_spill] sm:$0xff] %v5765_v56 }
  0xd7   : > { %v5755_v59 = vpop.permute.xlu1 %567  ;;  %v5757_v52 = vpop.permute.xlu0 %564 }
  0xd8   : > { %7876 = vst [vmem:[#allocation64_spill] sm:$0xff] %v5755_v59  ;;  %7877 = vst [vmem:[#allocation65_spill] sm:$0xff] %v5757_v52  ;;  %894 = vperm.xlu1 %5102, %v5750_v49   ;;  %889 = vperm.xlu0 %5101, %v5753_v61   ;;  %v5774_v59 = vld [vmem:[%s5543_s14 + $0x138] sm:$0xff]  ;;  %v5777_v52 = vld [vmem:[%s5543_s14 + $0x130] sm:$0xff] }
  0xd9   : > { %7882 = vst [vmem:[#allocation70_spill] sm:$0xff] %v5774_v59  ;;  %7883 = vst [vmem:[#allocation71_spill] sm:$0xff] %v5777_v52 }
  0xdb   : > { %v5767_v55 = vpop.permute.xlu1 %573  ;;  %v5769_v53 = vpop.permute.xlu0 %570 }
  0xdc   : > { %7880 = vst [vmem:[#allocation68_spill] sm:$0xff] %v5767_v55  ;;  %7881 = vst [vmem:[#allocation69_spill] sm:$0xff] %v5769_v53  ;;  %904 = vperm.xlu1 %5102, %v5762_v63   ;;  %899 = vperm.xlu0 %5101, %v5765_v56   ;;  %v5786_v55 = vld [vmem:[%s5543_s14 + $0x148] sm:$0xff]  ;;  %v5789_v53 = vld [vmem:[%s5543_s14 + $0x140] sm:$0xff] }
  0xdd   : > { %7886 = vst [vmem:[#allocation74_spill] sm:$0xff] %v5786_v55  ;;  %7887 = vst [vmem:[#allocation75_spill] sm:$0xff] %v5789_v53 }
  0xdf   : > { %v5779_v49 = vpop.permute.xlu1 %579  ;;  %v5781_v61 = vpop.permute.xlu0 %576 }
  0xe0   : > { %7884 = vst [vmem:[#allocation72_spill] sm:$0xff] %v5779_v49  ;;  %7885 = vst [vmem:[#allocation73_spill] sm:$0xff] %v5781_v61  ;;  %914 = vperm.xlu1 %5102, %v5774_v59   ;;  %909 = vperm.xlu0 %5101, %v5777_v52   ;;  %v5798_v49 = vld [vmem:[%s5543_s14 + $0x158] sm:$0xff]  ;;  %v5801_v61 = vld [vmem:[%s5543_s14 + $0x150] sm:$0xff] }
  0xe1   : > { %7890 = vst [vmem:[#allocation78_spill] sm:$0xff] %v5798_v49  ;;  %7891 = vst [vmem:[#allocation79_spill] sm:$0xff] %v5801_v61 }
  0xe3   : > { %v5791_v63 = vpop.permute.xlu1 %585  ;;  %v5793_v56 = vpop.permute.xlu0 %582 }
  0xe4   : > { %7888 = vst [vmem:[#allocation76_spill] sm:$0xff] %v5791_v63  ;;  %7889 = vst [vmem:[#allocation77_spill] sm:$0xff] %v5793_v56  ;;  %924 = vperm.xlu1 %5102, %v5786_v55   ;;  %919 = vperm.xlu0 %5101, %v5789_v53   ;;  %v5810_v63 = vld [vmem:[%s5543_s14 + $0x168] sm:$0xff]  ;;  %v5813_v56 = vld [vmem:[%s5543_s14 + $0x160] sm:$0xff] }
  0xe5   : > { %7894 = vst [vmem:[#allocation82_spill] sm:$0xff] %v5810_v63  ;;  %7895 = vst [vmem:[#allocation83_spill] sm:$0xff] %v5813_v56 }
  0xe7   : > { %v5803_v59 = vpop.permute.xlu1 %591  ;;  %v5805_v52 = vpop.permute.xlu0 %588 }
  0xe8   : > { %7892 = vst [vmem:[#allocation80_spill] sm:$0xff] %v5803_v59  ;;  %7893 = vst [vmem:[#allocation81_spill] sm:$0xff] %v5805_v52  ;;  %934 = vperm.xlu1 %5102, %v5798_v49   ;;  %929 = vperm.xlu0 %5101, %v5801_v61   ;;  %v5822_v59 = vld [vmem:[%s5543_s14 + $0x178] sm:$0xff]  ;;  %v5825_v52 = vld [vmem:[%s5543_s14 + $0x170] sm:$0xff] }
  0xe9   : > { %7898 = vst [vmem:[#allocation86_spill] sm:$0xff] %v5822_v59  ;;  %7899 = vst [vmem:[#allocation87_spill] sm:$0xff] %v5825_v52 }
  0xeb   : > { %v5815_v55 = vpop.permute.xlu1 %597  ;;  %v5817_v53 = vpop.permute.xlu0 %594 }
  0xec   : > { %7896 = vst [vmem:[#allocation84_spill] sm:$0xff] %v5815_v55  ;;  %7897 = vst [vmem:[#allocation85_spill] sm:$0xff] %v5817_v53  ;;  %944 = vperm.xlu1 %5102, %v5810_v63   ;;  %939 = vperm.xlu0 %5101, %v5813_v56   ;;  %v5834_v55 = vld [vmem:[%s5543_s14 + $0x188] sm:$0xff]  ;;  %v5837_v53 = vld [vmem:[%s5543_s14 + $0x180] sm:$0xff] }
  0xed   : > { %7902 = vst [vmem:[#allocation90_spill] sm:$0xff] %v5834_v55  ;;  %7903 = vst [vmem:[#allocation91_spill] sm:$0xff] %v5837_v53 }
  0xef   : > { %v5827_v49 = vpop.permute.xlu1 %603  ;;  %v5829_v61 = vpop.permute.xlu0 %600 }
  0xf0   : > { %7900 = vst [vmem:[#allocation88_spill] sm:$0xff] %v5827_v49  ;;  %7901 = vst [vmem:[#allocation89_spill] sm:$0xff] %v5829_v61  ;;  %954 = vperm.xlu1 %5102, %v5822_v59   ;;  %949 = vperm.xlu0 %5101, %v5825_v52   ;;  %v5846_v49 = vld [vmem:[%s5543_s14 + $0x198] sm:$0xff]  ;;  %v5849_v61 = vld [vmem:[%s5543_s14 + $0x190] sm:$0xff] }
  0xf1   : > { %7906 = vst [vmem:[#allocation94_spill] sm:$0xff] %v5846_v49  ;;  %7907 = vst [vmem:[#allocation95_spill] sm:$0xff] %v5849_v61 }
  0xf3   : > { %v5839_v63 = vpop.permute.xlu1 %609  ;;  %v5841_v56 = vpop.permute.xlu0 %606 }
  0xf4   : > { %7904 = vst [vmem:[#allocation92_spill] sm:$0xff] %v5839_v63  ;;  %7905 = vst [vmem:[#allocation93_spill] sm:$0xff] %v5841_v56  ;;  %964 = vperm.xlu1 %5102, %v5834_v55   ;;  %959 = vperm.xlu0 %5101, %v5837_v53   ;;  %v5858_v63 = vld [vmem:[%s5543_s14 + $0x1a8] sm:$0xff]  ;;  %v5861_v56 = vld [vmem:[%s5543_s14 + $0x1a0] sm:$0xff] }
  0xf5   : > { %7910 = vst [vmem:[#allocation98_spill] sm:$0xff] %v5858_v63  ;;  %7911 = vst [vmem:[#allocation99_spill] sm:$0xff] %v5861_v56 }
  0xf7   : > { %v5851_v59 = vpop.permute.xlu1 %615  ;;  %v5853_v52 = vpop.permute.xlu0 %612 }
  0xf8   : > { %7908 = vst [vmem:[#allocation96_spill] sm:$0xff] %v5851_v59  ;;  %7909 = vst [vmem:[#allocation97_spill] sm:$0xff] %v5853_v52  ;;  %974 = vperm.xlu1 %5102, %v5846_v49   ;;  %969 = vperm.xlu0 %5101, %v5849_v61   ;;  %v5870_v59 = vld [vmem:[%s5543_s14 + $0x1b8] sm:$0xff]  ;;  %v5873_v52 = vld [vmem:[%s5543_s14 + $0x1b0] sm:$0xff] }
  0xf9   : > { %7914 = vst [vmem:[#allocation102_spill] sm:$0xff] %v5870_v59  ;;  %7915 = vst [vmem:[#allocation103_spill] sm:$0xff] %v5873_v52 }
  0xfb   : > { %v5863_v55 = vpop.permute.xlu1 %621  ;;  %v5865_v53 = vpop.permute.xlu0 %618 }
  0xfc   : > { %7912 = vst [vmem:[#allocation100_spill] sm:$0xff] %v5863_v55  ;;  %7913 = vst [vmem:[#allocation101_spill] sm:$0xff] %v5865_v53  ;;  %984 = vperm.xlu1 %5102, %v5858_v63   ;;  %979 = vperm.xlu0 %5101, %v5861_v56   ;;  %v452_v55 = vld [vmem:[%s5543_s14 + $0x1c8] sm:$0xff]  ;;  %v5883_v53 = vld [vmem:[%s5543_s14 + $0x1c0] sm:$0xff] }
  0xfd   : > { %7918 = vst [vmem:[#allocation106_spill] sm:$0xff] %v5883_v53 }
  0xff   : > { %v5875_v49 = vpop.permute.xlu1 %627  ;;  %v5877_v61 = vpop.permute.xlu0 %624 }
 0x100   : > { %7916 = vst [vmem:[#allocation104_spill] sm:$0xff] %v5875_v49  ;;  %7917 = vst [vmem:[#allocation105_spill] sm:$0xff] %v5877_v61  ;;  %994 = vperm.xlu1 %5102, %v5870_v59   ;;  %989 = vperm.xlu0 %5101, %v5873_v52   ;;  %v454_v49 = vld [vmem:[%s5543_s14 + $0x1d8] sm:$0xff]  ;;  %v456_v52 = vld [vmem:[%s5543_s14 + $0x1e8] sm:$0xff] }
 0x103   : > { %v5885_v63 = vpop.permute.xlu1 %633  ;;  %v5887_v56 = vpop.permute.xlu0 %630 }
 0x104   : > { %7919 = vst [vmem:[#allocation107_spill] sm:$0xff] %v5885_v63  ;;  %7920 = vst [vmem:[#allocation108_spill] sm:$0xff] %v5887_v56  ;;  %1004 = vperm.xlu1 %5102, %v452_v55   ;;  %999 = vperm.xlu0 %5101, %v5883_v53   ;;  %v458_v55 = vld [vmem:[%s5543_s14 + $0x1f8] sm:$0xff]  ;;  %v5910_v53 = vld [vmem:[%s5543_s14 + $0x1f0] sm:$0xff] }
 0x107   : > { %v5894_v61 = vpop.permute.xlu1 %639  ;;  %v5896_v59 = vpop.permute.xlu0 %636 }
 0x108   : > { %7921 = vst [vmem:[#allocation109_spill] sm:$0xff] %v5894_v61  ;;  %7922 = vst [vmem:[#allocation110_spill] sm:$0xff] %v5896_v59  ;;  %1014 = vperm.xlu1 %5102, %v454_v49   ;;  %1009 = vperm.xlu0 %5101, %v5892_v48  }
 0x10b   : > { %v5903_v63 = vpop.permute.xlu1 %645  ;;  %v5905_v56 = vpop.permute.xlu0 %642 }
 0x10c   : > { %7923 = vst [vmem:[#allocation111_spill] sm:$0xff] %v5903_v63  ;;  %7924 = vst [vmem:[#allocation112_spill] sm:$0xff] %v5905_v56  ;;  %1024 = vperm.xlu1 %5102, %v456_v52   ;;  %1019 = vperm.xlu0 %5101, %v5901_v57   ;;  %v7805_v63 = vmov 1  }
 0x10f   : > { %v5912_v0 = vpop.permute.xlu1 %651  ;;  %v5914_v61 = vpop.permute.xlu0 %648 }
 0x110   : > { %7925 = vst [vmem:[#allocation113_spill] sm:$0xff] %v5912_v0  ;;  %7926 = vst [vmem:[#allocation114_spill] sm:$0xff] %v5914_v61  ;;  %1034 = vperm.xlu1 %5102, %v458_v55   ;;  %1029 = vperm.xlu0 %5101, %v5910_v53  }
 0x113   : > { %v5917_v49 = vpop.permute.xlu1 %724  ;;  %v5919_v59 = vpop.permute.xlu0 %719 }
 0x114   : > { %5104 = vset.pattern.permute.xlu1 %v7805_v63  ;;  %5103 = vset.pattern.permute.xlu0 %v7805_v63 }
 0x115   : > { %1169 = vperm.xlu1 %5104, %v5352_v4   ;;  %1166 = vperm.xlu0 %5103, %v5344_v2  }
 0x117   : > { %v5925_v52 = vpop.permute.xlu1 %734  ;;  %v5927_v0 = vpop.permute.xlu0 %729 }
 0x118   : > { %7927 = vst [vmem:[#allocation115_spill] sm:$0xff] %v5927_v0 }
 0x119   : > { %1172 = vperm.xlu1 %5104, %v5341_v1   ;;  %1175 = vperm.xlu0 %5103, %v5349_v3  }
 0x11b   : > { %v5931_v55 = vpop.permute.xlu1 %744  ;;  %v5933_v61 = vpop.permute.xlu0 %739 }
 0x11c   : > { %7928 = vst [vmem:[#allocation116_spill] sm:$0xff] %v5931_v55  ;;  %7929 = vst [vmem:[#allocation117_spill] sm:$0xff] %v5933_v61 }
 0x11d   : > { %1178 = vperm.xlu1 %5104, %v5360_v6   ;;  %1181 = vperm.xlu0 %5103, %v5357_v5  }
 0x11f   : > { %v5937_v63 = vpop.permute.xlu1 %754  ;;  %v5939_v56 = vpop.permute.xlu0 %749 }
 0x120   : > { %7930 = vst [vmem:[#allocation118_spill] sm:$0xff] %v5937_v63  ;;  %7931 = vst [vmem:[#allocation119_spill] sm:$0xff] %v5939_v56 }
 0x121   : > { %1184 = vperm.xlu1 %5104, %v5368_v8   ;;  %1187 = vperm.xlu0 %5103, %v5365_v7  }
 0x123   : > { %v5943_v2 = vpop.permute.xlu1 %764  ;;  %v5945_v0 = vpop.permute.xlu0 %759 }
 0x124   : > { %7932 = vst [vmem:[#allocation120_spill] sm:$0xff] %v5943_v2  ;;  %7933 = vst [vmem:[#allocation121_spill] sm:$0xff] %v5945_v0 }
 0x125   : > { %1190 = vperm.xlu1 %5104, %v5376_v10   ;;  %1193 = vperm.xlu0 %5103, %v5373_v9  }
 0x127   : > { %v5949_v61 = vpop.permute.xlu1 %774  ;;  %v5951_v55 = vpop.permute.xlu0 %769 }
 0x128   : > { %7934 = vst [vmem:[#allocation122_spill] sm:$0xff] %v5949_v61  ;;  %7935 = vst [vmem:[#allocation123_spill] sm:$0xff] %v5951_v55 }
 0x129   : > { %1196 = vperm.xlu1 %5104, %v5384_v12   ;;  %1199 = vperm.xlu0 %5103, %v5381_v11  }
 0x12b   : > { %v5955_v56 = vpop.permute.xlu1 %784  ;;  %v5957_v63 = vpop.permute.xlu0 %779 }
 0x12c   : > { %7936 = vst [vmem:[#allocation124_spill] sm:$0xff] %v5957_v63 }
 0x12d   : > { %1202 = vperm.xlu1 %5104, %v5392_v14   ;;  %1205 = vperm.xlu0 %5103, %v5389_v13  }
 0x12f   : > { %v5961_v0 = vpop.permute.xlu1 %794  ;;  %v5963_v2 = vpop.permute.xlu0 %789 }
 0x130   : > { %7937 = vst [vmem:[#allocation125_spill] sm:$0xff] %v5961_v0  ;;  %7938 = vst [vmem:[#allocation126_spill] sm:$0xff] %v5963_v2  ;;  %v459_v2 = vlaneseq  ;;  %v8092_v0 = vld [vmem:[#allocation94_spill] sm:$0xff] }
 0x131   : > { %1208 = vperm.xlu1 %5104, %v5400_v16   ;;  %1211 = vperm.xlu0 %5103, %v5397_v15  }
 0x133   : > { %v5967_v55 = vpop.permute.xlu1 %804  ;;  %v5969_v61 = vpop.permute.xlu0 %799 }
 0x134   : > { %7939 = vst [vmem:[#allocation127_spill] sm:$0xff] %v5967_v55  ;;  %7940 = vst [vmem:[#allocation128_spill] sm:$0xff] %v5969_v61  ;;  %v5181_v55 = vld [vmem:[%s5338_s11 + $0xb8] sm:$0xff] }
 0x135   : > { %1214 = vperm.xlu1 %5104, %v5408_v18   ;;  %1217 = vperm.xlu0 %5103, %v5405_v17  }
 0x137   : > { %v5973_v63 = vpop.permute.xlu1 %814  ;;  %v5975_v14 = vpop.permute.xlu0 %809 }
 0x138   : > { %7941 = vst [vmem:[#allocation129_spill] sm:$0xff] %v5973_v63  ;;  %7942 = vst [vmem:[#allocation130_spill] sm:$0xff] %v5975_v14 }
 0x139   : > { %1220 = vperm.xlu1 %5104, %v5416_v20   ;;  %1223 = vperm.xlu0 %5103, %v5413_v19  }
 0x13b   : > { %v5979_v13 = vpop.permute.xlu1 %824  ;;  %v5981_v16 = vpop.permute.xlu0 %819 }
 0x13c   : > { %7943 = vst [vmem:[#allocation131_spill] sm:$0xff] %v5979_v13  ;;  %7944 = vst [vmem:[#allocation132_spill] sm:$0xff] %v5981_v16  ;;  %v5177_v13 = vld [vmem:[%s5338_s11 + $0x98] sm:$0xff] }
 0x13d   : > { %1226 = vperm.xlu1 %5104, %v5424_v22   ;;  %1229 = vperm.xlu0 %5103, %v5421_v21   ;;  %v8054_v16 = vld [vmem:[#allocation35_spill] sm:$0xff] }
 0x13f   : > { %v5985_v15 = vpop.permute.xlu1 %834  ;;  %v5987_v18 = vpop.permute.xlu0 %829 }
 0x140   : > { %7945 = vst [vmem:[#allocation133_spill] sm:$0xff] %v5985_v15  ;;  %7946 = vst [vmem:[#allocation134_spill] sm:$0xff] %v5987_v18  ;;  %v8019_v18 = vld [vmem:[#allocation15_spill] sm:$0xff] }
 0x141   : > { %1232 = vperm.xlu1 %5104, %v5432_v24   ;;  %1235 = vperm.xlu0 %5103, %v5429_v23  }
 0x143   : > { %v5991_v17 = vpop.permute.xlu1 %844  ;;  %v5993_v20 = vpop.permute.xlu0 %839 }
 0x144   : > { %7947 = vst [vmem:[#allocation135_spill] sm:$0xff] %v5991_v17  ;;  %7948 = vst [vmem:[#allocation136_spill] sm:$0xff] %v5993_v20  ;;  %v8015_v20 = vld [vmem:[#allocation78_spill] sm:$0xff] }
 0x145   : > { %1238 = vperm.xlu1 %5104, %v5440_v26   ;;  %1241 = vperm.xlu0 %5103, %v5437_v25  }
 0x147   : > { %v5997_v19 = vpop.permute.xlu1 %854  ;;  %v5999_v22 = vpop.permute.xlu0 %849 }
 0x148   : > { %7949 = vst [vmem:[#allocation137_spill] sm:$0xff] %v5997_v19  ;;  %7950 = vst [vmem:[#allocation138_spill] sm:$0xff] %v5999_v22  ;;  %v8012_v22 = vld [vmem:[#allocation74_spill] sm:$0xff] }
 0x149   : > { %1244 = vperm.xlu1 %5104, %v5448_v28   ;;  %1247 = vperm.xlu0 %5103, %v5445_v27  }
 0x14b   : > { %v6003_v21 = vpop.permute.xlu1 %864  ;;  %v6005_v24 = vpop.permute.xlu0 %859 }
 0x14c   : > { %7951 = vst [vmem:[#allocation139_spill] sm:$0xff] %v6003_v21  ;;  %7952 = vst [vmem:[#allocation140_spill] sm:$0xff] %v6005_v24  ;;  %v8006_v21 = vld [vmem:[#allocation66_spill] sm:$0xff] }
 0x14d   : > { %1250 = vperm.xlu1 %5104, %v5456_v30   ;;  %1253 = vperm.xlu0 %5103, %v5453_v29  }
 0x14f   : > { %v6009_v23 = vpop.permute.xlu1 %874  ;;  %v6011_v26 = vpop.permute.xlu0 %869 }
 0x150   : > { %7953 = vst [vmem:[#allocation141_spill] sm:$0xff] %v6009_v23  ;;  %7954 = vst [vmem:[#allocation142_spill] sm:$0xff] %v6011_v26 }
 0x151   : > { %1256 = vperm.xlu1 %5104, %v5464_v32   ;;  %1259 = vperm.xlu0 %5103, %v5461_v31  }
 0x153   : > { %v6015_v25 = vpop.permute.xlu1 %884  ;;  %v6017_v28 = vpop.permute.xlu0 %879 }
 0x154   : > { %7955 = vst [vmem:[#allocation143_spill] sm:$0xff] %v6015_v25  ;;  %7956 = vst [vmem:[#allocation144_spill] sm:$0xff] %v6017_v28  ;;  %v8001_v28 = vld [vmem:[#allocation58_spill] sm:$0xff] }
 0x155   : > { %1262 = vperm.xlu1 %5104, %v5472_v34   ;;  %1265 = vperm.xlu0 %5103, %v5469_v33  }
 0x157   : > { %v6021_v27 = vpop.permute.xlu1 %894  ;;  %v6023_v30 = vpop.permute.xlu0 %889 }
 0x158   : > { %7957 = vst [vmem:[#allocation145_spill] sm:$0xff] %v6021_v27  ;;  %7958 = vst [vmem:[#allocation146_spill] sm:$0xff] %v6023_v30  ;;  %v8000_v30 = vld [vmem:[#allocation54_spill] sm:$0xff] }
 0x159   : > { %1268 = vperm.xlu1 %5104, %v5480_v36   ;;  %1271 = vperm.xlu0 %5103, %v5477_v35  }
 0x15b   : > { %v6027_v29 = vpop.permute.xlu1 %904  ;;  %v6029_v32 = vpop.permute.xlu0 %899 }
 0x15c   : > { %7959 = vst [vmem:[#allocation147_spill] sm:$0xff] %v6027_v29  ;;  %7960 = vst [vmem:[#allocation148_spill] sm:$0xff] %v6029_v32  ;;  %v7999_v32 = vld [vmem:[#allocation50_spill] sm:$0xff] }
 0x15d   : > { %1274 = vperm.xlu1 %5104, %v5488_v38   ;;  %1277 = vperm.xlu0 %5103, %v5485_v37  }
 0x15f   : > { %v6033_v31 = vpop.permute.xlu1 %914  ;;  %v6035_v34 = vpop.permute.xlu0 %909 }
 0x160   : > { %7961 = vst [vmem:[#allocation149_spill] sm:$0xff] %v6033_v31  ;;  %7962 = vst [vmem:[#allocation150_spill] sm:$0xff] %v6035_v34  ;;  %v7998_v34 = vld [vmem:[#allocation9_spill] sm:$0xff] }
 0x161   : > { %1280 = vperm.xlu1 %5104, %v5496_v40   ;;  %1283 = vperm.xlu0 %5103, %v5493_v39  }
 0x163   : > { %v6039_v33 = vpop.permute.xlu1 %924  ;;  %v6041_v36 = vpop.permute.xlu0 %919 }
 0x164   : > { %7963 = vst [vmem:[#allocation151_spill] sm:$0xff] %v6039_v33  ;;  %7964 = vst [vmem:[#allocation152_spill] sm:$0xff] %v6041_v36  ;;  %v7996_v33 = vld [vmem:[#allocation42_spill] sm:$0xff] }
 0x165   : > { %1286 = vperm.xlu1 %5104, %v5504_v42   ;;  %1289 = vperm.xlu0 %5103, %v5501_v41  }
 0x167   : > { %v6045_v35 = vpop.permute.xlu1 %934  ;;  %v6047_v38 = vpop.permute.xlu0 %929 }
 0x168   : > { %7965 = vst [vmem:[#allocation153_spill] sm:$0xff] %v6045_v35  ;;  %7966 = vst [vmem:[#allocation154_spill] sm:$0xff] %v6047_v38 }
 0x169   : > { %1292 = vperm.xlu1 %5104, %v5512_v44   ;;  %1295 = vperm.xlu0 %5103, %v5509_v43   ;;  %v7807_v43 = vmov 2  }
 0x16b   : > { %v6051_v37 = vpop.permute.xlu1 %944  ;;  %v6053_v40 = vpop.permute.xlu0 %939 }
 0x16c   : > { %7967 = vst [vmem:[#allocation155_spill] sm:$0xff] %v6051_v37  ;;  %7968 = vst [vmem:[#allocation156_spill] sm:$0xff] %v6053_v40 }
 0x16d   : > { %1298 = vperm.xlu1 %5104, %v5518_v46   ;;  %1422 = vperm.xlu0 %5103, %v5549_v47  }
 0x16f   : > { %v6057_v39 = vpop.permute.xlu1 %954  ;;  %v6059_v42 = vpop.permute.xlu0 %949 }
 0x170   : > { %7969 = vst [vmem:[#allocation157_spill] sm:$0xff] %v6057_v39  ;;  %7970 = vst [vmem:[#allocation158_spill] sm:$0xff] %v6059_v42 }
 0x171   : > { %1426 = vperm.xlu1 %5104, %v5546_v45   ;;  %1434 = vperm.xlu0 %5103, %v5558_v50  }
 0x173   : > { %v6063_v41 = vpop.permute.xlu1 %964  ;;  %v6065_v44 = vpop.permute.xlu0 %959 }
 0x174   : > { %7971 = vst [vmem:[#allocation159_spill] sm:$0xff] %v6063_v41  ;;  %7972 = vst [vmem:[#allocation160_spill] sm:$0xff] %v6065_v44  ;;  %v7977_v44 = vmov 1  }
 0x175   : > { %5105 = vset.pattern.permute.xlu1 %v7807_v43  ;;  %1442 = vperm.xlu0 %5103, %v5570_v54  }
 0x176   : > { %1809 = vperm.xlu1 %5105, %v5352_v4  }
 0x177   : > { %v6070_v46 = vpop.permute.xlu1 %974  ;;  %v6072_v39 = vpop.permute.xlu0 %969 }
 0x178   : > { %7973 = vst [vmem:[#allocation161_spill] sm:$0xff] %v6070_v46  ;;  %7974 = vst [vmem:[#allocation162_spill] sm:$0xff] %v6072_v39  ;;  %v7981_v46 = vmov 2  }
 0x179   : > { %1450 = vperm.xlu0 %5103, %v5582_v58  }
 0x17a   : > { %2062 = vperm.xlu1 %5105, %v5549_v47  }
 0x17b   : > { %v6076_v42 = vpop.permute.xlu1 %984  ;;  %v6078_v41 = vpop.permute.xlu0 %979 }
 0x17c   : > { %7975 = vst [vmem:[#allocation163_spill] sm:$0xff] %v6076_v42  ;;  %7976 = vst [vmem:[#allocation164_spill] sm:$0xff] %v6078_v41  ;;  %v7983_v41 = vld [vmem:[#allocation18_spill] sm:$0xff] }
 0x17d   : > { %1458 = vperm.xlu0 %5103, %v5594_v62  }
 0x17e   : > { %5106 = vset.pattern.permute.xlu1 %v7977_v44 }
 0x17f   : > { %v6082_v43 = vpop.permute.xlu1 %994  ;;  %1430 = vperm.xlu1 %5106, %v5561_v51   ;;  %v6085_v4 = vpop.permute.xlu0 %989 }
 0x180   : > { %7978 = vst [vmem:[#allocation165_spill] sm:$0xff] %v6082_v43  ;;  %7979 = vst [vmem:[#allocation166_spill] sm:$0xff] %v6085_v4  ;;  %v7986_v43 = vld [vmem:[#allocation22_spill] sm:$0xff] }
 0x181   : > { %1466 = vperm.xlu0 %5103, %v5606_v60  }
 0x183   : > { %v6088_v39 = vpop.permute.xlu1 %1004  ;;  %5107 = vset.pattern.permute.xlu1 %v7981_v46  ;;  %v6091_v47 = vpop.permute.xlu0 %999 }
 0x184   : > { %7980 = vst [vmem:[#allocation167_spill] sm:$0xff] %v6088_v39  ;;  %7982 = vst [vmem:[#allocation168_spill] sm:$0xff] %v6091_v47  ;;  %1812 = vperm.xlu1 %5107, %v5341_v1   ;;  %v7989_v39 = vld [vmem:[#allocation26_spill] sm:$0xff] }
 0x185   : > { %1474 = vperm.xlu0 %5103, %v7983_v41  }
 0x187   : > { %v6095_v42 = vpop.permute.xlu1 %1014  ;;  %v6097_v40 = vpop.permute.xlu0 %1009 }
 0x188   : > { %7984 = vst [vmem:[#allocation18_spill] sm:$0xff] %v6095_v42  ;;  %7985 = vst [vmem:[#allocation169_spill] sm:$0xff] %v6097_v40  ;;  %1815 = vperm.xlu1 %5107, %v5349_v3   ;;  %v7992_v42 = vld [vmem:[#allocation6_spill] sm:$0xff] }
 0x189   : > { %1482 = vperm.xlu0 %5103, %v7986_v43   ;;  %v7993_v40 = vld [vmem:[#allocation30_spill] sm:$0xff] }
 0x18b   : > { %v6101_v4 = vpop.permute.xlu1 %1024  ;;  %v6103_v37 = vpop.permute.xlu0 %1019 }
 0x18c   : > { %7987 = vst [vmem:[#allocation22_spill] sm:$0xff] %v6101_v4  ;;  %7988 = vst [vmem:[#allocation170_spill] sm:$0xff] %v6103_v37  ;;  %2074 = vperm.xlu1 %5107, %v5558_v50   ;;  %v7994_v37 = vld [vmem:[#allocation34_spill] sm:$0xff] }
 0x18d   : > { %1490 = vperm.xlu0 %5103, %v7989_v39  }
 0x18f   : > { %v6107_v47 = vpop.permute.xlu1 %1034  ;;  %v6109_v1 = vpop.permute.xlu0 %1029 }
 0x190   : > { %7990 = vst [vmem:[#allocation26_spill] sm:$0xff] %v6107_v47  ;;  %7991 = vst [vmem:[#allocation171_spill] sm:$0xff] %v6109_v1  ;;  %5108 = vset.pattern.permute.xlu1 %v7977_v44  ;;  %v7995_v1 = vld [vmem:[#allocation38_spill] sm:$0xff] }
 0x191   : > { %1438 = vperm.xlu1 %5108, %v7992_v42   ;;  %1498 = vperm.xlu0 %5103, %v7993_v40  }
 0x194   : > { %v6114_v3 = vpop.permute.xlu1 %1169  ;;  %v6116_v35 = vpop.permute.xlu0 %1166 }
 0x195   : > { %5109 = vset.pattern.permute.xlu1 %v7981_v46  ;;  %1506 = vperm.xlu0 %5103, %v7994_v37  }
 0x196   : > { %1818 = vperm.xlu1 %5109, %v5360_v6   ;;  %v7997_v6 = vld [vmem:[#allocation46_spill] sm:$0xff] }
 0x198   : > { %v6121_v50 = vpop.permute.xlu1 %1172  ;;  %v6123_v47 = vpop.permute.xlu0 %1175 }
 0x199   : > { %1514 = vperm.xlu0 %5103, %v7995_v1  }
 0x19a   : > { %1821 = vperm.xlu1 %5109, %v5357_v5  }
 0x19c   : > { %v6127_v4 = vpop.permute.xlu1 %1178  ;;  %v6129_v38 = vpop.permute.xlu0 %1181 }
 0x19d   : > { %1522 = vperm.xlu0 %5103, %v7996_v33  }
 0x19e   : > { %2082 = vperm.xlu1 %5109, %v5570_v54  }
 0x1a0   : > { %v6133_v36 = vpop.permute.xlu1 %1184  ;;  %v6135_v31 = vpop.permute.xlu0 %1187 }
 0x1a1   : > { %1530 = vperm.xlu0 %5103, %v7997_v6  }
 0x1a2   : > { %5110 = vset.pattern.permute.xlu1 %v7977_v44 }
 0x1a3   : > { %1446 = vperm.xlu1 %5110, %v7998_v34  }
 0x1a4   : > { %v6140_v29 = vpop.permute.xlu1 %1190  ;;  %v6142_v5 = vpop.permute.xlu0 %1193 }
 0x1a5   : > { %1538 = vperm.xlu0 %5103, %v7999_v32  }
 0x1a7   : > { %5111 = vset.pattern.permute.xlu1 %v7981_v46 }
 0x1a8   : > { %1824 = vperm.xlu1 %5111, %v5368_v8   ;;  %v6147_v54 = vpop.permute.xlu1 %1196  ;;  %v6149_v27 = vpop.permute.xlu0 %1199  ;;  %v8002_v8 = vld [vmem:[#allocation62_spill] sm:$0xff] }
 0x1a9   : > { %1546 = vperm.xlu0 %5103, %v8000_v30  }
 0x1ac   : > { %1827 = vperm.xlu1 %5111, %v5365_v7   ;;  %v6153_v6 = vpop.permute.xlu1 %1202  ;;  %v6155_v25 = vpop.permute.xlu0 %1205  ;;  %v8005_v7 = vld [vmem:[#allocation12_spill] sm:$0xff] }
 0x1ad   : > { %1554 = vperm.xlu0 %5103, %v8001_v28  }
 0x1b0   : > { %2090 = vperm.xlu1 %5111, %v5582_v58   ;;  %v6159_v32 = vpop.permute.xlu1 %1208  ;;  %v6161_v23 = vpop.permute.xlu0 %1211  ;;  %v8009_v58 = vld [vmem:[#allocation70_spill] sm:$0xff] }
 0x1b1   : > { %1562 = vperm.xlu0 %5103, %v8002_v8  }
 0x1b4   : > { %5112 = vset.pattern.permute.xlu1 %v7977_v44  ;;  %v6165_v26 = vpop.permute.xlu1 %1214  ;;  %v6167_v30 = vpop.permute.xlu0 %1217 }
 0x1b5   : > { %8003 = vst [vmem:[#allocation6_spill] sm:$0xff] %v6165_v26  ;;  %8004 = vst [vmem:[#allocation30_spill] sm:$0xff] %v6167_v30  ;;  %1454 = vperm.xlu1 %5112, %v8005_v7   ;;  %1570 = vperm.xlu0 %5103, %v8006_v21  }
 0x1b8   : > { %v6171_v24 = vpop.permute.xlu1 %1220  ;;  %v6173_v28 = vpop.permute.xlu0 %1223 }
 0x1b9   : > { %8007 = vst [vmem:[#allocation34_spill] sm:$0xff] %v6171_v24  ;;  %8008 = vst [vmem:[#allocation38_spill] sm:$0xff] %v6173_v28  ;;  %5113 = vset.pattern.permute.xlu1 %v7981_v46  ;;  %1578 = vperm.xlu0 %5103, %v8009_v58   ;;  %v5179_v28 = vld [vmem:[%s5338_s11 + $0xa8] sm:$0xff] }
 0x1ba   : > { %1830 = vperm.xlu1 %5113, %v5376_v10   ;;  %v8018_v10 = vld [vmem:[#allocation83_spill] sm:$0xff] }
 0x1bc   : > { %v6178_v8 = vpop.permute.xlu1 %1226  ;;  %v6180_v19 = vpop.permute.xlu0 %1229 }
 0x1bd   : > { %8010 = vst [vmem:[#allocation42_spill] sm:$0xff] %v6178_v8  ;;  %8011 = vst [vmem:[#allocation46_spill] sm:$0xff] %v6180_v19  ;;  %1586 = vperm.xlu0 %5103, %v8012_v22  }
 0x1be   : > { %1833 = vperm.xlu1 %5113, %v5373_v9  }
 0x1c0   : > { %v6184_v17 = vpop.permute.xlu1 %1232  ;;  %v6186_v21 = vpop.permute.xlu0 %1235 }
 0x1c1   : > { %8013 = vst [vmem:[#allocation9_spill] sm:$0xff] %v6184_v17  ;;  %8014 = vst [vmem:[#allocation50_spill] sm:$0xff] %v6186_v21  ;;  %1594 = vperm.xlu0 %5103, %v8015_v20   ;;  %v8022_v17 = vld [vmem:[#allocation87_spill] sm:$0xff] }
 0x1c2   : > { %2098 = vperm.xlu1 %5113, %v5594_v62  }
 0x1c4   : > { %v6190_v15 = vpop.permute.xlu1 %1238  ;;  %v6192_v58 = vpop.permute.xlu0 %1241 }
 0x1c5   : > { %8016 = vst [vmem:[#allocation54_spill] sm:$0xff] %v6190_v15  ;;  %8017 = vst [vmem:[#allocation58_spill] sm:$0xff] %v6192_v58  ;;  %1598 = vperm.xlu0 %5103, %v8018_v10   ;;  %v8025_v58 = vld [vmem:[#allocation91_spill] sm:$0xff] }
 0x1c6   : > { %5114 = vset.pattern.permute.xlu1 %v7977_v44 }
 0x1c7   : > { %1462 = vperm.xlu1 %5114, %v8019_v18  }
 0x1c8   : > { %v6197_v22 = vpop.permute.xlu1 %1244  ;;  %v6199_v9 = vpop.permute.xlu0 %1247 }
 0x1c9   : > { %8020 = vst [vmem:[#allocation62_spill] sm:$0xff] %v6197_v22  ;;  %8021 = vst [vmem:[#allocation12_spill] sm:$0xff] %v6199_v9  ;;  %1606 = vperm.xlu0 %5103, %v8022_v17   ;;  %v8028_v22 = vld [vmem:[#allocation95_spill] sm:$0xff]  ;;  %v2445_v17 = vld [vmem:[%s7722_s2] sm:$0xff] }
 0x1cb   : > { %5115 = vset.pattern.permute.xlu1 %v7981_v46 }
 0x1cc   : > { %1836 = vperm.xlu1 %5115, %v5384_v12   ;;  %v6204_v62 = vpop.permute.xlu1 %1250  ;;  %v6206_v20 = vpop.permute.xlu0 %1253  ;;  %v2446_v12 = vld [vmem:[%s7722_s2 + $0x8] sm:$0xff] }
 0x1cd   : > { %8023 = vst [vmem:[#allocation66_spill] sm:$0xff] %v6204_v62  ;;  %8024 = vst [vmem:[#allocation70_spill] sm:$0xff] %v6206_v20  ;;  %1614 = vperm.xlu0 %5103, %v8025_v58   ;;  %v5018_v62 = vpack.c.bf16 %v2446_v12, %v2445_v17  ;;  %v2451_v20 = vld [vmem:[%s7722_s2 + $0x30] sm:$0xff] }
 0x1cf   : > { %5019 = vmatprep.subr.bf16.mxu0 %v5018_v62 }
 0x1d0   : > { %1839 = vperm.xlu1 %5115, %v5381_v11   ;;  %v6210_v10 = vpop.permute.xlu1 %1256  ;;  %v6212_v15 = vpop.permute.xlu0 %1259  ;;  %5021 = vmatpush3.bf16.msra.mxu0 %v5018_v62  ;;  %v2449_v62 = vld [vmem:[%s7722_s2 + $0x20] sm:$0xff] }
 0x1d1   : > { %8026 = vst [vmem:[#allocation74_spill] sm:$0xff] %v6210_v10  ;;  %8027 = vst [vmem:[#allocation78_spill] sm:$0xff] %v6212_v15  ;;  %1622 = vperm.xlu0 %5103, %v8028_v22   ;;  %v8031_v10 = vld [vmem:[#allocation99_spill] sm:$0xff]  ;;  %v2447_v22 = vld [vmem:[%s7722_s2 + $0x10] sm:$0xff] }
 0x1d2   : > { %v2448_v15 = vld [vmem:[%s7722_s2 + $0x18] sm:$0xff] }
 0x1d3   : > { %v5022_v17 = vpack.c.bf16 %v2448_v15, %v2447_v22 }
 0x1d4   : > { %2106 = vperm.xlu1 %5115, %v5606_v60   ;;  %v6222_v58 = vpop.permute.xlu1 %1262  ;;  %v6224_v11 = vpop.permute.xlu0 %1265 }
 0x1d5   : > { %8029 = vst [vmem:[#allocation83_spill] sm:$0xff] %v6222_v58  ;;  %8030 = vst [vmem:[#allocation15_spill] sm:$0xff] %v6224_v11  ;;  %1630 = vperm.xlu0 %5103, %v8031_v10   ;;  %v8034_v11 = vld [vmem:[#allocation19_spill] sm:$0xff]  ;;  %5023 = vmatprep.subr.bf16.mxu0 %v5022_v17  ;;  %v2450_v58 = vld [vmem:[%s7722_s2 + $0x28] sm:$0xff] }
 0x1d6   : > { %v8035_v10 = vld [vmem:[#allocation103_spill] sm:$0xff]  ;;  %5025 = vmatpush3.bf16.msra.mxu0 %v5022_v17  ;;  %v5026_v15 = vpack.c.bf16 %v2450_v58, %v2449_v62 }
 0x1d7   : > { %v2452_v58 = vld [vmem:[%s7722_s2 + $0x38] sm:$0xff] }
 0x1d8   : > { %5116 = vset.pattern.permute.xlu1 %v7977_v44  ;;  %v6234_v60 = vpop.permute.xlu1 %1268  ;;  %v6236_v12 = vpop.permute.xlu0 %1271  ;;  %5027 = vmatprep.subr.bf16.mxu0 %v5026_v15  ;;  %v5030_v17 = vpack.c.bf16 %v2452_v58, %v2451_v20 }
 0x1d9   : > { %8032 = vst [vmem:[#allocation87_spill] sm:$0xff] %v6234_v60  ;;  %8033 = vst [vmem:[#allocation91_spill] sm:$0xff] %v6236_v12  ;;  %1470 = vperm.xlu1 %5116, %v8034_v11   ;;  %1638 = vperm.xlu0 %5103, %v8035_v10   ;;  %v8038_v12 = vld [vmem:[#allocation106_spill] sm:$0xff]  ;;  %v5169_v10 = vld [vmem:[%s5338_s11 + $0x60] sm:$0xff] }
 0x1da   : > { %5029 = vmatpush3.bf16.msra.mxu0 %v5026_v15 }
 0x1db   : > { %5031 = vmatprep.subr.bf16.mxu0 %v5030_v17 }
 0x1dc   : > { %v6246_v22 = vpop.permute.xlu1 %1274  ;;  %v6248_v60 = vpop.permute.xlu0 %1277 }
 0x1dd   : > { %8036 = vst [vmem:[#allocation95_spill] sm:$0xff] %v6246_v22  ;;  %8037 = vst [vmem:[#allocation99_spill] sm:$0xff] %v6248_v60  ;;  %5117 = vset.pattern.permute.xlu1 %v7981_v46  ;;  %1646 = vperm.xlu0 %5103, %v8038_v12   ;;  %v5170_v12 = vld [vmem:[%s5338_s11 + $0x68] sm:$0xff] }
 0x1de   : > { %1842 = vperm.xlu1 %5117, %v5169_v10   ;;  %v2453_v10 = vld [vmem:[%s7722_s2 + $0x40] sm:$0xff]  ;;  %v2454_v22 = vld [vmem:[%s7722_s2 + $0x48] sm:$0xff]  ;;  %5033 = vmatpush3.bf16.msra.mxu0 %v5030_v17 }
 0x1df   : > { %v5034_v15 = vpack.c.bf16 %v2454_v22, %v2453_v10 }
 0x1e0   : > { %v6259_v62 = vpop.permute.xlu1 %1280  ;;  %v6261_v60 = vpop.permute.xlu0 %1283 }
 0x1e1   : > { %8039 = vst [vmem:[#allocation19_spill] sm:$0xff] %v6259_v62  ;;  %8040 = vst [vmem:[#allocation103_spill] sm:$0xff] %v6261_v60  ;;  %1654 = vperm.xlu0 %5103, %v5892_v48   ;;  %5035 = vmatprep.subr.bf16.mxu0 %v5034_v15  ;;  %v2455_v48 = vld [vmem:[%s7722_s2 + $0x50] sm:$0xff] }
 0x1e2   : > { %1845 = vperm.xlu1 %5117, %v5170_v12   ;;  %v2456_v12 = vld [vmem:[%s7722_s2 + $0x58] sm:$0xff]  ;;  %5037 = vmatpush3.bf16.msra.mxu0 %v5034_v15 }
 0x1e3   : > { %v5038_v22 = vpack.c.bf16 %v2456_v12, %v2455_v48  ;;  %v8045_v15 = vld [vmem:[#allocation23_spill] sm:$0xff] }
 0x1e4   : > { %v6271_v20 = vpop.permute.xlu1 %1286  ;;  %v6273_v58 = vpop.permute.xlu0 %1289 }
 0x1e5   : > { %8041 = vst [vmem:[#allocation106_spill] sm:$0xff] %v6271_v20  ;;  %8042 = vst [vmem:[#allocation172_spill] sm:$0xff] %v6273_v58  ;;  %1662 = vperm.xlu0 %5103, %v5901_v57   ;;  %5039 = vmatprep.subr.bf16.mxu0 %v5038_v22  ;;  %v2457_v57 = vld [vmem:[%s7722_s2 + $0x60] sm:$0xff]  ;;  %v2460_v58 = vld [vmem:[%s7722_s2 + $0x78] sm:$0xff] }
 0x1e6   : > { %2114 = vperm.xlu1 %5117, %v7983_v41   ;;  %v2458_v41 = vld [vmem:[%s7722_s2 + $0x68] sm:$0xff]  ;;  %5041 = vmatpush3.bf16.msra.mxu0 %v5038_v22 }
 0x1e7   : > { %v5042_v48 = vpack.c.bf16 %v2458_v41, %v2457_v57  ;;  %v5172_v57 = vld [vmem:[%s5338_s11 + $0x70] sm:$0xff] }
 0x1e8   : > { %v6283_v17 = vpop.permute.xlu1 %1292  ;;  %v6285_v10 = vpop.permute.xlu0 %1295 }
 0x1e9   : > { %8043 = vst [vmem:[#allocation173_spill] sm:$0xff] %v6283_v17  ;;  %8044 = vst [vmem:[#allocation174_spill] sm:$0xff] %v6285_v10  ;;  %1670 = vperm.xlu0 %5103, %v5910_v53   ;;  %5043 = vmatprep.subr.bf16.mxu0 %v5042_v48  ;;  %v5171_v53 = vld [vmem:[%s5338_s11] sm:$0xff]  ;;  %v2459_v17 = vld [vmem:[%s7722_s2 + $0x70] sm:$0xff] }
 0x1ea   : > { %5118 = vset.pattern.permute.xlu1 %v7977_v44  ;;  %5045 = vmatpush3.bf16.msra.mxu0 %v5042_v48  ;;  %v5046_v22 = vpack.c.bf16 %v2460_v58, %v2459_v17  ;;  %v8047_v48 = vld [vmem:[#allocation27_spill] sm:$0xff] }
 0x1eb   : > { %1478 = vperm.xlu1 %5118, %v8045_v15  }
 0x1ec   : > { %v6296_v12 = vpop.permute.xlu1 %1298  ;;  %v6298_v10 = vpop.permute.xlu0 %1422  ;;  %5047 = vmatprep.subr.bf16.mxu0 %v5046_v22 }
 0x1ed   : > { %8046 = vst [vmem:[#allocation23_spill] sm:$0xff] %v6296_v12  ;;  %5167 = vset.pattern.permute.xlu0 %v7981_v46 }
 0x1ee   : > { %1806 = vperm.xlu0 %5167, %v5171_v53   ;;  %5049 = vmatpush3.bf16.msra.mxu0 %v5046_v22  ;;  %v5173_v53 = vld [vmem:[%s5338_s11 + $0x78] sm:$0xff] }
 0x1ef   : > { %5119 = vset.pattern.permute.xlu1 %v7981_v46 }
 0x1f0   : > { %1848 = vperm.xlu1 %5119, %v5172_v57   ;;  %v6310_v41 = vpop.permute.xlu1 %1426  ;;  %v6312_v12 = vpop.permute.xlu0 %1434 }
 0x1f2   : > { %2066 = vperm.xlu0 %5167, %v5546_v45  }
 0x1f4   : > { %1851 = vperm.xlu1 %5119, %v5173_v53   ;;  %v6316_v20 = vpop.permute.xlu0 %1442  ;;  %v5175_v53 = vld [vmem:[%s5338_s11 + $0x88] sm:$0xff] }
 0x1f5   : > { %v6318_v60 = vpop.permute.xlu1 %1809 }
 0x1f6   : > { %2070 = vperm.xlu0 %5167, %v5561_v51  }
 0x1f8   : > { %2122 = vperm.xlu1 %5119, %v7986_v43   ;;  %v6322_v58 = vpop.permute.xlu0 %1450  ;;  %v5174_v43 = vld [vmem:[%s5338_s11 + $0x80] sm:$0xff] }
 0x1f9   : > { %v6324_v17 = vpop.permute.xlu1 %2062 }
 0x1fa   : > { %2078 = vperm.xlu0 %5167, %v7992_v42  }
 0x1fc   : > { %5120 = vset.pattern.permute.xlu1 %v7977_v44  ;;  %v6328_v45 = vpop.permute.xlu0 %1458 }
 0x1fd   : > { %1486 = vperm.xlu1 %5120, %v8047_v48  }
 0x1fe   : > { %v6331_v22 = vpop.permute.xlu1 %1430  ;;  %2086 = vperm.xlu0 %5167, %v7998_v34  }
 0x200   : > { %v6334_v51 = vpop.permute.xlu0 %1466 }
 0x201   : > { %5121 = vset.pattern.permute.xlu1 %v7981_v46 }
 0x202   : > { %1854 = vperm.xlu1 %5121, %v5174_v43   ;;  %2094 = vperm.xlu0 %5167, %v8005_v7  }
 0x203   : > { %v6339_v57 = vpop.permute.xlu1 %1812 }
 0x204   : > { %v6341_v42 = vpop.permute.xlu0 %1474 }
 0x206   : > { %1857 = vperm.xlu1 %5121, %v5175_v53   ;;  %2102 = vperm.xlu0 %5167, %v8019_v18   ;;  %v8050_v53 = vld [vmem:[#allocation31_spill] sm:$0xff] }
 0x207   : > { %v6345_v62 = vpop.permute.xlu1 %1815 }
 0x208   : > { %v6347_v34 = vpop.permute.xlu0 %1482 }
 0x209   : > { %8048 = vst [vmem:[#allocation27_spill] sm:$0xff] %v6347_v34 }
 0x20a   : > { %2130 = vperm.xlu1 %5121, %v7989_v39   ;;  %2110 = vperm.xlu0 %5167, %v8034_v11   ;;  %v5176_v39 = vld [vmem:[%s5338_s11 + $0x90] sm:$0xff] }
 0x20b   : > { %v6351_v43 = vpop.permute.xlu1 %2074 }
 0x20c   : > { %v6353_v7 = vpop.permute.xlu0 %1490 }
 0x20d   : > { %8049 = vst [vmem:[#allocation175_spill] sm:$0xff] %v6353_v7  ;;  %v8080_v7 = vld [vmem:[#allocation82_spill] sm:$0xff] }
 0x20e   : > { %5122 = vset.pattern.permute.xlu1 %v7977_v44  ;;  %2118 = vperm.xlu0 %5167, %v8045_v15  }
 0x20f   : > { %1494 = vperm.xlu1 %5122, %v8050_v53  }
 0x210   : > { %v6358_v18 = vpop.permute.xlu1 %1438  ;;  %v6360_v9 = vpop.permute.xlu0 %1498 }
 0x211   : > { %8051 = vst [vmem:[#allocation31_spill] sm:$0xff] %v6360_v9 }
 0x212   : > { %2126 = vperm.xlu0 %5167, %v8047_v48  }
 0x213   : > { %5123 = vset.pattern.permute.xlu1 %v7981_v46 }
 0x214   : > { %1860 = vperm.xlu1 %5123, %v5176_v39   ;;  %v6365_v11 = vpop.permute.xlu0 %1506 }
 0x215   : > { %8052 = vst [vmem:[#allocation176_spill] sm:$0xff] %v6365_v11  ;;  %v6367_v21 = vpop.permute.xlu1 %1818  ;;  %v8056_v11 = vld [vmem:[#allocation39_spill] sm:$0xff] }
 0x216   : > { %2134 = vperm.xlu0 %5167, %v8050_v53  }
 0x218   : > { %1863 = vperm.xlu1 %5123, %v5177_v13   ;;  %v6371_v15 = vpop.permute.xlu0 %1514 }
 0x219   : > { %8053 = vst [vmem:[#allocation177_spill] sm:$0xff] %v6371_v15  ;;  %v6373_v19 = vpop.permute.xlu1 %1821  ;;  %v8058_v15 = vld [vmem:[#allocation43_spill] sm:$0xff] }
 0x21a   : > { %2142 = vperm.xlu0 %5167, %v8054_v16  }
 0x21c   : > { %2138 = vperm.xlu1 %5123, %v7993_v40   ;;  %v6377_v48 = vpop.permute.xlu0 %1522  ;;  %v5178_v40 = vld [vmem:[%s5338_s11 + $0xa0] sm:$0xff] }
 0x21d   : > { %8055 = vst [vmem:[#allocation35_spill] sm:$0xff] %v6377_v48  ;;  %v6379_v39 = vpop.permute.xlu1 %2082  ;;  %v8060_v48 = vld [vmem:[#allocation47_spill] sm:$0xff] }
 0x21e   : > { %2150 = vperm.xlu0 %5167, %v8056_v11  }
 0x220   : > { %5124 = vset.pattern.permute.xlu1 %v7977_v44  ;;  %v6383_v53 = vpop.permute.xlu0 %1530 }
 0x221   : > { %8057 = vst [vmem:[#allocation39_spill] sm:$0xff] %v6383_v53  ;;  %1502 = vperm.xlu1 %5124, %v8054_v16   ;;  %v8062_v16 = vld [vmem:[#allocation51_spill] sm:$0xff] }
 0x222   : > { %v6386_v13 = vpop.permute.xlu1 %1446  ;;  %2158 = vperm.xlu0 %5167, %v8058_v15  }
 0x224   : > { %v6389_v8 = vpop.permute.xlu0 %1538 }
 0x225   : > { %8059 = vst [vmem:[#allocation43_spill] sm:$0xff] %v6389_v8  ;;  %5125 = vset.pattern.permute.xlu1 %v7981_v46  ;;  %v8064_v8 = vld [vmem:[#allocation55_spill] sm:$0xff] }
 0x226   : > { %1866 = vperm.xlu1 %5125, %v5178_v40   ;;  %2166 = vperm.xlu0 %5167, %v8060_v48  }
 0x227   : > { %v6394_v63 = vpop.permute.xlu1 %1824 }
 0x228   : > { %v6396_v9 = vpop.permute.xlu0 %1546 }
 0x229   : > { %8061 = vst [vmem:[#allocation47_spill] sm:$0xff] %v6396_v9  ;;  %v8066_v9 = vld [vmem:[#allocation59_spill] sm:$0xff] }
 0x22a   : > { %1869 = vperm.xlu1 %5125, %v5179_v28   ;;  %2174 = vperm.xlu0 %5167, %v8062_v16  }
 0x22b   : > { %v6400_v53 = vpop.permute.xlu1 %1827 }
 0x22c   : > { %v6402_v14 = vpop.permute.xlu0 %1554 }
 0x22d   : > { %8063 = vst [vmem:[#allocation51_spill] sm:$0xff] %v6402_v14  ;;  %v8068_v14 = vld [vmem:[#allocation63_spill] sm:$0xff] }
 0x22e   : > { %2146 = vperm.xlu1 %5125, %v7994_v37   ;;  %2182 = vperm.xlu0 %5167, %v8064_v8   ;;  %v5180_v37 = vld [vmem:[%s5338_s11 + $0xb0] sm:$0xff] }
 0x22f   : > { %v6406_v40 = vpop.permute.xlu1 %2090 }
 0x230   : > { %v6408_v24 = vpop.permute.xlu0 %1562 }
 0x231   : > { %8065 = vst [vmem:[#allocation55_spill] sm:$0xff] %v6408_v24  ;;  %v8070_v24 = vld [vmem:[#allocation67_spill] sm:$0xff] }
 0x232   : > { %5126 = vset.pattern.permute.xlu1 %v7977_v44  ;;  %2190 = vperm.xlu0 %5167, %v8066_v9  }
 0x233   : > { %1510 = vperm.xlu1 %5126, %v8056_v11  }
 0x234   : > { %v6413_v28 = vpop.permute.xlu1 %1454  ;;  %v6415_v16 = vpop.permute.xlu0 %1570 }
 0x235   : > { %8067 = vst [vmem:[#allocation59_spill] sm:$0xff] %v6415_v16  ;;  %v8072_v16 = vld [vmem:[#allocation71_spill] sm:$0xff] }
 0x236   : > { %2198 = vperm.xlu0 %5167, %v8068_v14  }
 0x237   : > { %5127 = vset.pattern.permute.xlu1 %v7981_v46 }
 0x238   : > { %1872 = vperm.xlu1 %5127, %v5180_v37   ;;  %v6420_v8 = vpop.permute.xlu0 %1578 }
 0x239   : > { %8069 = vst [vmem:[#allocation63_spill] sm:$0xff] %v6420_v8  ;;  %v6422_v61 = vpop.permute.xlu1 %1830  ;;  %v8074_v8 = vld [vmem:[#allocation75_spill] sm:$0xff] }
 0x23a   : > { %2206 = vperm.xlu0 %5167, %v8070_v24  }
 0x23c   : > { %1875 = vperm.xlu1 %5127, %v5181_v55   ;;  %v6426_v9 = vpop.permute.xlu0 %1586 }
 0x23d   : > { %8071 = vst [vmem:[#allocation67_spill] sm:$0xff] %v6426_v9  ;;  %v6428_v11 = vpop.permute.xlu1 %1833  ;;  %v8076_v9 = vld [vmem:[#allocation79_spill] sm:$0xff] }
 0x23e   : > { %2214 = vperm.xlu0 %5167, %v8072_v16  }
 0x240   : > { %2154 = vperm.xlu1 %5127, %v7995_v1   ;;  %v6432_v14 = vpop.permute.xlu0 %1594  ;;  %v5182_v1 = vld [vmem:[%s5338_s11 + $0xc0] sm:$0xff] }
 0x241   : > { %8073 = vst [vmem:[#allocation71_spill] sm:$0xff] %v6432_v14  ;;  %v6434_v37 = vpop.permute.xlu1 %2098  ;;  %v6449_v14 = vld [vmem:[%s5338_s11 + $0x168] sm:$0xff] }
 0x242   : > { %2222 = vperm.xlu0 %5167, %v8074_v8   ;;  %8078 = vst [vmem:[#allocation178_spill] sm:$0xff] %v6449_v14 }
 0x244   : > { %5128 = vset.pattern.permute.xlu1 %v7977_v44  ;;  %v6438_v24 = vpop.permute.xlu0 %1598 }
 0x245   : > { %8075 = vst [vmem:[#allocation75_spill] sm:$0xff] %v6438_v24  ;;  %1518 = vperm.xlu1 %5128, %v8058_v15   ;;  %v5184_v15 = vld [vmem:[%s5338_s11 + $0xc8] sm:$0xff] }
 0x246   : > { %v6441_v55 = vpop.permute.xlu1 %1462  ;;  %2230 = vperm.xlu0 %5167, %v8076_v9  }
 0x248   : > { %v6444_v16 = vpop.permute.xlu0 %1606 }
 0x249   : > { %8077 = vst [vmem:[#allocation79_spill] sm:$0xff] %v6444_v16  ;;  %5129 = vset.pattern.permute.xlu1 %v7981_v46 }
 0x24a   : > { %1878 = vperm.xlu1 %5129, %v5182_v1   ;;  %1941 = vperm.xlu0 %5167, %v6449_v14   ;;  %v6464_v1 = vld [vmem:[%s5338_s11 + $0x178] sm:$0xff] }
 0x24b   : > { %v6452_v8 = vpop.permute.xlu1 %1836  ;;  %8082 = vst [vmem:[#allocation180_spill] sm:$0xff] %v6464_v1 }
 0x24c   : > { %v6454_v24 = vpop.permute.xlu0 %1614 }
 0x24d   : > { %8079 = vst [vmem:[#allocation179_spill] sm:$0xff] %v6454_v24 }
 0x24e   : > { %1881 = vperm.xlu1 %5129, %v5184_v15   ;;  %2242 = vperm.xlu0 %5167, %v8080_v7   ;;  %v8084_v15 = vld [vmem:[#allocation86_spill] sm:$0xff] }
 0x24f   : > { %v6458_v9 = vpop.permute.xlu1 %1839 }
 0x250   : > { %v6460_v16 = vpop.permute.xlu0 %1622 }
 0x251   : > { %8081 = vst [vmem:[#allocation82_spill] sm:$0xff] %v6460_v16 }
 0x252   : > { %2162 = vperm.xlu1 %5129, %v7996_v33   ;;  %1947 = vperm.xlu0 %5167, %v6464_v1   ;;  %v6479_v33 = vld [vmem:[%s5338_s11 + $0x188] sm:$0xff]  ;;  %v5187_v1 = vld [vmem:[%s5338_s11 + $0xd0] sm:$0xff] }
 0x253   : > { %v6467_v14 = vpop.permute.xlu1 %2106  ;;  %8086 = vst [vmem:[#allocation182_spill] sm:$0xff] %v6479_v33 }
 0x254   : > { %v6469_v24 = vpop.permute.xlu0 %1630 }
 0x255   : > { %8083 = vst [vmem:[#allocation181_spill] sm:$0xff] %v6469_v24 }
 0x256   : > { %5130 = vset.pattern.permute.xlu1 %v7977_v44  ;;  %2250 = vperm.xlu0 %5167, %v8084_v15   ;;  %v8088_v15 = vld [vmem:[#allocation90_spill] sm:$0xff] }
 0x257   : > { %1526 = vperm.xlu1 %5130, %v8060_v48   ;;  %v5188_v48 = vld [vmem:[%s5338_s11 + $0xd8] sm:$0xff] }
 0x258   : > { %v6474_v7 = vpop.permute.xlu1 %1470  ;;  %v6476_v16 = vpop.permute.xlu0 %1638 }
 0x259   : > { %8085 = vst [vmem:[#allocation86_spill] sm:$0xff] %v6476_v16 }
 0x25a   : > { %1953 = vperm.xlu0 %5167, %v6479_v33   ;;  %v6495_v33 = vld [vmem:[%s5338_s11 + $0x198] sm:$0xff] }
 0x25b   : > { %5131 = vset.pattern.permute.xlu1 %v7981_v46  ;;  %8090 = vst [vmem:[#allocation184_spill] sm:$0xff] %v6495_v33 }
 0x25c   : > { %1884 = vperm.xlu1 %5131, %v5187_v1   ;;  %v6484_v24 = vpop.permute.xlu0 %1646  ;;  %v5190_v1 = vld [vmem:[%s5543_s14 + $0xd8] sm:$0xff] }
 0x25d   : > { %8087 = vst [vmem:[#allocation183_spill] sm:$0xff] %v6484_v24  ;;  %v6486_v26 = vpop.permute.xlu1 %1842 }
 0x25e   : > { %2258 = vperm.xlu0 %5167, %v8088_v15   ;;  %v6503_v15 = vand.u32 127, %v459_v2 }
 0x260   : > { %1887 = vperm.xlu1 %5131, %v5188_v48   ;;  %v6490_v30 = vpop.permute.xlu0 %1654  ;;  %vm1357_vm0 = vcmp.eq.s32.totalorder %v6503_v15, %v6116_v35  ;;  %vm1358_vm3 = vcmp.eq.s32.totalorder %v6503_v15, %v6114_v3  ;;  %vm1360_vm5 = vcmp.eq.s32.totalorder %v6503_v15, %v6123_v47  ;;  %vm1359_vm6 = vcmp.eq.s32.totalorder %v6503_v15, %v6121_v50  ;;  %v8099_v47 = vld [vmem:[#allocation4_spill] sm:$0xff] }
 0x261   : > { %8089 = vst [vmem:[#allocation90_spill] sm:$0xff] %v6490_v30  ;;  %v6492_v16 = vpop.permute.xlu1 %1845  ;;  %v5191_v30 = vld [vmem:[%s5543_s14 + $0xe0] sm:$0xff]  ;;  %v1677_v2 = vsel %vm1357_vm0, %v6298_v10, 0.0  ;;  %v8097_v10 = vld [vmem:[#allocation98_spill] sm:$0xff]  ;;  %vm1998_vm7 = vcmp.eq.s32.totalorder %v6503_v15, %v6318_v60  ;;  %vm656_vm9 = vcmp.eq.s32.totalorder %v6503_v15, %v8099_v47  ;;  %v1680_v50 = vsel %vm1360_vm5, %v6312_v12, 0.0 }
 0x262   : > { %1959 = vperm.xlu0 %5167, %v6495_v33   ;;  %v8094_v33 = vld [vmem:[#allocation3_spill] sm:$0xff]  ;;  %vm1362_vm11 = vcmp.eq.s32.totalorder %v6503_v15, %v6129_v38  ;;  %vm2000_vm12 = vcmp.eq.s32.totalorder %v6503_v15, %v6345_v62  ;;  %vm1361_vm13 = vcmp.eq.s32.totalorder %v6503_v15, %v6127_v4  ;;  %vm1999_vm14 = vcmp.eq.s32.totalorder %v6503_v15, %v6339_v57  ;;  %v8104_v4 = vld [vmem:[#allocation116_spill] sm:$0xff]  ;;  %v8105_v47 = vld [vmem:[#allocation102_spill] sm:$0xff] }
 0x263   : > { %vm653_vm1 = vcmp.eq.s32.totalorder %v6503_v15, %v8094_v33  ;;  %v5193_v33 = vld [vmem:[%s5338_s11 + $0xe0] sm:$0xff]  ;;  %v8103_v62 = vld [vmem:[#allocation11_spill] sm:$0xff]  ;;  %v1682_v57 = vsel %vm1362_vm11, %v6316_v20, 0.0 }
 0x264   : > { %2170 = vperm.xlu1 %5131, %v5190_v1   ;;  %v6499_v24 = vpop.permute.xlu0 %1662  ;;  %v1037_v35 = vsel %vm653_vm1, %v5919_v59, 0.0  ;;  %vm659_vm0 = vcmp.eq.s32.totalorder %v6503_v15, %v8103_v62  ;;  %vm1364_vm1 = vcmp.eq.s32.totalorder %v6503_v15, %v6135_v31 }
 0x265   : > { %8091 = vst [vmem:[#allocation185_spill] sm:$0xff] %v6499_v24  ;;  %v6501_v34 = vpop.permute.xlu1 %2114  ;;  %v5192_v24 = vld [vmem:[%s5338_s11 + $0x1a8] sm:$0xff] }
 0x266   : > { %2266 = vperm.xlu0 %5167, %v8092_v0   ;;  %v8096_v0 = vld [vmem:[#allocation5_spill] sm:$0xff] }
 0x267   : > { %vm654_vm2 = vcmp.eq.s32.totalorder %v6503_v15, %v8096_v0 }
 0x268   : > { %5132 = vset.pattern.permute.xlu1 %v7977_v44  ;;  %v6509_v48 = vpop.permute.xlu0 %1670  ;;  %v1038_v0 = vsel %vm654_vm2, %v5917_v49, 0.0  ;;  %v5194_v49 = vld [vmem:[%s5338_s11 + $0xe8] sm:$0xff]  ;;  %vm2002_vm2 = vcmp.eq.s32.totalorder %v6503_v15, %v6373_v19 }
 0x269   : > { %8093 = vst [vmem:[#allocation94_spill] sm:$0xff] %v6509_v48  ;;  %1534 = vperm.xlu1 %5132, %v5191_v30   ;;  %v1678_v48 = vsel %vm1358_vm3, %v6310_v41, 0.0  ;;  %vm1363_vm3 = vcmp.eq.s32.totalorder %v6503_v15, %v6133_v36  ;;  %v2322_v20 = vsel %vm2002_vm2, %v6379_v39, 0.0  ;;  %v8108_v36 = vld [vmem:[#allocation14_spill] sm:$0xff] }
 0x26a   : > { %v6514_v1 = vpop.permute.xlu1 %1478  ;;  %1965 = vperm.xlu0 %5167, %v5192_v24   ;;  %v1741_v24 = vadd.f32 %v1677_v2, %v1037_v35  ;;  %v1742_v41 = vadd.f32 %v1678_v48, %v1038_v0  ;;  %v8098_v35 = vld [vmem:[#allocation2_spill] sm:$0xff]  ;;  %v2320_v0 = vsel %vm2000_vm12, %v6351_v43, 0.0 }
 0x26b   : > { %8095 = vst [vmem:[#allocation3_spill] sm:$0xff] %v6514_v1  ;;  %vm655_vm8 = vcmp.eq.s32.totalorder %v6503_v15, %v8098_v35  ;;  %v8109_v39 = vld [vmem:[#allocation118_spill] sm:$0xff] }
 0x26d   : > { %5133 = vset.pattern.permute.xlu1 %v7981_v46  ;;  %v1807_v30 = vpop.permute.xlu0 %1806 }
 0x26e   : > { %vm1997_vm4 = vcmp.eq.s32.totalorder %v6503_v15, %v1807_v30  ;;  %1890 = vperm.xlu1 %5133, %v5193_v33   ;;  %2274 = vperm.xlu0 %5167, %v8097_v10   ;;  %v8100_v33 = vld [vmem:[#allocation8_spill] sm:$0xff]  ;;  %v8101_v10 = vld [vmem:[#allocation115_spill] sm:$0xff] }
 0x26f   : > { %v6528_v1 = vpop.permute.xlu1 %1848  ;;  %v2317_v59 = vsel %vm1997_vm4, %v6324_v17, 0.0  ;;  %v1679_v17 = vsel %vm1359_vm6, %v6331_v22, 0.0  ;;  %vm657_vm10 = vcmp.eq.s32.totalorder %v6503_v15, %v8100_v33  ;;  %v1040_v22 = vsel %vm656_vm9, %v5925_v52, 0.0  ;;  %v8102_v52 = vld [vmem:[#allocation7_spill] sm:$0xff] }
 0x270   : > { %v2381_v3 = vadd.f32 %v2317_v59, %v1741_v24  ;;  %v5195_v24 = vld [vmem:[%s5338_s11 + $0x1b8] sm:$0xff]  ;;  %v1039_v59 = vsel %vm655_vm8, %v8101_v10, 0.0  ;;  %vm658_vm15 = vcmp.eq.s32.totalorder %v6503_v15, %v8102_v52  ;;  %vm2001_vm4 = vcmp.eq.s32.totalorder %v6503_v15, %v6367_v21 }
 0x271   : > { %v2067_v2 = vpop.permute.xlu0 %2066  ;;  %v1743_v12 = vadd.f32 %v1679_v17, %v1039_v59  ;;  %v1042_v17 = vsel %vm658_vm15, %v8104_v4, 0.0  ;;  %v1683_v10 = vsel %vm1363_vm3, %v6386_v13, 0.0  ;;  %vm661_vm6 = vcmp.eq.s32.totalorder %v6503_v15, %v8108_v36  ;;  %v8110_v13 = vld [vmem:[#allocation119_spill] sm:$0xff] }
 0x272   : > { %v2318_v30 = vsel %vm1998_vm7, %v2067_v2, 0.0  ;;  %1893 = vperm.xlu1 %5133, %v5194_v49   ;;  %4698 = vmatprep.mubr.f32.mxu0 %v2381_v3  ;;  %v1681_v2 = vsel %vm1361_vm13, %v6358_v18, 0.0  ;;  %v1684_v21 = vsel %vm1364_vm1, %v6322_v58, 0.0  ;;  %v1043_v52 = vsel %vm659_vm0, %v8110_v13, 0.0  ;;  %v8118_v36 = vld [vmem:[#allocation123_spill] sm:$0xff] }
 0x273   : > { %v2382_v48 = vadd.f32 %v2318_v30, %v1742_v41  ;;  %v6547_v60 = vpop.permute.xlu1 %1851  ;;  %1971 = vperm.xlu0 %5167, %v5195_v24   ;;  %v1744_v41 = vadd.f32 %v1680_v50, %v1040_v22  ;;  %v5196_v30 = vld [vmem:[%s5543_s14 + $0xe8] sm:$0xff]  ;;  %v8107_v24 = vld [vmem:[#allocation10_spill] sm:$0xff]  ;;  %v1746_v22 = vadd.f32 %v1682_v57, %v1042_v17  ;;  %vm1366_vm7 = vcmp.eq.s32.totalorder %v6503_v15, %v6142_v5 }
 0x274   : > { %v8106_v50 = vld [vmem:[#allocation117_spill] sm:$0xff]  ;;  %vm660_vm5 = vcmp.eq.s32.totalorder %v6503_v15, %v8107_v24  ;;  %vm2004_vm8 = vcmp.eq.s32.totalorder %v6503_v15, %v6400_v53  ;;  %vm1365_vm9 = vcmp.eq.s32.totalorder %v6503_v15, %v6140_v29  ;;  %v1747_v31 = vadd.f32 %v1683_v10, %v1043_v52  ;;  %v8113_v29 = vld [vmem:[#allocation120_spill] sm:$0xff] }
 0x275   : > { %4699 = vmatmul.mubr.f32.vlgmr.msra.gmra.mrb[0].mxu0 %v2382_v48  ;;  %v2071_v3 = vpop.permute.xlu0 %2070  ;;  %v1041_v18 = vsel %vm657_vm10, %v8106_v50, 0.0  ;;  %v2384_v48 = vadd.f32 %v2320_v0, %v1744_v41  ;;  %v1044_v59 = vsel %vm660_vm5, %v8109_v39, 0.0  ;;  %v5197_v0 = vld [vmem:[%s5543_s14 + $0xf0] sm:$0xff]  ;;  %v2386_v41 = vadd.f32 %v2322_v20, %v1746_v22  ;;  %v8112_v17 = vld [vmem:[#allocation17_spill] sm:$0xff]  ;;  %v8115_v20 = vld [vmem:[#allocation16_spill] sm:$0xff] }
 0x276   : > { %v2319_v35 = vsel %vm1999_vm14, %v2071_v3, 0.0  ;;  %2178 = vperm.xlu1 %5133, %v5196_v30   ;;  %v1745_v38 = vadd.f32 %v1681_v2, %v1041_v18  ;;  %v5198_v3 = vld [vmem:[%s5338_s11 + $0x1c8] sm:$0xff]  ;;  %v2324_v58 = vsel %vm2004_vm8, %v6406_v40, 0.0  ;;  %vm2003_vm10 = vcmp.eq.s32.totalorder %v6503_v15, %v6394_v63  ;;  %v5200_v18 = vld [vmem:[%s5338_s11 + $0xf0] sm:$0xff] }
 0x277   : > { %v2383_v43 = vadd.f32 %v2319_v35, %v1743_v12  ;;  %v6572_v49 = vpop.permute.xlu1 %2122  ;;  %2282 = vperm.xlu0 %5167, %v8105_v47   ;;  %v8111_v30 = vld [vmem:[#allocation13_spill] sm:$0xff]  ;;  %v1748_v62 = vadd.f32 %v1684_v21, %v1044_v59  ;;  %v1685_v53 = vsel %vm1365_vm9, %v6413_v28, 0.0  ;;  %vm663_vm12 = vcmp.eq.s32.totalorder %v6503_v15, %v8112_v17  ;;  %v5202_v59 = vld [vmem:[%s5338_s11 + $0xf8] sm:$0xff] }
 0x278   : > { %vm662_vm11 = vcmp.eq.s32.totalorder %v6503_v15, %v8111_v30  ;;  %v1686_v63 = vsel %vm1366_vm7, %v6328_v45, 0.0  ;;  %v8114_v47 = vld [vmem:[#allocation121_spill] sm:$0xff]  ;;  %vm1368_vm13 = vcmp.eq.s32.totalorder %v6503_v15, %v6149_v27  ;;  %vm2006_vm14 = vcmp.eq.s32.totalorder %v6503_v15, %v6428_v11 }
 0x279   : > { %4701 = vmatprep.mubr.f32.mxu0 %v2383_v43  ;;  %v2079_v33 = vpop.permute.xlu0 %2078  ;;  %v1046_v57 = vsel %vm662_vm11, %v8113_v29, 0.0  ;;  %v5199_v43 = vld [vmem:[%s5543_s14 + $0x1c8] sm:$0xff]  ;;  %v1045_v28 = vsel %vm661_vm6, %v8114_v47, 0.0  ;;  %v2388_v50 = vadd.f32 %v2324_v58, %v1748_v62  ;;  %vm1367_vm15 = vcmp.eq.s32.totalorder %v6503_v15, %v6147_v54  ;;  %v8122_v62 = vld [vmem:[#allocation24_spill] sm:$0xff] }
 0x27a   : > { %v2321_v19 = vsel %vm2001_vm4, %v2079_v33, 0.0  ;;  %5134 = vset.pattern.permute.xlu1 %v7977_v44  ;;  %4702 = vmatmul.mubr.f32.gmra.mrb[2].mxu0 %v2384_v48  ;;  %v1749_v5 = vadd.f32 %v1685_v53, %v1045_v28  ;;  %v2326_v45 = vsel %vm2006_vm14, %v6434_v37, 0.0  ;;  %vm2005_vm0 = vcmp.eq.s32.totalorder %v6503_v15, %v6422_v61  ;;  %v8116_v54 = vld [vmem:[#allocation21_spill] sm:$0xff]  ;;  %v8117_v37 = vld [vmem:[#allocation122_spill] sm:$0xff] }
 0x27b   : > { %v2385_v12 = vadd.f32 %v2321_v19, %v1745_v38  ;;  %1542 = vperm.xlu1 %5134, %v5197_v0   ;;  %1977 = vperm.xlu0 %5167, %v5198_v3   ;;  %vm664_vm1 = vcmp.eq.s32.totalorder %v6503_v15, %v8115_v20  ;;  %v1750_v11 = vadd.f32 %v1686_v63, %v1046_v57  ;;  %v1687_v33 = vsel %vm1367_vm15, %v6441_v55, 0.0  ;;  %v5201_v19 = vld [vmem:[%s5338_s11 + $0x1d8] sm:$0xff]  ;;  %v8119_v0 = vld [vmem:[#allocation20_spill] sm:$0xff]  ;;  %v8125_v29 = vld [vmem:[#allocation125_spill] sm:$0xff] }
 0x27c   : > { %v6609_v2 = vpop.permute.xlu1 %1486  ;;  %vm665_vm2 = vcmp.eq.s32.totalorder %v6503_v15, %v8116_v54  ;;  %v1048_v22 = vsel %vm664_vm1, %v8117_v37, 0.0  ;;  %v1688_v61 = vsel %vm1368_vm13, %v6334_v51, 0.0  ;;  %v1047_v55 = vsel %vm663_vm12, %v8118_v36, 0.0  ;;  %v8126_v57 = vld [vmem:[#allocation27_spill] sm:$0xff]  ;;  %v8128_v28 = vld [vmem:[#allocation30_spill] sm:$0xff]  ;;  %v8131_v54 = vld [vmem:[#allocation33_spill] sm:$0xff] }
 0x27d   : > { %4704 = vmatprep.mubr.f32.mxu0 %v2385_v12  ;;  %v2087_v35 = vpop.permute.xlu0 %2086  ;;  %vm1370_vm3 = vcmp.eq.s32.totalorder %v6503_v15, %v6155_v25  ;;  %v2390_v39 = vadd.f32 %v2326_v45, %v1750_v11  ;;  %vm2008_vm4 = vcmp.eq.s32.totalorder %v6503_v15, %v6458_v9  ;;  %vm1369_vm5 = vcmp.eq.s32.totalorder %v6503_v15, %v6153_v6  ;;  %v8120_v6 = vld [vmem:[#allocation25_spill] sm:$0xff]  ;;  %v5206_v45 = vld [vmem:[%s5543_s14 + $0x100] sm:$0xff] }
 0x27e   : > { %v2323_v4 = vsel %vm2003_vm10, %v2087_v35, 0.0  ;;  %4705 = vmatmul.mubr.f32.gmra.mrb[4].mxu0 %v2386_v41  ;;  %v1751_v27 = vadd.f32 %v1687_v33, %v1047_v55  ;;  %v2328_v51 = vsel %vm2008_vm4, %v6467_v14, 0.0  ;;  %vm2007_vm6 = vcmp.eq.s32.totalorder %v6503_v15, %v6452_v8  ;;  %v5203_v41 = vld [vmem:[%s5543_s14 + $0x1d8] sm:$0xff]  ;;  %v8135_v55 = vld [vmem:[#allocation34_spill] sm:$0xff] }
 0x27f   : > { %v2387_v40 = vadd.f32 %v2323_v4, %v1747_v31  ;;  %5135 = vset.pattern.permute.xlu1 %v7981_v46  ;;  %2290 = vperm.xlu0 %5167, %v5199_v43   ;;  %vm666_vm7 = vcmp.eq.s32.totalorder %v6503_v15, %v8119_v0  ;;  %v1752_v9 = vadd.f32 %v1688_v61, %v1048_v22  ;;  %v1689_v3 = vsel %vm1369_vm5, %v6474_v7, 0.0  ;;  %v8121_v31 = vld [vmem:[#allocation124_spill] sm:$0xff]  ;;  %v8127_v43 = vld [vmem:[#allocation126_spill] sm:$0xff]  ;;  %v8133_v61 = vld [vmem:[#allocation127_spill] sm:$0xff] }
 0x280   : > { %1896 = vperm.xlu1 %5135, %v5200_v18   ;;  %vm667_vm8 = vcmp.eq.s32.totalorder %v6503_v15, %v8120_v6  ;;  %v1050_v14 = vsel %vm666_vm7, %v5955_v56, 0.0  ;;  %v1690_v8 = vsel %vm1370_vm3, %v6341_v42, 0.0  ;;  %v1049_v7 = vsel %vm665_vm2, %v8121_v31, 0.0  ;;  %v5204_v56 = vld [vmem:[%s5543_s14 + $0xf8] sm:$0xff]  ;;  %v8129_v18 = vld [vmem:[#allocation6_spill] sm:$0xff] }
 0x281   : > { %v6640_v48 = vpop.permute.xlu1 %1854  ;;  %4707 = vmatprep.mubr.f32.mxu0 %v2387_v40  ;;  %v2095_v38 = vpop.permute.xlu0 %2094  ;;  %vm1372_vm9 = vcmp.eq.s32.totalorder %v6503_v15, %v6161_v23  ;;  %v2392_v58 = vadd.f32 %v2328_v51, %v1752_v9  ;;  %vm2010_vm10 = vcmp.eq.s32.totalorder %v6503_v15, %v6492_v16  ;;  %vm1371_vm11 = vcmp.eq.s32.totalorder %v6503_v15, %v6159_v32  ;;  %v8123_v16 = vld [vmem:[#allocation3_spill] sm:$0xff]  ;;  %v8124_v32 = vld [vmem:[#allocation29_spill] sm:$0xff]  ;;  %v5208_v9 = vld [vmem:[%s5338_s11 + $0x100] sm:$0xff] }
 0x282   : > { %v2325_v24 = vsel %vm2005_vm0, %v2095_v38, 0.0  ;;  %4708 = vmatmul.mubr.f32.gmra.mrb[6].mxu0 %v2388_v50  ;;  %v1753_v25 = vadd.f32 %v1689_v3, %v1049_v7  ;;  %v2330_v42 = vsel %vm2010_vm10, %v6501_v34, 0.0  ;;  %vm2009_vm12 = vcmp.eq.s32.totalorder %v6503_v15, %v6486_v26  ;;  %v5205_v40 = vld [vmem:[%s5338_s11 + $0x1e8] sm:$0xff]  ;;  %v8136_v6 = vld [vmem:[#allocation130_spill] sm:$0xff] }
 0x283   : > { %v2389_v10 = vadd.f32 %v2325_v24, %v1749_v5  ;;  %1983 = vperm.xlu0 %5167, %v5201_v19   ;;  %vm668_vm13 = vcmp.eq.s32.totalorder %v6503_v15, %v8122_v62  ;;  %v1754_v53 = vadd.f32 %v1690_v8, %v1050_v14  ;;  %v1691_v4 = vsel %vm1371_vm11, %v8123_v16, 0.0  ;;  %v8130_v24 = vld [vmem:[#allocation28_spill] sm:$0xff]  ;;  %v5210_v7 = vld [vmem:[%s5338_s11 + $0x108] sm:$0xff] }
 0x284   : > { %1899 = vperm.xlu1 %5135, %v5202_v59   ;;  %vm669_vm14 = vcmp.eq.s32.totalorder %v6503_v15, %v8124_v32  ;;  %v1052_v34 = vsel %vm668_vm13, %v8125_v29, 0.0  ;;  %v1692_v26 = vsel %vm1372_vm9, %v8126_v57, 0.0  ;;  %v1051_v47 = vsel %vm667_vm8, %v8127_v43, 0.0  ;;  %v5212_v29 = vld [vmem:[%s5543_s14 + $0x110] sm:$0xff]  ;;  %v8141_v57 = vld [vmem:[#allocation37_spill] sm:$0xff] }
 0x285   : > { %v6667_v21 = vpop.permute.xlu1 %1857  ;;  %4710 = vmatprep.mubr.f32.mxu0 %v2389_v10  ;;  %v2103_v12 = vpop.permute.xlu0 %2102  ;;  %vm1374_vm15 = vcmp.eq.s32.totalorder %v6503_v15, %v8128_v28  ;;  %v2394_v50 = vadd.f32 %v2330_v42, %v1754_v53  ;;  %vm2012_vm0 = vcmp.eq.s32.totalorder %v6503_v15, %v6547_v60  ;;  %vm1373_vm1 = vcmp.eq.s32.totalorder %v6503_v15, %v8129_v18  ;;  %v8134_v10 = vld [vmem:[#allocation128_spill] sm:$0xff]  ;;  %v5211_v53 = vld [vmem:[%s5543_s14 + $0x108] sm:$0xff] }
 0x286   : > { %v2327_v13 = vsel %vm2007_vm6, %v2103_v12, 0.0  ;;  %4711 = vmatmul.mubr.f32.gmra.mrb[8].mxu0 %v2390_v39  ;;  %v1755_v23 = vadd.f32 %v1691_v4, %v1051_v47  ;;  %v2332_v5 = vsel %vm2012_vm0, %v6572_v49, 0.0  ;;  %vm2011_vm2 = vcmp.eq.s32.totalorder %v6503_v15, %v6528_v1  ;;  %v8132_v49 = vld [vmem:[#allocation175_spill] sm:$0xff]  ;;  %v5207_v1 = vld [vmem:[%s5543_s14 + $0x1e8] sm:$0xff]  ;;  %v8143_v47 = vld [vmem:[#allocation132_spill] sm:$0xff] }
 0x287   : > { %v2391_v52 = vadd.f32 %v2327_v13, %v1751_v27  ;;  %2298 = vperm.xlu0 %5167, %v5203_v41   ;;  %v1756_v20 = vadd.f32 %v1692_v26, %v1052_v34  ;;  %v1693_v11 = vsel %vm1373_vm1, %v6609_v2, 0.0  ;;  %vm670_vm3 = vcmp.eq.s32.totalorder %v6503_v15, %v8130_v24  ;;  %v5209_v13 = vld [vmem:[%s5338_s11 + $0x1f8] sm:$0xff]  ;;  %v8142_v26 = vld [vmem:[#allocation42_spill] sm:$0xff] }
 0x288   : > { %2186 = vperm.xlu1 %5135, %v5204_v56   ;;  %vm671_vm4 = vcmp.eq.s32.totalorder %v6503_v15, %v8131_v54  ;;  %v1694_v37 = vsel %vm1374_vm15, %v8132_v49, 0.0  ;;  %v1054_v2 = vsel %vm670_vm3, %v8133_v61, 0.0  ;;  %v1053_v19 = vsel %vm669_vm14, %v8134_v10, 0.0  ;;  %v8147_v24 = vld [vmem:[#allocation131_spill] sm:$0xff] }
 0x289   : > { %v2131_v35 = vpop.permute.xlu1 %2130  ;;  %4713 = vmatprep.mubr.f32.mxu0 %v2391_v52  ;;  %v2111_v30 = vpop.permute.xlu0 %2110  ;;  %v2396_v36 = vadd.f32 %v2332_v5, %v1756_v20  ;;  %vm2014_vm5 = vcmp.eq.s32.totalorder %v6503_v15, %v6667_v21  ;;  %vm1375_vm6 = vcmp.eq.s32.totalorder %v6503_v15, %v8135_v55  ;;  %v1757_v39 = vadd.f32 %v1693_v11, %v1053_v19  ;;  %v8145_v11 = vld [vmem:[#allocation176_spill] sm:$0xff]  ;;  %v5215_v49 = vld [vmem:[%s5543_s14 + $0x118] sm:$0xff]  ;;  %v8148_v19 = vld [vmem:[#allocation41_spill] sm:$0xff] }
 0x28a   : > { %v2329_v17 = vsel %vm2009_vm12, %v2111_v30, 0.0  ;;  %4714 = vmatmul.mubr.f32.gmra.mrb[10].mxu0 %v2392_v58  ;;  %v2334_v59 = vsel %vm2014_vm5, %v2131_v35, 0.0  ;;  %vm2013_vm7 = vcmp.eq.s32.totalorder %v6503_v15, %v6640_v48  ;;  %v1758_v51 = vadd.f32 %v1694_v37, %v1054_v2  ;;  %v8137_v48 = vld [vmem:[#allocation38_spill] sm:$0xff]  ;;  %v8139_v35 = vld [vmem:[#allocation32_spill] sm:$0xff]  ;;  %v8140_v30 = vld [vmem:[#allocation129_spill] sm:$0xff] }
 0x28b   : > { %v2393_v63 = vadd.f32 %v2329_v17, %v1753_v25  ;;  %1989 = vperm.xlu0 %5167, %v5205_v40   ;;  %v1055_v14 = vsel %vm671_vm4, %v8136_v6, 0.0  ;;  %vm1376_vm9 = vcmp.eq.s32.totalorder %v6503_v15, %v8137_v48  ;;  %v8138_v25 = vld [vmem:[#allocation31_spill] sm:$0xff]  ;;  %vm672_vm10 = vcmp.eq.s32.totalorder %v6503_v15, %v8139_v35  ;;  %v5213_v40 = vld [vmem:[%s5338_s11 + $0x110] sm:$0xff]  ;;  %v5216_v2 = vld [vmem:[%s5543_s14 + $0x120] sm:$0xff] }
 0x28c   : > { %5136 = vset.pattern.permute.xlu1 %v7977_v44  ;;  %v2398_v8 = vadd.f32 %v2334_v59, %v1758_v51  ;;  %v1696_v42 = vsel %vm1376_vm9, %v8138_v25, 0.0  ;;  %v1056_v62 = vsel %vm672_vm10, %v8140_v30, 0.0  ;;  %vm673_vm12 = vcmp.eq.s32.totalorder %v6503_v15, %v8141_v57  ;;  %v8153_v48 = vld [vmem:[#allocation40_spill] sm:$0xff]  ;;  %v8155_v30 = vld [vmem:[#allocation45_spill] sm:$0xff]  ;;  %v8158_v57 = vld [vmem:[#allocation58_spill] sm:$0xff] }
 0x28d   : > { %1550 = vperm.xlu1 %5136, %v5206_v45   ;;  %4716 = vmatprep.mubr.f32.mxu0 %v2393_v63  ;;  %v2119_v38 = vpop.permute.xlu0 %2118  ;;  %v1760_v16 = vadd.f32 %v1696_v42, %v1056_v62  ;;  %vm1377_vm13 = vcmp.eq.s32.totalorder %v6503_v15, %v8142_v26  ;;  %v1057_v28 = vsel %vm673_vm12, %v8143_v47, 0.0  ;;  %v5220_v42 = vld [vmem:[%s5543_s14 + $0x130] sm:$0xff]  ;;  %v8159_v47 = vld [vmem:[#allocation35_spill] sm:$0xff] }
 0x28e   : > { %v2331_v60 = vsel %vm2011_vm2, %v2119_v38, 0.0  ;;  %v1495_v33 = vpop.permute.xlu1 %1494  ;;  %4717 = vmatmul.mubr.f32.gmra.mrb[12].mxu0 %v2394_v50  ;;  %v5214_v38 = vld [vmem:[%s5338_s11 + $0x118] sm:$0xff]  ;;  %vm675_vm2 = vcmp.eq.s32.totalorder %v6503_v15, %v8148_v19  ;;  %v8156_v62 = vld [vmem:[#allocation54_spill] sm:$0xff]  ;;  %v8165_v19 = vld [vmem:[#allocation12_spill] sm:$0xff] }
 0x28f   : > { %v2395_v22 = vadd.f32 %v2331_v60, %v1755_v23  ;;  %2306 = vperm.xlu0 %5167, %v5207_v1   ;;  %v1695_v12 = vsel %vm1375_vm6, %v1495_v33, 0.0  ;;  %v8144_v23 = vld [vmem:[#allocation46_spill] sm:$0xff]  ;;  %v8146_v33 = vld [vmem:[#allocation36_spill] sm:$0xff]  ;;  %vm676_vm6 = vcmp.eq.s32.totalorder %v6503_v15, %v8153_v48  ;;  %vm1381_vm9 = vcmp.eq.s32.totalorder %v6503_v15, %v8156_v62 }
 0x290   : > { %v1759_v52 = vadd.f32 %v1695_v12, %v1055_v14  ;;  %vm1378_vm15 = vcmp.eq.s32.totalorder %v6503_v15, %v8144_v23  ;;  %vm674_vm0 = vcmp.eq.s32.totalorder %v6503_v15, %v8146_v33  ;;  %v8152_v14 = vld [vmem:[#allocation177_spill] sm:$0xff] }
 0x291   : > { %5137 = vset.pattern.permute.xlu1 %v7981_v46  ;;  %4719 = vmatprep.mubr.f32.mxu0 %v2395_v22  ;;  %v2127_v27 = vpop.permute.xlu0 %2126  ;;  %v1698_v60 = vsel %vm1378_vm15, %v8145_v11, 0.0  ;;  %v1058_v54 = vsel %vm674_vm0, %v8147_v24, 0.0  ;;  %v8162_v24 = vld [vmem:[#allocation49_spill] sm:$0xff] }
 0x292   : > { %v2333_v0 = vsel %vm2013_vm7, %v2127_v27, 0.0  ;;  %1902 = vperm.xlu1 %5137, %v5208_v9   ;;  %4720 = vmatmul.mubr.f32.gmra.mrb[14].mxu0 %v2396_v36  ;;  %v1762_v37 = vadd.f32 %v1698_v60, %v1058_v54  ;;  %v8149_v36 = vld [vmem:[#allocation9_spill] sm:$0xff]  ;;  %v8150_v27 = vld [vmem:[#allocation134_spill] sm:$0xff]  ;;  %v5224_v60 = vld [vmem:[%s5543_s14 + $0x140] sm:$0xff] }
 0x293   : > { %v2397_v21 = vadd.f32 %v2333_v0, %v1757_v39  ;;  %v1861_v3 = vpop.permute.xlu1 %1860  ;;  %1995 = vperm.xlu0 %5167, %v5209_v13   ;;  %vm1379_vm3 = vcmp.eq.s32.totalorder %v6503_v15, %v8149_v36  ;;  %v5217_v39 = vld [vmem:[%s5338_s11 + $0x120] sm:$0xff]  ;;  %v1059_v51 = vsel %vm675_vm2, %v8150_v27, 0.0  ;;  %v8151_v9 = vld [vmem:[#allocation50_spill] sm:$0xff]  ;;  %v5218_v13 = vld [vmem:[%s5338_s11 + $0x128] sm:$0xff] }
 0x294   : > { %vm2015_vm8 = vcmp.eq.s32.totalorder %v6503_v15, %v1861_v3  ;;  %vm1380_vm5 = vcmp.eq.s32.totalorder %v6503_v15, %v8151_v9  ;;  %v8163_v54 = vld [vmem:[#allocation62_spill] sm:$0xff]  ;;  %v8166_v27 = vld [vmem:[#allocation39_spill] sm:$0xff] }
 0x295   : > { %4722 = vmatprep.mubr.f32.mxu0 %v2397_v21  ;;  %v2135_v41 = vpop.permute.xlu0 %2134  ;;  %vm1383_vm15 = vcmp.eq.s32.totalorder %v6503_v15, %v8163_v54 }
 0x296   : > { %v2335_v31 = vsel %vm2015_vm8, %v2135_v41, 0.0  ;;  %1905 = vperm.xlu1 %5137, %v5210_v7   ;;  %4723 = vmatmul.mubr.f32.gmra.mrb[16].mxu0 %v2398_v8  ;;  %v1700_v8 = vsel %vm1380_vm5, %v8152_v14, 0.0  ;;  %vm677_vm8 = vcmp.eq.s32.totalorder %v6503_v15, %v8155_v30  ;;  %v8172_v30 = vld [vmem:[#allocation70_spill] sm:$0xff] }
 0x297   : > { %v2399_v58 = vadd.f32 %v2335_v31, %v1759_v52  ;;  %v1864_v56 = vpop.permute.xlu1 %1863  ;;  %v8154_v52 = vld [vmem:[#allocation133_spill] sm:$0xff] }
 0x298   : > { %vm2016_vm11 = vcmp.eq.s32.totalorder %v6503_v15, %v1864_v56  ;;  %v1060_v41 = vsel %vm676_vm6, %v8154_v52, 0.0  ;;  %v5219_v31 = vld [vmem:[%s5543_s14 + $0x128] sm:$0xff] }
 0x299   : > { %4725 = vmatprep.mubr.f32.mxu0 %v2399_v58  ;;  %v2143_v43 = vpop.permute.xlu0 %2142  ;;  %v1764_v7 = vadd.f32 %v1700_v8, %v1060_v41  ;;  %v5228_v8 = vld [vmem:[%s5543_s14 + $0x150] sm:$0xff]  ;;  %v8169_v52 = vld [vmem:[#allocation53_spill] sm:$0xff] }
 0x29a   : > { %2194 = vperm.xlu1 %5137, %v5211_v53   ;;  %v8170_v41 = vld [vmem:[#allocation66_spill] sm:$0xff] }
 0x29b   : > { %v2139_v4 = vpop.permute.xlu1 %2138  ;;  %vm1385_vm5 = vcmp.eq.s32.totalorder %v6503_v15, %v8170_v41 }
 0x29c   : > { %v2336_v17 = vsel %vm2016_vm11, %v2139_v4, 0.0  ;;  %vm1382_vm11 = vcmp.eq.s32.totalorder %v6503_v15, %v8158_v57 }
 0x29d   : > { %v2400_v32 = vadd.f32 %v2336_v17, %v1760_v16  ;;  %v2151_v59 = vpop.permute.xlu0 %2150  ;;  %v5221_v16 = vld [vmem:[%s5338_s11 + $0x130] sm:$0xff]  ;;  %v8157_v17 = vld [vmem:[#allocation136_spill] sm:$0xff] }
 0x29e   : > { %5138 = vset.pattern.permute.xlu1 %v7977_v44 }
 0x29f   : > { %1558 = vperm.xlu1 %5138, %v5212_v29   ;;  %4726 = vmatmul.mubr.f32.gmra.mrb[18].mxu0 %v2400_v32  ;;  %v1061_v32 = vsel %vm677_vm8, %v8157_v17, 0.0  ;;  %v8173_v17 = vld [vmem:[#allocation43_spill] sm:$0xff] }
 0x2a0   : > { %v1503_v34 = vpop.permute.xlu1 %1502 }
 0x2a1   : > { %v1697_v63 = vsel %vm1377_vm13, %v1503_v34, 0.0  ;;  %v2159_v4 = vpop.permute.xlu0 %2158 }
 0x2a2   : > { %v1761_v18 = vadd.f32 %v1697_v63, %v1057_v28  ;;  %v1702_v28 = vsel %vm1382_vm11, %v8159_v47, 0.0 }
 0x2a3   : > { %5139 = vset.pattern.permute.xlu1 %v7981_v46 }
 0x2a4   : > { %1908 = vperm.xlu1 %5139, %v5213_v40   ;;  %v5222_v40 = vld [vmem:[%s5338_s11 + $0x138] sm:$0xff] }
 0x2a5   : > { %v1867_v50 = vpop.permute.xlu1 %1866 }
 0x2a6   : > { %vm2017_vm14 = vcmp.eq.s32.totalorder %v6503_v15, %v1867_v50  ;;  %v8160_v50 = vld [vmem:[#allocation44_spill] sm:$0xff] }
 0x2a7   : > { %v2337_v5 = vsel %vm2017_vm14, %v2143_v43, 0.0  ;;  %vm678_vm12 = vcmp.eq.s32.totalorder %v6503_v15, %v8160_v50  ;;  %vm679_vm14 = vcmp.eq.s32.totalorder %v6503_v15, %v8162_v24  ;;  %v8180_v24 = vld [vmem:[#allocation78_spill] sm:$0xff] }
 0x2a8   : > { %v2401_v45 = vadd.f32 %v2337_v5, %v1761_v18  ;;  %1911 = vperm.xlu1 %5139, %v5214_v38   ;;  %v8161_v18 = vld [vmem:[#allocation135_spill] sm:$0xff] }
 0x2a9   : > { %v1870_v20 = vpop.permute.xlu1 %1869  ;;  %v1062_v23 = vsel %vm678_vm12, %v8161_v18, 0.0  ;;  %v5223_v5 = vld [vmem:[%s5543_s14 + $0x138] sm:$0xff]  ;;  %v8177_v18 = vld [vmem:[#allocation57_spill] sm:$0xff] }
 0x2aa   : > { %4728 = vmatprep.mubr.f32.mxu0 %v2401_v45  ;;  %vm2018_vm1 = vcmp.eq.s32.totalorder %v6503_v15, %v1870_v20  ;;  %v1766_v45 = vadd.f32 %v1702_v28, %v1062_v23  ;;  %v8176_v28 = vld [vmem:[#allocation178_spill] sm:$0xff] }
 0x2ab   : > { %v8178_v23 = vld [vmem:[#allocation74_spill] sm:$0xff] }
 0x2ac   : > { %2202 = vperm.xlu1 %5139, %v5215_v49   ;;  %vm1387_vm11 = vcmp.eq.s32.totalorder %v6503_v15, %v8178_v23  ;;  %v8196_v23 = vld [vmem:[#allocation182_spill] sm:$0xff] }
 0x2ad   : > { %v2147_v22 = vpop.permute.xlu1 %2146 }
 0x2ae   : > { %v2338_v1 = vsel %vm2018_vm1, %v2147_v22, 0.0  ;;  %v2167_v22 = vpop.permute.xlu0 %2166  ;;  %vm1384_vm1 = vcmp.eq.s32.totalorder %v6503_v15, %v8165_v19 }
 0x2af   : > { %v2402_v61 = vadd.f32 %v2338_v1, %v1762_v37  ;;  %v5225_v37 = vld [vmem:[%s5338_s11 + $0x140] sm:$0xff]  ;;  %v8164_v1 = vld [vmem:[#allocation138_spill] sm:$0xff] }
 0x2b0   : > { %5140 = vset.pattern.permute.xlu1 %v7977_v44 }
 0x2b1   : > { %1566 = vperm.xlu1 %5140, %v5216_v2   ;;  %4729 = vmatmul.mubr.f32.gmra.mrb[20].mxu0 %v2402_v61  ;;  %v1063_v61 = vsel %vm679_vm14, %v8164_v1, 0.0  ;;  %v8181_v1 = vld [vmem:[#allocation47_spill] sm:$0xff] }
 0x2b2   : > { %v1511_v10 = vpop.permute.xlu1 %1510 }
 0x2b3   : > { %v1699_v55 = vsel %vm1379_vm3, %v1511_v10, 0.0 }
 0x2b4   : > { %v1763_v0 = vadd.f32 %v1699_v55, %v1059_v51  ;;  %v1704_v51 = vsel %vm1384_vm1, %v8166_v27, 0.0 }
 0x2b5   : > { %5141 = vset.pattern.permute.xlu1 %v7981_v46 }
 0x2b6   : > { %1914 = vperm.xlu1 %5141, %v5217_v39   ;;  %v5226_v39 = vld [vmem:[%s5338_s11 + $0x148] sm:$0xff] }
 0x2b7   : > { %v1873_v12 = vpop.permute.xlu1 %1872 }
 0x2b8   : > { %vm2019_vm4 = vcmp.eq.s32.totalorder %v6503_v15, %v1873_v12  ;;  %v8167_v12 = vld [vmem:[#allocation48_spill] sm:$0xff] }
 0x2b9   : > { %v2339_v21 = vsel %vm2019_vm4, %v2151_v59, 0.0  ;;  %vm680_vm2 = vcmp.eq.s32.totalorder %v6503_v15, %v8167_v12  ;;  %vm681_vm4 = vcmp.eq.s32.totalorder %v6503_v15, %v8169_v52  ;;  %v8188_v52 = vld [vmem:[#allocation15_spill] sm:$0xff] }
 0x2ba   : > { %v2403_v3 = vadd.f32 %v2339_v21, %v1763_v0  ;;  %1917 = vperm.xlu1 %5141, %v5218_v13   ;;  %v8168_v0 = vld [vmem:[#allocation137_spill] sm:$0xff] }
 0x2bb   : > { %v1876_v6 = vpop.permute.xlu1 %1875  ;;  %v1064_v9 = vsel %vm680_vm2, %v8168_v0, 0.0  ;;  %v5227_v21 = vld [vmem:[%s5543_s14 + $0x148] sm:$0xff] }
 0x2bc   : > { %4731 = vmatprep.mubr.f32.mxu0 %v2403_v3  ;;  %vm2020_vm7 = vcmp.eq.s32.totalorder %v6503_v15, %v1876_v6  ;;  %v1768_v3 = vadd.f32 %v1704_v51, %v1064_v9  ;;  %v5235_v51 = vld [vmem:[%s5338_s11 + $0x170] sm:$0xff]  ;;  %v8184_v0 = vld [vmem:[#allocation61_spill] sm:$0xff]  ;;  %v8185_v9 = vld [vmem:[#allocation83_spill] sm:$0xff] }
 0x2bd   : > { %vm1389_vm1 = vcmp.eq.s32.totalorder %v6503_v15, %v8185_v9 }
 0x2be   : > { %2210 = vperm.xlu1 %5141, %v5219_v31  }
 0x2bf   : > { %v2155_v58 = vpop.permute.xlu1 %2154 }
 0x2c0   : > { %v2340_v56 = vsel %vm2020_vm7, %v2155_v58, 0.0  ;;  %v2175_v58 = vpop.permute.xlu0 %2174  ;;  %vm1386_vm7 = vcmp.eq.s32.totalorder %v6503_v15, %v8172_v30 }
 0x2c1   : > { %v2404_v25 = vadd.f32 %v2340_v56, %v1764_v7  ;;  %v5229_v7 = vld [vmem:[%s5338_s11 + $0x150] sm:$0xff]  ;;  %v8171_v56 = vld [vmem:[#allocation140_spill] sm:$0xff] }
 0x2c2   : > { %5142 = vset.pattern.permute.xlu1 %v7977_v44 }
 0x2c3   : > { %1574 = vperm.xlu1 %5142, %v5220_v42   ;;  %4732 = vmatmul.mubr.f32.gmra.mrb[22].mxu0 %v2404_v25  ;;  %v1065_v25 = vsel %vm681_vm4, %v8171_v56, 0.0  ;;  %v8189_v56 = vld [vmem:[#allocation51_spill] sm:$0xff] }
 0x2c4   : > { %v1519_v35 = vpop.permute.xlu1 %1518 }
 0x2c5   : > { %v1701_v53 = vsel %vm1381_vm9, %v1519_v35, 0.0 }
 0x2c6   : > { %v1765_v34 = vadd.f32 %v1701_v53, %v1061_v32  ;;  %v1706_v32 = vsel %vm1386_vm7, %v8173_v17, 0.0  ;;  %v5237_v17 = vld [vmem:[%s5543_s14 + $0x170] sm:$0xff] }
 0x2c7   : > { %5143 = vset.pattern.permute.xlu1 %v7981_v46 }
 0x2c8   : > { %1920 = vperm.xlu1 %5143, %v5221_v16   ;;  %v5230_v16 = vld [vmem:[%s5338_s11 + $0x158] sm:$0xff] }
 0x2c9   : > { %v1879_v29 = vpop.permute.xlu1 %1878 }
 0x2ca   : > { %vm2021_vm10 = vcmp.eq.s32.totalorder %v6503_v15, %v1879_v29  ;;  %v8174_v29 = vld [vmem:[#allocation52_spill] sm:$0xff] }
 0x2cb   : > { %v2341_v26 = vsel %vm2021_vm10, %v2159_v4, 0.0  ;;  %vm682_vm8 = vcmp.eq.s32.totalorder %v6503_v15, %v8174_v29  ;;  %vm683_vm10 = vcmp.eq.s32.totalorder %v6503_v15, %v8177_v18  ;;  %v8192_v29 = vld [vmem:[#allocation65_spill] sm:$0xff] }
 0x2cc   : > { %v2405_v63 = vadd.f32 %v2341_v26, %v1765_v34  ;;  %1923 = vperm.xlu1 %5143, %v5222_v40   ;;  %v8175_v34 = vld [vmem:[#allocation139_spill] sm:$0xff] }
 0x2cd   : > { %v1882_v43 = vpop.permute.xlu1 %1881  ;;  %v1066_v57 = vsel %vm682_vm8, %v8175_v34, 0.0  ;;  %v5231_v26 = vld [vmem:[%s5543_s14 + $0x158] sm:$0xff] }
 0x2ce   : > { %4734 = vmatprep.mubr.f32.mxu0 %v2405_v63  ;;  %vm2022_vm13 = vcmp.eq.s32.totalorder %v6503_v15, %v1882_v43  ;;  %v1770_v63 = vadd.f32 %v1706_v32, %v1066_v57  ;;  %v8193_v34 = vld [vmem:[#allocation87_spill] sm:$0xff] }
 0x2cf   : > { %vm1391_vm7 = vcmp.eq.s32.totalorder %v6503_v15, %v8193_v34 }
 0x2d0   : > { %2218 = vperm.xlu1 %5143, %v5223_v5  }
 0x2d1   : > { %v2163_v38 = vpop.permute.xlu1 %2162 }
 0x2d2   : > { %v2342_v20 = vsel %vm2022_vm13, %v2163_v38, 0.0  ;;  %v2183_v38 = vpop.permute.xlu0 %2182  ;;  %vm1388_vm13 = vcmp.eq.s32.totalorder %v6503_v15, %v8180_v24 }
 0x2d3   : > { %v2406_v11 = vadd.f32 %v2342_v20, %v1766_v45  ;;  %v5232_v45 = vld [vmem:[%s5543_s14 + $0x168] sm:$0xff]  ;;  %v8179_v20 = vld [vmem:[#allocation142_spill] sm:$0xff] }
 0x2d4   : > { %5144 = vset.pattern.permute.xlu1 %v7977_v44 }
 0x2d5   : > { %1582 = vperm.xlu1 %5144, %v5224_v60   ;;  %4735 = vmatmul.mubr.f32.gmra.mrb[24].mxu0 %v2406_v11  ;;  %v1067_v11 = vsel %vm683_vm10, %v8179_v20, 0.0 }
 0x2d6   : > { %v1527_v33 = vpop.permute.xlu1 %1526 }
 0x2d7   : > { %v1703_v49 = vsel %vm1383_vm15, %v1527_v33, 0.0 }
 0x2d8   : > { %v1767_v10 = vadd.f32 %v1703_v49, %v1063_v61  ;;  %v1708_v61 = vsel %vm1388_vm13, %v8181_v1, 0.0 }
 0x2d9   : > { %5145 = vset.pattern.permute.xlu1 %v7981_v46 }
 0x2da   : > { %1926 = vperm.xlu1 %5145, %v5225_v37   ;;  %v5233_v37 = vld [vmem:[%s5338_s11 + $0x160] sm:$0xff] }
 0x2db   : > { %v1885_v2 = vpop.permute.xlu1 %1884 }
 0x2dc   : > { %vm2023_vm0 = vcmp.eq.s32.totalorder %v6503_v15, %v1885_v2  ;;  %v8182_v2 = vld [vmem:[#allocation56_spill] sm:$0xff] }
 0x2dd   : > { %v2343_v36 = vsel %vm2023_vm0, %v2167_v22, 0.0  ;;  %vm684_vm14 = vcmp.eq.s32.totalorder %v6503_v15, %v8182_v2  ;;  %vm685_vm0 = vcmp.eq.s32.totalorder %v6503_v15, %v8184_v0  ;;  %v8201_v2 = vld [vmem:[#allocation95_spill] sm:$0xff]  ;;  %v5241_v0 = vld [vmem:[%s5338_s11 + $0x190] sm:$0xff] }
 0x2de   : > { %v2407_v55 = vadd.f32 %v2343_v36, %v1767_v10  ;;  %1929 = vperm.xlu1 %5145, %v5226_v39   ;;  %v8183_v10 = vld [vmem:[#allocation141_spill] sm:$0xff]  ;;  %v5234_v36 = vld [vmem:[%s5543_s14 + $0x160] sm:$0xff]  ;;  %vm1393_vm13 = vcmp.eq.s32.totalorder %v6503_v15, %v8201_v2 }
 0x2df   : > { %v1888_v59 = vpop.permute.xlu1 %1887  ;;  %v1068_v19 = vsel %vm684_vm14, %v8183_v10, 0.0  ;;  %v5240_v10 = vld [vmem:[%s5543_s14 + $0x180] sm:$0xff] }
 0x2e0   : > { %4737 = vmatprep.mubr.f32.mxu0 %v2407_v55  ;;  %vm2024_vm3 = vcmp.eq.s32.totalorder %v6503_v15, %v1888_v59  ;;  %v1772_v55 = vadd.f32 %v1708_v61, %v1068_v19  ;;  %v8200_v61 = vld [vmem:[#allocation69_spill] sm:$0xff] }
 0x2e2   : > { %2226 = vperm.xlu1 %5145, %v5227_v21  }
 0x2e3   : > { %v2171_v13 = vpop.permute.xlu1 %2170 }
 0x2e4   : > { %v2344_v6 = vsel %vm2024_vm3, %v2171_v13, 0.0  ;;  %v2191_v13 = vpop.permute.xlu0 %2190  ;;  %vm1390_vm3 = vcmp.eq.s32.totalorder %v6503_v15, %v8188_v52 }
 0x2e5   : > { %v2408_v14 = vadd.f32 %v2344_v6, %v1768_v3  ;;  %v8186_v3 = vld [vmem:[#allocation180_spill] sm:$0xff] }
 0x2e6   : > { %5146 = vset.pattern.permute.xlu1 %v7977_v44  ;;  %v8187_v6 = vld [vmem:[#allocation144_spill] sm:$0xff] }
 0x2e7   : > { %1590 = vperm.xlu1 %5146, %v5228_v8   ;;  %4738 = vmatmul.mubr.f32.gmra.mrb[26].mxu0 %v2408_v14  ;;  %v1069_v14 = vsel %vm685_vm0, %v8187_v6, 0.0  ;;  %v8205_v6 = vld [vmem:[#allocation68_spill] sm:$0xff] }
 0x2e8   : > { %v1535_v48 = vpop.permute.xlu1 %1534  ;;  %vm690_vm0 = vcmp.eq.s32.totalorder %v6503_v15, %v8205_v6 }
 0x2e9   : > { %v1705_v31 = vsel %vm1385_vm5, %v1535_v48, 0.0 }
 0x2ea   : > { %v1769_v35 = vadd.f32 %v1705_v31, %v1065_v25  ;;  %v5236_v31 = vld [vmem:[%s5543_s14 + $0x178] sm:$0xff]  ;;  %v1710_v25 = vsel %vm1390_vm3, %v8189_v56, 0.0  ;;  %v2917_v56 = vld [vmem:[%s7724_s4] sm:$0xff] }
 0x2eb   : > { %5147 = vset.pattern.permute.xlu1 %v7981_v46 }
 0x2ec   : > { %1932 = vperm.xlu1 %5147, %v5229_v7  }
 0x2ed   : > { %v1891_v42 = vpop.permute.xlu1 %1890 }
 0x2ee   : > { %vm2025_vm6 = vcmp.eq.s32.totalorder %v6503_v15, %v1891_v42  ;;  %v8190_v42 = vld [vmem:[#allocation60_spill] sm:$0xff] }
 0x2ef   : > { %v2345_v62 = vsel %vm2025_vm6, %v2175_v58, 0.0  ;;  %vm686_vm4 = vcmp.eq.s32.totalorder %v6503_v15, %v8190_v42  ;;  %vm687_vm6 = vcmp.eq.s32.totalorder %v6503_v15, %v8192_v29  ;;  %v8210_v29 = vld [vmem:[#allocation150_spill] sm:$0xff] }
 0x2f0   : > { %v2409_v53 = vadd.f32 %v2345_v62, %v1769_v35  ;;  %1935 = vperm.xlu1 %5147, %v5230_v16   ;;  %v8191_v35 = vld [vmem:[#allocation143_spill] sm:$0xff] }
 0x2f1   : > { %v1894_v4 = vpop.permute.xlu1 %1893  ;;  %v1070_v30 = vsel %vm686_vm4, %v8191_v35, 0.0 }
 0x2f2   : > { %4740 = vmatprep.mubr.f32.mxu0 %v2409_v53  ;;  %vm2026_vm9 = vcmp.eq.s32.totalorder %v6503_v15, %v1894_v4  ;;  %v1774_v62 = vadd.f32 %v1710_v25, %v1070_v30  ;;  %v2918_v25 = vld [vmem:[%s7724_s4 + $0x8] sm:$0xff] }
 0x2f3   : > { %v5050_v42 = vpack.c.bf16 %v2918_v25, %v2917_v56  ;;  %v8208_v30 = vld [vmem:[#allocation73_spill] sm:$0xff]  ;;  %v8219_v25 = vld [vmem:[#allocation67_spill] sm:$0xff] }
 0x2f4   : > { %2234 = vperm.xlu1 %5147, %v5231_v26   ;;  %v5238_v26 = vld [vmem:[%s5338_s11 + $0x180] sm:$0xff] }
 0x2f5   : > { %v2179_v40 = vpop.permute.xlu1 %2178  ;;  %5082 = vmatprep.subr.bf16.mxu1 %v5050_v42  ;;  %5051 = vmatprep.subr.bf16.mxu0 %v5050_v42 }
 0x2f6   : > { %v2346_v43 = vsel %vm2026_vm9, %v2179_v40, 0.0  ;;  %v8194_v40 = vld [vmem:[#allocation146_spill] sm:$0xff]  ;;  %5086 = vmatpush3.bf16.msra.mxu1 %v5050_v42  ;;  %5053 = vmatpush3.bf16.msra.mxu0 %v5050_v42 }
 0x2f7   : > { %v2410_v47 = vadd.f32 %v2346_v43, %v1770_v63  ;;  %v2199_v63 = vpop.permute.xlu0 %2198  ;;  %v1071_v43 = vsel %vm687_vm6, %v8194_v40, 0.0 }
 0x2f8   : > { %5148 = vset.pattern.permute.xlu1 %v7977_v44 }
 0x2f9   : > { %1301 = vperm.xlu1 %5148, %v8176_v28   ;;  %4741 = vmatmul.mubr.f32.gmra.mrb[28].mxu0 %v2410_v47 }
 0x2fa   : > { %v1543_v50 = vpop.permute.xlu1 %1542 }
 0x2fb   : > { %v1707_v5 = vsel %vm1387_vm11, %v1543_v50, 0.0  ;;  %v8195_v50 = vld [vmem:[#allocation91_spill] sm:$0xff] }
 0x2fc   : > { %v1771_v33 = vadd.f32 %v1707_v5, %v1067_v11  ;;  %vm1392_vm9 = vcmp.eq.s32.totalorder %v6503_v15, %v8195_v50  ;;  %v8198_v11 = vld [vmem:[#allocation64_spill] sm:$0xff] }
 0x2fd   : > { %1602 = vperm.xlu1 %5148, %v5232_v45   ;;  %vm688_vm10 = vcmp.eq.s32.totalorder %v6503_v15, %v8198_v11  ;;  %v2923_v11 = vld [vmem:[%s7724_s4 + $0x30] sm:$0xff] }
 0x2ff   : > { %v1897_v60 = vpop.permute.xlu1 %1896 }
 0x300   : > { %vm2027_vm12 = vcmp.eq.s32.totalorder %v6503_v15, %v1897_v60  ;;  %v5239_v60 = vld [vmem:[%s5543_s14 + $0x188] sm:$0xff] }
 0x301   : > { %v2347_v54 = vsel %vm2027_vm12, %v2183_v38, 0.0  ;;  %5149 = vset.pattern.permute.xlu1 %v7981_v46  ;;  %v8197_v38 = vld [vmem:[#allocation55_spill] sm:$0xff]  ;;  %vm689_vm12 = vcmp.eq.s32.totalorder %v6503_v15, %v8200_v61 }
 0x302   : > { %v2411_v49 = vadd.f32 %v2347_v54, %v1771_v33  ;;  %1938 = vperm.xlu1 %5149, %v5233_v37   ;;  %v1712_v20 = vsel %vm1392_vm9, %v8197_v38, 0.0  ;;  %v8199_v33 = vld [vmem:[#allocation145_spill] sm:$0xff]  ;;  %v8212_v38 = vld [vmem:[#allocation63_spill] sm:$0xff] }
 0x303   : > { %v1900_v22 = vpop.permute.xlu1 %1899  ;;  %v1072_v24 = vsel %vm688_vm10, %v8199_v33, 0.0  ;;  %v8213_v33 = vld [vmem:[#allocation72_spill] sm:$0xff] }
 0x304   : > { %4743 = vmatprep.mubr.f32.mxu0 %v2411_v49  ;;  %vm2028_vm15 = vcmp.eq.s32.totalorder %v6503_v15, %v1900_v22  ;;  %v1776_v54 = vadd.f32 %v1712_v20, %v1072_v24  ;;  %vm692_vm6 = vcmp.eq.s32.totalorder %v6503_v15, %v8213_v33  ;;  %v5244_v24 = vld [vmem:[%s5338_s11 + $0x1a0] sm:$0xff] }
 0x306   : > { %2238 = vperm.xlu1 %5149, %v5234_v36   ;;  %v2207_v36 = vpop.permute.xlu0 %2206 }
 0x307   : > { %v2187_v39 = vpop.permute.xlu1 %2186 }
 0x308   : > { %v2348_v59 = vsel %vm2028_vm15, %v2187_v39, 0.0 }
 0x309   : > { %v2412_v27 = vadd.f32 %v2348_v59, %v1772_v55  ;;  %v8202_v55 = vld [vmem:[#allocation148_spill] sm:$0xff] }
 0x30a   : > { %5150 = vset.pattern.permute.xlu1 %v7977_v44  ;;  %v1073_v39 = vsel %vm689_vm12, %v8202_v55, 0.0 }
 0x30b   : > { %1304 = vperm.xlu1 %5150, %v5235_v51   ;;  %4744 = vmatmul.mubr.f32.gmra.mrb[30].mxu0 %v2412_v27 }
 0x30c   : > { %v1551_v12 = vpop.permute.xlu1 %1550 }
 0x30d   : > { %v1709_v21 = vsel %vm1389_vm1, %v1551_v12, 0.0 }
 0x30e   : > { %v1773_v48 = vadd.f32 %v1709_v21, %v1069_v14  ;;  %v8206_v14 = vld [vmem:[#allocation184_spill] sm:$0xff] }
 0x30f   : > { %1307 = vperm.xlu1 %5150, %v8186_v3   ;;  %v8204_v3 = vld [vmem:[#allocation59_spill] sm:$0xff] }
 0x311   : > { %v1903_v8 = vpop.permute.xlu1 %1902 }
 0x312   : > { %vm2029_vm2 = vcmp.eq.s32.totalorder %v6503_v15, %v1903_v8  ;;  %v8207_v8 = vld [vmem:[#allocation147_spill] sm:$0xff] }
 0x313   : > { %v2349_v41 = vsel %vm2029_vm2, %v2191_v13, 0.0  ;;  %1610 = vperm.xlu1 %5150, %v5236_v31   ;;  %vm691_vm2 = vcmp.eq.s32.totalorder %v6503_v15, %v8208_v30 }
 0x314   : > { %v2413_v7 = vadd.f32 %v2349_v41, %v1773_v48  ;;  %v1074_v48 = vsel %vm690_vm0, %v8207_v8, 0.0  ;;  %v1075_v34 = vsel %vm691_vm2, %v8210_v29, 0.0 }
 0x315   : > { %v1906_v58 = vpop.permute.xlu1 %1905 }
 0x316   : > { %4746 = vmatprep.mubr.f32.mxu0 %v2413_v7  ;;  %vm2030_vm5 = vcmp.eq.s32.totalorder %v6503_v15, %v1906_v58  ;;  %v5242_v58 = vld [vmem:[%s5543_s14 + $0x198] sm:$0xff] }
 0x317   : > { %5151 = vset.pattern.permute.xlu1 %v7981_v46 }
 0x318   : > { %1944 = vperm.xlu1 %5151, %v5235_v51   ;;  %v8203_v51 = vld [vmem:[#allocation99_spill] sm:$0xff] }
 0x319   : > { %v2195_v53 = vpop.permute.xlu1 %2194  ;;  %vm1394_vm15 = vcmp.eq.s32.totalorder %v6503_v15, %v8203_v51 }
 0x31a   : > { %v2350_v16 = vsel %vm2030_vm5, %v2195_v53, 0.0  ;;  %v1714_v13 = vsel %vm1394_vm15, %v8204_v3, 0.0  ;;  %v2919_v53 = vld [vmem:[%s7724_s4 + $0x10] sm:$0xff] }
 0x31b   : > { %v2414_v4 = vadd.f32 %v2350_v16, %v1774_v62  ;;  %v1778_v52 = vadd.f32 %v1714_v13, %v1074_v48  ;;  %v8209_v62 = vld [vmem:[#allocation19_spill] sm:$0xff]  ;;  %v8217_v13 = vld [vmem:[#allocation152_spill] sm:$0xff] }
 0x31c   : > { %2246 = vperm.xlu1 %5151, %v5237_v17   ;;  %vm1395_vm3 = vcmp.eq.s32.totalorder %v6503_v15, %v8209_v62  ;;  %v2920_v16 = vld [vmem:[%s7724_s4 + $0x18] sm:$0xff]  ;;  %v8220_v62 = vld [vmem:[#allocation76_spill] sm:$0xff] }
 0x31d   : > { %4747 = vmatmul.mubr.f32.gmra.mrb[32].mxu0 %v2414_v4  ;;  %v5054_v17 = vpack.c.bf16 %v2920_v16, %v2919_v53  ;;  %vm694_vm12 = vcmp.eq.s32.totalorder %v6503_v15, %v8220_v62  ;;  %v8221_v53 = vld [vmem:[#allocation151_spill] sm:$0xff]  ;;  %v5254_v62 = vld [vmem:[%s5543_s14 + $0x1c8] sm:$0xff] }
 0x31e   : > { %v1559_v32 = vpop.permute.xlu1 %1558  ;;  %v1078_v16 = vsel %vm694_vm12, %v8221_v53, 0.0 }
 0x31f   : > { %v1711_v57 = vsel %vm1391_vm7, %v1559_v32, 0.0  ;;  %v2215_v32 = vpop.permute.xlu0 %2214  ;;  %5083 = vmatprep.subr.bf16.mxu1 %v5054_v17  ;;  %5055 = vmatprep.subr.bf16.mxu0 %v5054_v17 }
 0x320   : > { %5152 = vset.pattern.permute.xlu1 %v7977_v44  ;;  %v1775_v28 = vadd.f32 %v1711_v57, %v1071_v43  ;;  %5087 = vmatpush3.bf16.msra.mxu1 %v5054_v17  ;;  %v2921_v43 = vld [vmem:[%s7724_s4 + $0x20] sm:$0xff] }
 0x321   : > { %1310 = vperm.xlu1 %5152, %v5238_v26   ;;  %5057 = vmatpush3.bf16.msra.mxu0 %v5054_v17 }
 0x323   : > { %v1909_v47 = vpop.permute.xlu1 %1908  ;;  %v2223_v3 = vpop.permute.xlu0 %2222 }
 0x324   : > { %vm2031_vm8 = vcmp.eq.s32.totalorder %v6503_v15, %v1909_v47  ;;  %v2922_v47 = vld [vmem:[%s7724_s4 + $0x28] sm:$0xff] }
 0x325   : > { %v2351_v18 = vsel %vm2031_vm8, %v2199_v63, 0.0  ;;  %1313 = vperm.xlu1 %5152, %v8196_v23   ;;  %v5243_v63 = vld [vmem:[%s5543_s14 + $0x190] sm:$0xff]  ;;  %v5058_v23 = vpack.c.bf16 %v2922_v47, %v2921_v43 }
 0x326   : > { %v2415_v5 = vadd.f32 %v2351_v18, %v1775_v28  ;;  %v8211_v28 = vld [vmem:[#allocation103_spill] sm:$0xff] }
 0x327   : > { %v1912_v45 = vpop.permute.xlu1 %1911  ;;  %vm1396_vm5 = vcmp.eq.s32.totalorder %v6503_v15, %v8211_v28  ;;  %5084 = vmatprep.subr.bf16.mxu1 %v5058_v23  ;;  %5059 = vmatprep.subr.bf16.mxu0 %v5058_v23  ;;  %v5249_v28 = vld [vmem:[%s5338_s11 + $0x1b8] sm:$0xff] }
 0x328   : > { %4749 = vmatprep.mubr.f32.mxu0 %v2415_v5  ;;  %vm2032_vm11 = vcmp.eq.s32.totalorder %v6503_v15, %v1912_v45  ;;  %v1716_v20 = vsel %vm1396_vm5, %v8212_v38, 0.0  ;;  %5088 = vmatpush3.bf16.msra.mxu1 %v5058_v23 }
 0x329   : > { %1618 = vperm.xlu1 %5152, %v5239_v60   ;;  %v2924_v60 = vld [vmem:[%s7724_s4 + $0x38] sm:$0xff]  ;;  %5061 = vmatpush3.bf16.msra.mxu0 %v5058_v23  ;;  %v8223_v23 = vld [vmem:[#allocation173_spill] sm:$0xff] }
 0x32a   : > { %vm1399_vm15 = vcmp.eq.s32.totalorder %v6503_v15, %v8223_v23 }
 0x32b   : > { %v2203_v49 = vpop.permute.xlu1 %2202 }
 0x32c   : > { %v2352_v37 = vsel %vm2032_vm11, %v2203_v49, 0.0  ;;  %v5062_v49 = vpack.c.bf16 %v2924_v60, %v2923_v11  ;;  %v5250_v60 = vld [vmem:[%s5543_s14 + $0x1b8] sm:$0xff] }
 0x32d   : > { %v2416_v22 = vadd.f32 %v2352_v37, %v1776_v54  ;;  %5153 = vset.pattern.permute.xlu1 %v7981_v46  ;;  %v8214_v37 = vld [vmem:[#allocation149_spill] sm:$0xff] }
 0x32e   : > { %1950 = vperm.xlu1 %5153, %v5238_v26   ;;  %5085 = vmatprep.subr.bf16.mxu1 %v5062_v49 }
 0x32f   : > { %4750 = vmatmul.mubr.f32.gmra.mrb[34].mxu0 %v2416_v22  ;;  %v1076_v22 = vsel %vm692_vm6, %v8214_v37, 0.0  ;;  %5063 = vmatprep.subr.bf16.mxu0 %v5062_v49  ;;  %v8225_v37 = vld [vmem:[#allocation174_spill] sm:$0xff] }
 0x330   : > { %v1567_v1 = vpop.permute.xlu1 %1566  ;;  %v1780_v61 = vadd.f32 %v1716_v20, %v1076_v22  ;;  %5089 = vmatpush3.bf16.msra.mxu1 %v5062_v49  ;;  %5065 = vmatpush3.bf16.msra.mxu0 %v5062_v49  ;;  %v8224_v20 = vld [vmem:[#allocation154_spill] sm:$0xff] }
 0x331   : > { %v1713_v19 = vsel %vm1393_vm13, %v1567_v1, 0.0 }
 0x332   : > { %2254 = vperm.xlu1 %5153, %v5240_v10   ;;  %v1777_v27 = vadd.f32 %v1713_v19, %v1073_v39 }
 0x335   : > { %v1915_v59 = vpop.permute.xlu1 %1914 }
 0x336   : > { %5154 = vset.pattern.permute.xlu1 %v7977_v44  ;;  %vm2033_vm14 = vcmp.eq.s32.totalorder %v6503_v15, %v1915_v59 }
 0x337   : > { %v2353_v12 = vsel %vm2033_vm14, %v2207_v36, 0.0  ;;  %1316 = vperm.xlu1 %5154, %v5241_v0   ;;  %v5245_v36 = vld [vmem:[%s5338_s11 + $0x1a8] sm:$0xff] }
 0x338   : > { %v2417_v9 = vadd.f32 %v2353_v12, %v1777_v27  ;;  %v5246_v27 = vld [vmem:[%s5543_s14 + $0x1a8] sm:$0xff] }
 0x339   : > { %v1918_v21 = vpop.permute.xlu1 %1917  ;;  %v8215_v12 = vld [vmem:[#allocation77_spill] sm:$0xff] }
 0x33a   : > { %4752 = vmatprep.mubr.f32.mxu0 %v2417_v9  ;;  %vm2034_vm1 = vcmp.eq.s32.totalorder %v6503_v15, %v1918_v21  ;;  %vm693_vm8 = vcmp.eq.s32.totalorder %v6503_v15, %v8215_v12 }
 0x33b   : > { %1319 = vperm.xlu1 %5154, %v8206_v14   ;;  %v1077_v6 = vsel %vm693_vm8, %v8217_v13, 0.0 }
 0x33d   : > { %v2211_v41 = vpop.permute.xlu1 %2210 }
 0x33e   : > { %v2354_v31 = vsel %vm2034_vm1, %v2211_v41, 0.0  ;;  %v8218_v41 = vld [vmem:[#allocation172_spill] sm:$0xff]  ;;  %vm1400_vm1 = vcmp.eq.s32.totalorder %v6503_v15, %v8225_v37 }
 0x33f   : > { %v2418_v7 = vadd.f32 %v2354_v31, %v1778_v52  ;;  %1626 = vperm.xlu1 %5154, %v5242_v58   ;;  %vm1398_vm11 = vcmp.eq.s32.totalorder %v6503_v15, %v8218_v41  ;;  %v5252_v41 = vld [vmem:[%s5338_s11 + $0x1c0] sm:$0xff] }
 0x340   : > { %v1718_v42 = vsel %vm1398_vm11, %v8219_v25, 0.0  ;;  %v8229_v25 = vld [vmem:[#allocation85_spill] sm:$0xff]  ;;  %v5255_v37 = vld [vmem:[%s5543_s14 + $0x1c0] sm:$0xff] }
 0x341   : > { %4753 = vmatmul.mubr.f32.gmra.mrb[36].mxu0 %v2418_v7  ;;  %vm697_vm5 = vcmp.eq.s32.totalorder %v6503_v15, %v8229_v25 }
 0x342   : > { %v1575_v35 = vpop.permute.xlu1 %1574 }
 0x343   : > { %5155 = vset.pattern.permute.xlu1 %v7981_v46  ;;  %v1715_v4 = vsel %vm1395_vm3, %v1575_v35, 0.0  ;;  %v5247_v35 = vld [vmem:[%s5543_s14 + $0x1a0] sm:$0xff] }
 0x344   : > { %1956 = vperm.xlu1 %5155, %v5241_v0   ;;  %v1779_v26 = vadd.f32 %v1715_v4, %v1075_v34  ;;  %v8216_v0 = vld [vmem:[#allocation106_spill] sm:$0xff]  ;;  %v1782_v4 = vadd.f32 %v1718_v42, %v1078_v16  ;;  %v8230_v42 = vld [vmem:[#allocation23_spill] sm:$0xff]  ;;  %v8231_v16 = vld [vmem:[#allocation84_spill] sm:$0xff] }
 0x345   : > { %vm1397_vm9 = vcmp.eq.s32.totalorder %v6503_v15, %v8216_v0  ;;  %vm1401_vm6 = vcmp.eq.s32.totalorder %v6503_v15, %v8230_v42 }
 0x347   : > { %v1921_v57 = vpop.permute.xlu1 %1920 }
 0x348   : > { %2262 = vperm.xlu1 %5155, %v5243_v63   ;;  %v6948_v40 = vpop.f32.mrb[0].mxu0  ;;  %vm2035_vm4 = vcmp.eq.s32.totalorder %v6503_v15, %v1921_v57 }
 0x349   : > { %v2355_v50 = vsel %vm2035_vm4, %v2215_v32, 0.0  ;;  %v6959_v18 = vpop.f32.mrb[1].mxu0 }
 0x34a   : > { %v2419_v5 = vadd.f32 %v2355_v50, %v1779_v26  ;;  %v5248_v26 = vld [vmem:[%s5338_s11 + $0x1b0] sm:$0xff]  ;;  %v8222_v50 = vld [vmem:[#allocation81_spill] sm:$0xff] }
 0x34b   : > { %v1924_v45 = vpop.permute.xlu1 %1923  ;;  %vm695_vm14 = vcmp.eq.s32.totalorder %v6503_v15, %v8222_v50 }
 0x34c   : > { %5156 = vset.pattern.permute.xlu1 %v7977_v44  ;;  %4755 = vmatprep.mubr.f32.mxu0 %v2419_v5  ;;  %vm2036_vm7 = vcmp.eq.s32.totalorder %v6503_v15, %v1924_v45  ;;  %v1079_v11 = vsel %vm695_vm14, %v8224_v20, 0.0 }
 0x34d   : > { %1322 = vperm.xlu1 %5156, %v5244_v24   ;;  %v6972_v54 = vpop.f32.mrb[2].mxu0 }
 0x34e   : > { %v6975_v1 = vpop.f32.mrb[3].mxu0 }
 0x34f   : > { %v2219_v2 = vpop.permute.xlu1 %2218 }
 0x350   : > { %v2356_v10 = vsel %vm2036_vm7, %v2219_v2, 0.0  ;;  %vm698_vm7 = vcmp.eq.s32.totalorder %v6503_v15, %v8231_v16 }
 0x351   : > { %v2420_v19 = vadd.f32 %v2356_v10, %v1780_v61  ;;  %1325 = vperm.xlu1 %5156, %v5245_v36   ;;  %v6979_v55 = vpop.f32.mrb[4].mxu0  ;;  %v8226_v10 = vld [vmem:[#allocation71_spill] sm:$0xff]  ;;  %v8227_v36 = vld [vmem:[#allocation80_spill] sm:$0xff] }
 0x352   : > { %v6981_v39 = vpop.f32.mrb[5].mxu0  ;;  %vm696_vm2 = vcmp.eq.s32.totalorder %v6503_v15, %v8227_v36 }
 0x353   : > { %4756 = vmatmul.mubr.f32.gmra.mrb[38].mxu0 %v2420_v19  ;;  %v1720_v19 = vsel %vm1400_vm1, %v8226_v10, 0.0 }
 0x354   : > { %v1583_v59 = vpop.permute.xlu1 %1582 }
 0x355   : > { %1634 = vperm.xlu1 %5156, %v5246_v27   ;;  %v6984_v51 = vpop.f32.mrb[6].mxu0  ;;  %v1717_v21 = vsel %vm1397_vm9, %v1583_v59, 0.0  ;;  %v8228_v59 = vld [vmem:[#allocation153_spill] sm:$0xff] }
 0x356   : > { %v6990_v9 = vpop.f32.mrb[7].mxu0  ;;  %v1781_v48 = vadd.f32 %v1717_v21, %v1077_v6  ;;  %v1080_v27 = vsel %vm696_vm2, %v8228_v59, 0.0  ;;  %v5251_v6 = vld [vmem:[%s5543_s14 + $0x1b0] sm:$0xff] }
 0x357   : > { %v1784_v0 = vadd.f32 %v1720_v19, %v1080_v27  ;;  %v5257_v19 = vld [vmem:[%s5338_s11 + $0x1d8] sm:$0xff]  ;;  %v8235_v27 = vld [vmem:[#allocation89_spill] sm:$0xff] }
 0x358   : > { %vm699_vm12 = vcmp.eq.s32.totalorder %v6503_v15, %v8235_v27  ;;  %v8244_v27 = vld [vmem:[#allocation160_spill] sm:$0xff] }
 0x359   : > { %5157 = vset.pattern.permute.xlu1 %v7981_v46  ;;  %v1927_v14 = vpop.permute.xlu1 %1926  ;;  %v6994_v8 = vpop.f32.mrb[8].mxu0 }
 0x35a   : > { %1962 = vperm.xlu1 %5157, %v5244_v24   ;;  %v6996_v52 = vpop.f32.mrb[9].mxu0  ;;  %vm2037_vm10 = vcmp.eq.s32.totalorder %v6503_v15, %v1927_v14  ;;  %v2231_v24 = vpop.permute.xlu0 %2230 }
 0x35b   : > { %v2357_v31 = vsel %vm2037_vm10, %v2223_v3, 0.0 }
 0x35c   : > { %v2421_v7 = vadd.f32 %v2357_v31, %v1781_v48 }
 0x35d   : > { %v1930_v58 = vpop.permute.xlu1 %1929  ;;  %v7001_v56 = vpop.f32.mrb[10].mxu0 }
 0x35e   : > { %2270 = vperm.xlu1 %5157, %v5247_v35   ;;  %v7005_v30 = vpop.f32.mrb[11].mxu0  ;;  %4758 = vmatprep.mubr.f32.mxu0 %v2421_v7  ;;  %vm2038_vm13 = vcmp.eq.s32.totalorder %v6503_v15, %v1930_v58  ;;  %v5253_v7 = vld [vmem:[%s5338_s11 + $0x1c8] sm:$0xff]  ;;  %v1942_v58 = vpop.permute.xlu0 %1941 }
 0x35f   : > { %vm2042_vm8 = vcmp.eq.s32.totalorder %v6503_v15, %v1942_v58  ;;  %v8239_v58 = vld [vmem:[#allocation158_spill] sm:$0xff] }
 0x360   : > { %v1083_v25 = vsel %vm699_vm12, %v8239_v58, 0.0  ;;  %vm2932_vm12 = vcmask 523264  }
 0x361   : > { %v2227_v17 = vpop.permute.xlu1 %2226  ;;  %v7011_v32 = vpop.f32.mrb[12].mxu0 }
 0x362   : > { %v2358_v29 = vsel %vm2038_vm13, %v2227_v17, 0.0  ;;  %5158 = vset.pattern.permute.xlu1 %v7977_v44  ;;  %v7014_v34 = vpop.f32.mrb[13].mxu0 }
 0x363   : > { %v2422_v57 = vadd.f32 %v2358_v29, %v1782_v4  ;;  %1328 = vperm.xlu1 %5158, %v5248_v26   ;;  %v8232_v4 = vld [vmem:[#allocation75_spill] sm:$0xff] }
 0x364   : > { %v1721_v17 = vsel %vm1401_vm6, %v8232_v4, 0.0  ;;  %v8233_v29 = vld [vmem:[#allocation155_spill] sm:$0xff] }
 0x365   : > { %v7017_v63 = vpop.f32.mrb[14].mxu0  ;;  %4759 = vmatmul.mubr.f32.gmra.mrb[40].mxu0 %v2422_v57  ;;  %v1082_v57 = vsel %vm698_vm7, %v8233_v29, 0.0 }
 0x366   : > { %v1591_v43 = vpop.permute.xlu1 %1590  ;;  %v7019_v47 = vpop.f32.mrb[15].mxu0 }
 0x367   : > { %1331 = vperm.xlu1 %5158, %v5249_v28   ;;  %v1719_v5 = vsel %vm1399_vm15, %v1591_v43, 0.0  ;;  %v2243_v28 = vpop.permute.xlu0 %2242 }
 0x368   : > { %v1783_v49 = vadd.f32 %v1719_v5, %v1079_v11  ;;  %v2362_v20 = vsel %vm2042_vm8, %v2243_v28, 0.0  ;;  %v5260_v28 = vld [vmem:[%s5338_s11 + $0x1e0] sm:$0xff] }
 0x369   : > { %v7026_v45 = vpop.f32.mrb[16].mxu0 }
 0x36a   : > { %v7028_v38 = vpop.f32.mrb[17].mxu0 }
 0x36b   : > { %1642 = vperm.xlu1 %5158, %v5250_v60   ;;  %v1933_v33 = vpop.permute.xlu1 %1932  ;;  %v1948_v36 = vpop.permute.xlu0 %1947 }
 0x36c   : > { %vm2039_vm0 = vcmp.eq.s32.totalorder %v6503_v15, %v1933_v33  ;;  %vm2044_vm14 = vcmp.eq.s32.totalorder %v6503_v15, %v1948_v36 }
 0x36d   : > { %v2359_v22 = vsel %vm2039_vm0, %v2231_v24, 0.0 }
 0x36e   : > { %v2423_v61 = vadd.f32 %v2359_v22, %v1783_v49 }
 0x36f   : > { %5159 = vset.pattern.permute.xlu1 %v7981_v46  ;;  %v1936_v2 = vpop.permute.xlu1 %1935  ;;  %v2251_v42 = vpop.permute.xlu0 %2250 }
 0x370   : > { %1968 = vperm.xlu1 %5159, %v5248_v26   ;;  %4761 = vmatprep.mubr.f32.mxu0 %v2423_v61  ;;  %vm2040_vm3 = vcmp.eq.s32.totalorder %v6503_v15, %v1936_v2  ;;  %v8234_v26 = vld [vmem:[#allocation156_spill] sm:$0xff]  ;;  %v5256_v2 = vld [vmem:[%s5338_s11 + $0x1d0] sm:$0xff] }
 0x371   : > { %v1081_v43 = vsel %vm697_vm5, %v8234_v26, 0.0 }
 0x372   : > { %v7040_v12 = vpop.f32.mrb[18].mxu0  ;;  %v1785_v5 = vadd.f32 %v1721_v17, %v1081_v43 }
 0x373   : > { %v2235_v21 = vpop.permute.xlu1 %2234  ;;  %v7043_v3 = vpop.f32.mrb[19].mxu0 }
 0x374   : > { %v2360_v13 = vsel %vm2040_vm3, %v2235_v21, 0.0  ;;  %2278 = vperm.xlu1 %5159, %v5251_v6   ;;  %v5258_v21 = vld [vmem:[%s5543_s14 + $0x1d8] sm:$0xff] }
 0x375   : > { %v2424_v14 = vadd.f32 %v2360_v13, %v1784_v0 }
 0x377   : > { %4762 = vmatmul.mubr.f32.gmra.mrb[42].mxu0 %v2424_v14  ;;  %v8236_v14 = vld [vmem:[#allocation88_spill] sm:$0xff] }
 0x378   : > { %5160 = vset.pattern.permute.xlu1 %v7977_v44  ;;  %v1302_v48 = vpop.permute.xlu1 %1301  ;;  %vm700_vm13 = vcmp.eq.s32.totalorder %v6503_v15, %v8236_v14 }
 0x379   : > { %1334 = vperm.xlu1 %5160, %v5252_v41   ;;  %vm1402_vm4 = vcmp.eq.s32.totalorder %v6503_v15, %v1302_v48  ;;  %v8237_v48 = vld [vmem:[#allocation79_spill] sm:$0xff] }
 0x37c   : > { %v1603_v31 = vpop.permute.xlu1 %1602 }
 0x37d   : > { %1337 = vperm.xlu1 %5160, %v5253_v7   ;;  %v1722_v35 = vsel %vm1402_vm4, %v1603_v31, 0.0  ;;  %v8238_v31 = vld [vmem:[#allocation157_spill] sm:$0xff] }
 0x37e   : > { %v1786_v50 = vadd.f32 %v1722_v35, %v1082_v57  ;;  %v1084_v7 = vsel %vm700_vm13, %v8238_v31, 0.0  ;;  %v5259_v57 = vld [vmem:[%s5543_s14 + $0x1d0] sm:$0xff] }
 0x380   : > { %v2426_v49 = vadd.f32 %v2362_v20, %v1786_v50  ;;  %v5261_v20 = vld [vmem:[%s5338_s11 + $0x1e8] sm:$0xff] }
 0x381   : > { %1650 = vperm.xlu1 %5160, %v5254_v62   ;;  %v1939_v53 = vpop.permute.xlu1 %1938  ;;  %v2364_v62 = vsel %vm2044_vm14, %v2251_v42, 0.0 }
 0x382   : > { %vm2041_vm9 = vcmp.eq.s32.totalorder %v6503_v15, %v1939_v53 }
 0x384   : > { %v7061_v23 = vpop.f32.mrb[20].mxu0 }
 0x385   : > { %5161 = vset.pattern.permute.xlu1 %v7981_v46  ;;  %v2239_v11 = vpop.permute.xlu1 %2238  ;;  %v7065_v60 = vpop.f32.mrb[21].mxu0 }
 0x386   : > { %v2361_v33 = vsel %vm2041_vm9, %v2239_v11, 0.0  ;;  %1974 = vperm.xlu1 %5161, %v5252_v41  }
 0x387   : > { %v2425_v24 = vadd.f32 %v2361_v33, %v1785_v5  ;;  %v1954_v33 = vpop.permute.xlu0 %1953 }
 0x388   : > { %vm2046_vm4 = vcmp.eq.s32.totalorder %v6503_v15, %v1954_v33  ;;  %v8248_v33 = vld [vmem:[#allocation161_spill] sm:$0xff] }
 0x389   : > { %4764 = vmatprep.mubr.f32.mxu0 %v2425_v24  ;;  %v8240_v24 = vld [vmem:[#allocation93_spill] sm:$0xff] }
 0x38a   : > { %2286 = vperm.xlu1 %5161, %v5255_v37   ;;  %v1305_v22 = vpop.permute.xlu1 %1304  ;;  %4765 = vmatmul.mubr.f32.gmra.mrb[44].mxu0 %v2426_v49  ;;  %vm701_vm2 = vcmp.eq.s32.totalorder %v6503_v15, %v8240_v24  ;;  %v5262_v37 = vld [vmem:[%s5543_s14 + $0x1e8] sm:$0xff] }
 0x38b   : > { %vm1403_vm10 = vcmp.eq.s32.totalorder %v6503_v15, %v1305_v22 }
 0x38c   : > { %v1723_v41 = vsel %vm1403_vm10, %v8237_v48, 0.0 }
 0x38d   : > { %v1787_v53 = vadd.f32 %v1723_v41, %v1083_v25  ;;  %v5263_v25 = vld [vmem:[%s5543_s14 + $0x1e0] sm:$0xff] }
 0x38e   : > { %5162 = vset.pattern.permute.xlu1 %v7977_v44  ;;  %v1308_v61 = vpop.permute.xlu1 %1307 }
 0x38f   : > { %1340 = vperm.xlu1 %5162, %v5256_v2   ;;  %vm1404_vm11 = vcmp.eq.s32.totalorder %v6503_v15, %v1308_v61  ;;  %v8241_v61 = vld [vmem:[#allocation92_spill] sm:$0xff] }
 0x390   : > { %vm702_vm3 = vcmp.eq.s32.totalorder %v6503_v15, %v8241_v61 }
 0x392   : > { %v1611_v10 = vpop.permute.xlu1 %1610 }
 0x393   : > { %1343 = vperm.xlu1 %5162, %v5257_v19   ;;  %v1724_v0 = vsel %vm1404_vm11, %v1611_v10, 0.0  ;;  %v8243_v19 = vld [vmem:[#allocation159_spill] sm:$0xff] }
 0x394   : > { %v1788_v35 = vadd.f32 %v1724_v0, %v1084_v7  ;;  %v1086_v36 = vsel %vm702_vm3, %v8243_v19, 0.0  ;;  %v1085_v0 = vsel %vm701_vm2, %v8244_v27, 0.0 }
 0x396   : > { %v7073_v59 = vpop.f32.mrb[22].mxu0  ;;  %v2428_v29 = vadd.f32 %v2364_v62, %v1788_v35 }
 0x397   : > { %1658 = vperm.xlu1 %5162, %v5258_v21   ;;  %v1945_v13 = vpop.permute.xlu1 %1944  ;;  %v7078_v6 = vpop.f32.mrb[23].mxu0 }
 0x398   : > { %vm2043_vm15 = vcmp.eq.s32.totalorder %v6503_v15, %v1945_v13  ;;  %v2259_v21 = vpop.permute.xlu0 %2258 }
 0x399   : > { %v2366_v14 = vsel %vm2046_vm4, %v2259_v21, 0.0  ;;  %v7133_v21 = vld [vmem:[%s7723_s3] ss:$0 sm:$0xff] }
 0x39b   : > { %5163 = vset.pattern.permute.xlu1 %v7981_v46  ;;  %v2247_v16 = vpop.permute.xlu1 %2246 }
 0x39c   : > { %v2363_v4 = vsel %vm2043_vm15, %v2247_v16, 0.0  ;;  %1980 = vperm.xlu1 %5163, %v5256_v2   ;;  %v8242_v2 = vld [vmem:[#allocation179_spill] sm:$0xff] }
 0x39d   : > { %v2427_v17 = vadd.f32 %v2363_v4, %v1787_v53  ;;  %v5264_v53 = vld [vmem:[%s5338_s11 + $0x1f0] sm:$0xff] }
 0x39f   : > { %4767 = vmatprep.mubr.f32.mxu0 %v2427_v17  ;;  %v5265_v17 = vld [vmem:[%s5338_s11 + $0x1f8] sm:$0xff] }
 0x3a0   : > { %2294 = vperm.xlu1 %5163, %v5259_v57   ;;  %v1311_v26 = vpop.permute.xlu1 %1310  ;;  %4768 = vmatmul.mubr.f32.gmra.mrb[46].mxu0 %v2428_v29  ;;  %v1960_v29 = vpop.permute.xlu0 %1959  ;;  %v8245_v57 = vld [vmem:[#allocation97_spill] sm:$0xff] }
 0x3a1   : > { %vm1405_vm0 = vcmp.eq.s32.totalorder %v6503_v15, %v1311_v26  ;;  %vm703_vm8 = vcmp.eq.s32.totalorder %v6503_v15, %v8245_v57  ;;  %vm2048_vm10 = vcmp.eq.s32.totalorder %v6503_v15, %v1960_v29  ;;  %v8251_v29 = vld [vmem:[#allocation100_spill] sm:$0xff]  ;;  %v8252_v57 = vld [vmem:[#allocation181_spill] sm:$0xff] }
 0x3a2   : > { %v1725_v10 = vsel %vm1405_vm0, %v8242_v2, 0.0  ;;  %vm706_vm0 = vcmp.eq.s32.totalorder %v6503_v15, %v8251_v29 }
 0x3a3   : > { %v1789_v48 = vadd.f32 %v1725_v10, %v1085_v0 }
 0x3a4   : > { %5164 = vset.pattern.permute.xlu1 %v7977_v44  ;;  %v1314_v43 = vpop.permute.xlu1 %1313  ;;  %v2267_v10 = vpop.permute.xlu0 %2266 }
 0x3a5   : > { %1346 = vperm.xlu1 %5164, %v5260_v28   ;;  %vm1406_vm1 = vcmp.eq.s32.totalorder %v6503_v15, %v1314_v43 }
 0x3a8   : > { %v1619_v50 = vpop.permute.xlu1 %1618  ;;  %v7091_v5 = vpop.f32.mrb[24].mxu0 }
 0x3a9   : > { %1349 = vperm.xlu1 %5164, %v5261_v20   ;;  %v7094_v11 = vpop.f32.mrb[25].mxu0  ;;  %v1726_v49 = vsel %vm1406_vm1, %v1619_v50, 0.0  ;;  %v8247_v50 = vld [vmem:[#allocation82_spill] sm:$0xff] }
 0x3aa   : > { %v1790_v13 = vadd.f32 %v1726_v49, %v1086_v36  ;;  %v8249_v49 = vld [vmem:[#allocation162_spill] sm:$0xff]  ;;  %v2368_v36 = vsel %vm2048_vm10, %v2267_v10, 0.0 }
 0x3ac   : > { %v2430_v58 = vadd.f32 %v2366_v14, %v1790_v13  ;;  %v5267_v13 = vld [vmem:[%s5543_s14 + $0x1f0] sm:$0xff] }
 0x3ad   : > { %1666 = vperm.xlu1 %5164, %v5262_v37   ;;  %v1951_v22 = vpop.permute.xlu1 %1950  ;;  %v1087_v37 = vsel %vm703_vm8, %v8249_v49, 0.0 }
 0x3ae   : > { %vm2045_vm5 = vcmp.eq.s32.totalorder %v6503_v15, %v1951_v22 }
 0x3b1   : > { %5165 = vset.pattern.permute.xlu1 %v7981_v46  ;;  %v2255_v41 = vpop.permute.xlu1 %2254 }
 0x3b2   : > { %v2365_v31 = vsel %vm2045_vm5, %v2255_v41, 0.0  ;;  %1986 = vperm.xlu1 %5165, %v5260_v28   ;;  %v8246_v28 = vld [vmem:[#allocation96_spill] sm:$0xff] }
 0x3b3   : > { %v2429_v7 = vadd.f32 %v2365_v31, %v1789_v48  ;;  %vm704_vm9 = vcmp.eq.s32.totalorder %v6503_v15, %v8246_v28  ;;  %v8254_v28 = vld [vmem:[#allocation164_spill] sm:$0xff] }
 0x3b4   : > { %v1088_v24 = vsel %vm704_vm9, %v8248_v33, 0.0 }
 0x3b5   : > { %4770 = vmatprep.mubr.f32.mxu0 %v2429_v7 }
 0x3b6   : > { %2302 = vperm.xlu1 %5165, %v5263_v25   ;;  %v1317_v42 = vpop.permute.xlu1 %1316  ;;  %4771 = vmatmul.mubr.f32.gmra.mrb[48].mxu0 %v2430_v58 }
 0x3b7   : > { %vm1407_vm6 = vcmp.eq.s32.totalorder %v6503_v15, %v1317_v42 }
 0x3b8   : > { %v1727_v20 = vsel %vm1407_vm6, %v8247_v50, 0.0 }
 0x3b9   : > { %v1791_v61 = vadd.f32 %v1727_v20, %v1087_v37 }
 0x3ba   : > { %5166 = vset.pattern.permute.xlu1 %v7977_v44  ;;  %v1320_v35 = vpop.permute.xlu1 %1319  ;;  %v7111_v62 = vpop.f32.mrb[26].mxu0  ;;  %v5266_v44 = vld [vmem:[%s5543_s14 + $0x1f8] sm:$0xff] }
 0x3bb   : > { %1352 = vperm.xlu1 %5166, %v5264_v53   ;;  %v7114_v16 = vpop.f32.mrb[27].mxu0  ;;  %vm1408_vm7 = vcmp.eq.s32.totalorder %v6503_v15, %v1320_v35  ;;  %v1966_v35 = vpop.permute.xlu0 %1965 }
 0x3bc   : > { %vm2050_vm1 = vcmp.eq.s32.totalorder %v6503_v15, %v1966_v35 }
 0x3be   : > { %v1627_v4 = vpop.permute.xlu1 %1626 }
 0x3bf   : > { %1355 = vperm.xlu1 %5166, %v5265_v17   ;;  %v1728_v26 = vsel %vm1408_vm7, %v1627_v4, 0.0  ;;  %v2275_v49 = vpop.permute.xlu0 %2274 }
 0x3c0   : > { %v1792_v22 = vadd.f32 %v1728_v26, %v1088_v24 }
 0x3c2   : > { %v2432_v0 = vadd.f32 %v2368_v36, %v1792_v22 }
 0x3c3   : > { %1674 = vperm.xlu1 %5166, %v5266_v44   ;;  %v1957_v43 = vpop.permute.xlu1 %1956 }
 0x3c4   : > { %vm2047_vm11 = vcmp.eq.s32.totalorder %v6503_v15, %v1957_v43 }
 0x3c7   : > { %5168 = vset.pattern.permute.xlu1 %v7981_v46  ;;  %v2263_v2 = vpop.permute.xlu1 %2262 }
 0x3c8   : > { %v2367_v19 = vsel %vm2047_vm11, %v2263_v2, 0.0  ;;  %1992 = vperm.xlu1 %5168, %v5264_v53   ;;  %v8250_v53 = vld [vmem:[#allocation101_spill] sm:$0xff] }
 0x3c9   : > { %v2431_v27 = vadd.f32 %v2367_v19, %v1791_v61  ;;  %vm705_vm15 = vcmp.eq.s32.totalorder %v6503_v15, %v8250_v53  ;;  %v2370_v61 = vsel %vm2050_vm1, %v2275_v49, 0.0 }
 0x3ca   : > { %v1089_v50 = vsel %vm705_vm15, %v8254_v28, 0.0 }
 0x3cb   : > { %4773 = vmatprep.mubr.f32.mxu0 %v2431_v27 }
 0x3cc   : > { %2310 = vperm.xlu1 %5168, %v5267_v13   ;;  %v1323_v14 = vpop.permute.xlu1 %1322  ;;  %v4742_v48 = vpop.f32.mrb[28].mxu0  ;;  %4774 = vmatmul.mubr.f32.gmra.mrb[50].mxu0 %v2432_v0 }
 0x3cd   : > { %v2680_v46 = vadd.f32 %v4742_v48, %v7133_v21  ;;  %v2674_v41 = vpop.f32.mrb[29].mxu0  ;;  %vm1409_vm13 = vcmp.eq.s32.totalorder %v6503_v15, %v1323_v14 }
 0x3ce   : > { %v2675_v31 = vadd.f32 %v7133_v21, %v2674_v41  ;;  %v1729_v26 = vsel %vm1409_vm13, %v8252_v57, 0.0  ;;  %v1972_v41 = vpop.permute.xlu0 %1971 }
 0x3cf   : > { %v2882_v25 = vmax.f32 %v2680_v46, 0.0  ;;  %v1793_v33 = vadd.f32 %v1729_v26, %v1089_v50  ;;  %v8259_v26 = vld [vmem:[#allocation166_spill] sm:$0xff]  ;;  %vm2052_vm7 = vcmp.eq.s32.totalorder %v6503_v15, %v1972_v41 }
 0x3d0   : > { %v2881_v7 = vmax.f32 %v2675_v31, 0.0  ;;  %2314 = vperm.xlu1 %5168, %v5266_v44   ;;  %v1326_v58 = vpop.permute.xlu1 %1325  ;;  %v8253_v44 = vld [vmem:[#allocation163_spill] sm:$0xff]  ;;  %v8255_v31 = vld [vmem:[#allocation105_spill] sm:$0xff] }
 0x3d1   : > { %vm1410_vm14 = vcmp.eq.s32.totalorder %v6503_v15, %v1326_v58  ;;  %v1090_v43 = vsel %vm706_vm0, %v8253_v44, 0.0  ;;  %vm707_vm5 = vcmp.eq.s32.totalorder %v6503_v15, %v8255_v31 }
 0x3d2   : > { %4852 = vmatprep.mubr.msk.f32.mxu1 %vm2932_vm12, %v2881_v7  ;;  %v1091_v44 = vsel %vm707_vm5, %v8259_v26, 0.0 }
 0x3d3   : > { %4853 = vmatmul.mubr.msk.f32.vlgmr.msra.gmra.mrb[0].mxu1 %vm2932_vm12, %v2882_v25  ;;  %v8256_v25 = vld [vmem:[#allocation104_spill] sm:$0xff] }
 0x3d4   : > { %v1635_v42 = vpop.permute.xlu1 %1634  ;;  %vm708_vm6 = vcmp.eq.s32.totalorder %v6503_v15, %v8256_v25 }
 0x3d5   : > { %v1730_v4 = vsel %vm1410_vm14, %v1635_v42, 0.0  ;;  %v8257_v42 = vld [vmem:[#allocation86_spill] sm:$0xff] }
 0x3d6   : > { %v1794_v20 = vadd.f32 %v1730_v4, %v1090_v43  ;;  %v8258_v4 = vld [vmem:[#allocation165_spill] sm:$0xff] }
 0x3d8   : > { %v2434_v36 = vadd.f32 %v2370_v61, %v1794_v20 }
 0x3d9   : > { %v1963_v17 = vpop.permute.xlu1 %1962 }
 0x3da   : > { %vm2049_vm2 = vcmp.eq.s32.totalorder %v6503_v15, %v1963_v17  ;;  %v1092_v17 = vsel %vm708_vm6, %v8258_v4, 0.0 }
 0x3dd   : > { %v2271_v24 = vpop.permute.xlu1 %2270 }
 0x3de   : > { %v2369_v37 = vsel %vm2049_vm2, %v2271_v24, 0.0  ;;  %v4745_v22 = vpop.f32.mrb[30].mxu0 }
 0x3df   : > { %v2433_v2 = vadd.f32 %v2369_v37, %v1793_v33  ;;  %v2690_v10 = vadd.f32 %v4745_v22, %v7133_v21  ;;  %v2684_v19 = vpop.f32.mrb[31].mxu0  ;;  %v2283_v33 = vpop.permute.xlu0 %2282 }
 0x3e0   : > { %v2685_v27 = vadd.f32 %v7133_v21, %v2684_v19  ;;  %v2372_v37 = vsel %vm2052_vm7, %v2283_v33, 0.0 }
 0x3e1   : > { %4776 = vmatprep.mubr.f32.mxu0 %v2433_v2  ;;  %v2884_v14 = vmax.f32 %v2690_v10, 0.0 }
 0x3e2   : > { %v2883_v0 = vmax.f32 %v2685_v27, 0.0  ;;  %v1329_v13 = vpop.permute.xlu1 %1328  ;;  %4777 = vmatmul.mubr.f32.gmra.mrb[52].mxu0 %v2434_v36 }
 0x3e3   : > { %vm1411_vm3 = vcmp.eq.s32.totalorder %v6503_v15, %v1329_v13 }
 0x3e4   : > { %4855 = vmatprep.mubr.msk.f32.mxu1 %vm2932_vm12, %v2883_v0  ;;  %v1731_v35 = vsel %vm1411_vm3, %v8257_v42, 0.0 }
 0x3e5   : > { %4856 = vmatmul.mubr.msk.f32.gmra.mrb[2].mxu1 %vm2932_vm12, %v2884_v14  ;;  %v1795_v50 = vadd.f32 %v1731_v35, %v1091_v44  ;;  %v1978_v14 = vpop.permute.xlu0 %1977  ;;  %v8263_v35 = vld [vmem:[#allocation167_spill] sm:$0xff] }
 0x3e6   : > { %v1332_v48 = vpop.permute.xlu1 %1331  ;;  %vm2054_vm14 = vcmp.eq.s32.totalorder %v6503_v15, %v1978_v14 }
 0x3e7   : > { %vm1412_vm4 = vcmp.eq.s32.totalorder %v6503_v15, %v1332_v48 }
 0x3ea   : > { %v1643_v46 = vpop.permute.xlu1 %1642 }
 0x3eb   : > { %v1732_v7 = vsel %vm1412_vm4, %v1643_v46, 0.0  ;;  %v8260_v46 = vld [vmem:[#allocation108_spill] sm:$0xff] }
 0x3ec   : > { %v1796_v43 = vadd.f32 %v1732_v7, %v1092_v17  ;;  %vm709_vm11 = vcmp.eq.s32.totalorder %v6503_v15, %v8260_v46  ;;  %v8261_v7 = vld [vmem:[#allocation107_spill] sm:$0xff]  ;;  %v8264_v17 = vld [vmem:[#allocation168_spill] sm:$0xff]  ;;  %v8267_v46 = vld [vmem:[#allocation90_spill] sm:$0xff] }
 0x3ed   : > { %vm710_vm13 = vcmp.eq.s32.totalorder %v6503_v15, %v8261_v7 }
 0x3ee   : > { %v2436_v2 = vadd.f32 %v2372_v37, %v1796_v43  ;;  %v2291_v43 = vpop.permute.xlu0 %2290 }
 0x3ef   : > { %v1969_v58 = vpop.permute.xlu1 %1968 }
 0x3f0   : > { %v4748_v53 = vpop.f32.mrb[32].mxu0  ;;  %vm2051_vm8 = vcmp.eq.s32.totalorder %v6503_v15, %v1969_v58  ;;  %v8262_v58 = vld [vmem:[#allocation183_spill] sm:$0xff] }
 0x3f1   : > { %v2700_v29 = vadd.f32 %v4748_v53, %v7133_v21  ;;  %v2694_v57 = vpop.f32.mrb[33].mxu0  ;;  %v1094_v53 = vsel %vm710_vm13, %v8263_v35, 0.0 }
 0x3f2   : > { %v2695_v28 = vadd.f32 %v7133_v21, %v2694_v57 }
 0x3f3   : > { %v2279_v20 = vpop.permute.xlu1 %2278  ;;  %v2886_v22 = vmax.f32 %v2700_v29, 0.0  ;;  %v1093_v29 = vsel %vm709_vm11, %v8264_v17, 0.0 }
 0x3f4   : > { %v2885_v24 = vmax.f32 %v2695_v28, 0.0  ;;  %v2371_v49 = vsel %vm2051_vm8, %v2279_v20, 0.0 }
 0x3f5   : > { %v2435_v61 = vadd.f32 %v2371_v49, %v1795_v50  ;;  %v2374_v50 = vsel %vm2054_vm14, %v2291_v43, 0.0 }
 0x3f6   : > { %4858 = vmatprep.mubr.msk.f32.mxu1 %vm2932_vm12, %v2885_v24 }
 0x3f7   : > { %4779 = vmatprep.mubr.f32.mxu0 %v2435_v61  ;;  %4859 = vmatmul.mubr.msk.f32.gmra.mrb[4].mxu1 %vm2932_vm12, %v2886_v22 }
 0x3f8   : > { %v1335_v10 = vpop.permute.xlu1 %1334  ;;  %4780 = vmatmul.mubr.f32.gmra.mrb[54].mxu0 %v2436_v2 }
 0x3f9   : > { %vm1413_vm9 = vcmp.eq.s32.totalorder %v6503_v15, %v1335_v10 }
 0x3fa   : > { %v1733_v25 = vsel %vm1413_vm9, %v8262_v58, 0.0  ;;  %v8269_v58 = vld [vmem:[#allocation169_spill] sm:$0xff] }
 0x3fb   : > { %v1797_v26 = vadd.f32 %v1733_v25, %v1093_v29 }
 0x3fc   : > { %v1338_v19 = vpop.permute.xlu1 %1337 }
 0x3fd   : > { %vm1414_vm10 = vcmp.eq.s32.totalorder %v6503_v15, %v1338_v19 }
 0x400   : > { %v1651_v36 = vpop.permute.xlu1 %1650 }
 0x401   : > { %v1734_v41 = vsel %vm1414_vm10, %v1651_v36, 0.0 }
 0x402   : > { %v4751_v27 = vpop.f32.mrb[34].mxu0  ;;  %v1798_v57 = vadd.f32 %v1734_v41, %v1094_v53 }
 0x403   : > { %v2710_v0 = vadd.f32 %v4751_v27, %v7133_v21  ;;  %v2704_v13 = vpop.f32.mrb[35].mxu0  ;;  %v1984_v27 = vpop.permute.xlu0 %1983 }
 0x404   : > { %v2705_v48 = vadd.f32 %v7133_v21, %v2704_v13  ;;  %v2438_v33 = vadd.f32 %v2374_v50, %v1798_v57  ;;  %vm2056_vm4 = vcmp.eq.s32.totalorder %v6503_v15, %v1984_v27 }
 0x405   : > { %v1975_v31 = vpop.permute.xlu1 %1974  ;;  %v2888_v4 = vmax.f32 %v2710_v0, 0.0  ;;  %v8265_v0 = vld [vmem:[#allocation110_spill] sm:$0xff] }
 0x406   : > { %v2887_v42 = vmax.f32 %v2705_v48, 0.0  ;;  %vm2053_vm15 = vcmp.eq.s32.totalorder %v6503_v15, %v1975_v31  ;;  %vm711_vm2 = vcmp.eq.s32.totalorder %v6503_v15, %v8265_v0  ;;  %v8266_v48 = vld [vmem:[#allocation109_spill] sm:$0xff]  ;;  %v8268_v31 = vld [vmem:[#allocation18_spill] sm:$0xff] }
 0x407   : > { %vm712_vm3 = vcmp.eq.s32.totalorder %v6503_v15, %v8266_v48  ;;  %v1095_v25 = vsel %vm711_vm2, %v8269_v58, 0.0  ;;  %v8273_v0 = vld [vmem:[#allocation22_spill] sm:$0xff] }
 0x408   : > { %4861 = vmatprep.mubr.msk.f32.mxu1 %vm2932_vm12, %v2887_v42  ;;  %v1096_v7 = vsel %vm712_vm3, %v8268_v31, 0.0 }
 0x409   : > { %v2287_v44 = vpop.permute.xlu1 %2286  ;;  %4862 = vmatmul.mubr.msk.f32.gmra.mrb[6].mxu1 %vm2932_vm12, %v2888_v4  ;;  %v2299_v4 = vpop.permute.xlu0 %2298 }
 0x40a   : > { %v2373_v28 = vsel %vm2053_vm15, %v2287_v44, 0.0  ;;  %v2376_v29 = vsel %vm2056_vm4, %v2299_v4, 0.0 }
 0x40b   : > { %v2437_v20 = vadd.f32 %v2373_v28, %v1797_v26 }
 0x40d   : > { %4782 = vmatprep.mubr.f32.mxu0 %v2437_v20 }
 0x40e   : > { %v1341_v24 = vpop.permute.xlu1 %1340  ;;  %4783 = vmatmul.mubr.f32.gmra.mrb[56].mxu0 %v2438_v33 }
 0x40f   : > { %vm1415_vm0 = vcmp.eq.s32.totalorder %v6503_v15, %v1341_v24 }
 0x410   : > { %v1735_v41 = vsel %vm1415_vm0, %v8267_v46, 0.0 }
 0x411   : > { %v1799_v35 = vadd.f32 %v1735_v41, %v1095_v25 }
 0x412   : > { %v1344_v49 = vpop.permute.xlu1 %1343 }
 0x413   : > { %vm1416_vm1 = vcmp.eq.s32.totalorder %v6503_v15, %v1344_v49 }
 0x414   : > { %v4754_v37 = vpop.f32.mrb[36].mxu0 }
 0x415   : > { %v2720_v22 = vadd.f32 %v4754_v37, %v7133_v21  ;;  %v2714_v61 = vpop.f32.mrb[37].mxu0 }
 0x416   : > { %v2715_v2 = vadd.f32 %v7133_v21, %v2714_v61  ;;  %v1659_v10 = vpop.permute.xlu1 %1658  ;;  %v8270_v61 = vld [vmem:[#allocation112_spill] sm:$0xff] }
 0x417   : > { %v2890_v36 = vmax.f32 %v2720_v22, 0.0  ;;  %v1736_v13 = vsel %vm1416_vm1, %v1659_v10, 0.0  ;;  %v1990_v22 = vpop.permute.xlu0 %1989  ;;  %vm713_vm8 = vcmp.eq.s32.totalorder %v6503_v15, %v8270_v61 }
 0x418   : > { %v2889_v19 = vmax.f32 %v2715_v2, 0.0  ;;  %v1800_v42 = vadd.f32 %v1736_v13, %v1096_v7  ;;  %vm2058_vm10 = vcmp.eq.s32.totalorder %v6503_v15, %v1990_v22 }
 0x41a   : > { %4864 = vmatprep.mubr.msk.f32.mxu1 %vm2932_vm12, %v2889_v19  ;;  %v2440_v26 = vadd.f32 %v2376_v29, %v1800_v42  ;;  %v8271_v19 = vld [vmem:[#allocation111_spill] sm:$0xff] }
 0x41b   : > { %v1981_v14 = vpop.permute.xlu1 %1980  ;;  %4865 = vmatmul.mubr.msk.f32.gmra.mrb[8].mxu1 %vm2932_vm12, %v2890_v36  ;;  %vm714_vm9 = vcmp.eq.s32.totalorder %v6503_v15, %v8271_v19  ;;  %v8272_v36 = vld [vmem:[#allocation185_spill] sm:$0xff]  ;;  %v2307_v7 = vpop.permute.xlu0 %2306 }
 0x41c   : > { %vm2055_vm5 = vcmp.eq.s32.totalorder %v6503_v15, %v1981_v14  ;;  %v1098_v13 = vsel %vm714_vm9, %v8273_v0, 0.0  ;;  %v8274_v14 = vld [vmem:[#allocation170_spill] sm:$0xff]  ;;  %v2378_v25 = vsel %vm2058_vm10, %v2307_v7, 0.0 }
 0x41d   : > { %v1097_v48 = vsel %vm713_vm8, %v8274_v14, 0.0  ;;  %v8278_v14 = vld [vmem:[#allocation113_spill] sm:$0xff] }
 0x41e   : > { %vm716_vm1 = vcmp.eq.s32.totalorder %v6503_v15, %v8278_v14 }
 0x41f   : > { %v2295_v53 = vpop.permute.xlu1 %2294 }
 0x420   : > { %v2375_v17 = vsel %vm2055_vm5, %v2295_v53, 0.0 }
 0x421   : > { %v2439_v57 = vadd.f32 %v2375_v17, %v1799_v35 }
 0x423   : > { %4785 = vmatprep.mubr.f32.mxu0 %v2439_v57 }
 0x424   : > { %v1347_v44 = vpop.permute.xlu1 %1346  ;;  %4786 = vmatmul.mubr.f32.gmra.mrb[58].mxu0 %v2440_v26 }
 0x425   : > { %vm1417_vm6 = vcmp.eq.s32.totalorder %v6503_v15, %v1347_v44 }
 0x426   : > { %v4757_v43 = vpop.f32.mrb[38].mxu0  ;;  %v1737_v27 = vsel %vm1417_vm6, %v8272_v36, 0.0  ;;  %v1996_v36 = vpop.permute.xlu0 %1995 }
 0x427   : > { %v2730_v28 = vadd.f32 %v4757_v43, %v7133_v21  ;;  %v2724_v50 = vpop.f32.mrb[39].mxu0  ;;  %v1801_v41 = vadd.f32 %v1737_v27, %v1097_v48  ;;  %vm2060_vm2 = vcmp.eq.s32.totalorder %v6503_v15, %v1996_v36 }
 0x428   : > { %v2725_v20 = vadd.f32 %v7133_v21, %v2724_v50  ;;  %v1350_v33 = vpop.permute.xlu1 %1349  ;;  %v8275_v50 = vld [vmem:[#allocation114_spill] sm:$0xff] }
 0x429   : > { %v2892_v49 = vmax.f32 %v2730_v28, 0.0  ;;  %vm1418_vm7 = vcmp.eq.s32.totalorder %v6503_v15, %v1350_v33  ;;  %vm715_vm14 = vcmp.eq.s32.totalorder %v6503_v15, %v8275_v50  ;;  %v8276_v33 = vld [vmem:[#allocation94_spill] sm:$0xff] }
 0x42a   : > { %v2891_v24 = vmax.f32 %v2725_v20, 0.0 }
 0x42c   : > { %v1667_v37 = vpop.permute.xlu1 %1666  ;;  %4867 = vmatprep.mubr.msk.f32.mxu1 %vm2932_vm12, %v2891_v24 }
 0x42d   : > { %4868 = vmatmul.mubr.msk.f32.gmra.mrb[10].mxu1 %vm2932_vm12, %v2892_v49  ;;  %v1738_v2 = vsel %vm1418_vm7, %v1667_v37, 0.0  ;;  %v8277_v49 = vld [vmem:[#allocation171_spill] sm:$0xff] }
 0x42e   : > { %v1802_v46 = vadd.f32 %v1738_v2, %v1098_v13  ;;  %v1099_v37 = vsel %vm715_vm14, %v8277_v49, 0.0  ;;  %v2580_v49 = vadd.f32 %v6994_v8, %v7133_v21  ;;  %v2595_v8 = vadd.f32 %v7133_v21, %v7014_v34 }
 0x42f   : > { %v2610_v34 = vadd.f32 %v7017_v63, %v7133_v21 }
 0x430   : > { %v2442_v35 = vadd.f32 %v2378_v25, %v1802_v46  ;;  %v8279_v46 = vld [vmem:[#allocation26_spill] sm:$0xff]  ;;  %v2865_v36 = vmax.f32 %v2595_v8, 0.0  ;;  %v3581_v8 = vld [vmem:[%s7726_s6 + $0x38] sm:$0xff] }
 0x431   : > { %v1987_v10 = vpop.permute.xlu1 %1986 }
 0x432   : > { %vm2057_vm11 = vcmp.eq.s32.totalorder %v6503_v15, %v1987_v10 }
 0x435   : > { %v2303_v31 = vpop.permute.xlu1 %2302 }
 0x436   : > { %v2377_v58 = vsel %vm2057_vm11, %v2303_v31, 0.0  ;;  %v2535_v31 = vadd.f32 %v7133_v21, %v6959_v18  ;;  %v2545_v18 = vadd.f32 %v7133_v21, %v6975_v1 }
 0x437   : > { %v2441_v42 = vadd.f32 %v2377_v58, %v1801_v41  ;;  %v1100_v41 = vsel %vm716_vm1, %v8279_v46, 0.0 }
 0x438   : > { %v4760_v53 = vpop.f32.mrb[40].mxu0 }
 0x439   : > { %v2740_v4 = vadd.f32 %v4760_v53, %v7133_v21  ;;  %v2734_v17 = vpop.f32.mrb[41].mxu0  ;;  %4788 = vmatprep.mubr.f32.mxu0 %v2441_v42  ;;  %v2540_v53 = vadd.f32 %v6948_v40, %v7133_v21 }
 0x43a   : > { %v2735_v29 = vadd.f32 %v7133_v21, %v2734_v17  ;;  %v1353_v57 = vpop.permute.xlu1 %1352  ;;  %4789 = vmatmul.mubr.f32.gmra.mrb[60].mxu0 %v2442_v35  ;;  %v2853_v17 = vmax.f32 %v2535_v31, 0.0  ;;  %v2630_v31 = vadd.f32 %v7040_v12, %v7133_v21  ;;  %v2645_v12 = vadd.f32 %v7133_v21, %v7078_v6 }
 0x43b   : > { %v2894_v44 = vmax.f32 %v2740_v4, 0.0  ;;  %vm1419_vm13 = vcmp.eq.s32.totalorder %v6503_v15, %v1353_v57  ;;  %v2855_v57 = vmax.f32 %v2545_v18, 0.0  ;;  %v2660_v6 = vadd.f32 %v7091_v5, %v7133_v21 }
 0x43c   : > { %v2893_v26 = vmax.f32 %v2735_v29, 0.0  ;;  %v1739_v24 = vsel %vm1419_vm13, %v8276_v33, 0.0  ;;  %v2550_v29 = vadd.f32 %v6972_v54, %v7133_v21 }
 0x43d   : > { %v1803_v61 = vadd.f32 %v1739_v24, %v1099_v37 }
 0x43e   : > { %v1356_v43 = vpop.permute.xlu1 %1355  ;;  %4870 = vmatprep.mubr.msk.f32.mxu1 %vm2932_vm12, %v2893_v26  ;;  %v2555_v26 = vadd.f32 %v7133_v21, %v6981_v39  ;;  %v2856_v40 = vmax.f32 %v2550_v29, 0.0  ;;  %v2570_v39 = vadd.f32 %v6984_v51, %v7133_v21  ;;  %v2665_v29 = vadd.f32 %v7133_v21, %v7114_v16 }
 0x43f   : > { %4871 = vmatmul.mubr.msk.f32.gmra.mrb[12].mxu1 %vm2932_vm12, %v2894_v44  ;;  %vm1420_vm15 = vcmp.eq.s32.totalorder %v6503_v15, %v1356_v43  ;;  %v2560_v44 = vadd.f32 %v6979_v55, %v7133_v21  ;;  %v2565_v43 = vadd.f32 %v7133_v21, %v6990_v9 }
 0x440   : > { %v2857_v1 = vmax.f32 %v2555_v26, 0.0  ;;  %v2860_v9 = vmax.f32 %v2570_v39, 0.0 }
 0x441   : > { %v2858_v54 = vmax.f32 %v2560_v44, 0.0  ;;  %v2859_v50 = vmax.f32 %v2565_v43, 0.0 }
 0x442   : > { %v1675_v28 = vpop.permute.xlu1 %1674 }
 0x443   : > { %v1740_v27 = vsel %vm1420_vm15, %v1675_v28, 0.0 }
 0x444   : > { %v1804_v58 = vadd.f32 %v1740_v27, %v1100_v41  ;;  %v2605_v27 = vadd.f32 %v7133_v21, %v7019_v47  ;;  %v2620_v47 = vadd.f32 %v7026_v45, %v7133_v21  ;;  %v2635_v45 = vadd.f32 %v7133_v21, %v7065_v60 }
 0x447   : > { %v1993_v20 = vpop.permute.xlu1 %1992 }
 0x448   : > { %vm2059_vm0 = vcmp.eq.s32.totalorder %v6503_v15, %v1993_v20  ;;  %v2854_v15 = vmax.f32 %v2540_v53, 0.0  ;;  %v2575_v20 = vadd.f32 %v7133_v21, %v6996_v52  ;;  %v2862_v52 = vmax.f32 %v2580_v49, 0.0 }
 0x449   : > { %v2873_v53 = vmax.f32 %v2635_v45, 0.0 }
 0x44a   : > { %v4763_v22 = vpop.f32.mrb[42].mxu0  ;;  %v2861_v51 = vmax.f32 %v2575_v20, 0.0 }
 0x44b   : > { %v2750_v2 = vadd.f32 %v4763_v22, %v7133_v21  ;;  %v2311_v10 = vpop.permute.xlu1 %2310  ;;  %v2744_v19 = vpop.f32.mrb[43].mxu0  ;;  %v2585_v22 = vadd.f32 %v7133_v21, %v7005_v30 }
 0x44c   : > { %v2379_v0 = vsel %vm2059_vm0, %v2311_v10, 0.0  ;;  %v2745_v13 = vadd.f32 %v7133_v21, %v2744_v19  ;;  %v2600_v19 = vadd.f32 %v7011_v32, %v7133_v21  ;;  %v2868_v32 = vmax.f32 %v2610_v34, 0.0 }
 0x44d   : > { %v2443_v48 = vadd.f32 %v2379_v0, %v1803_v61  ;;  %v2896_v25 = vmax.f32 %v2750_v2, 0.0  ;;  %v2590_v2 = vadd.f32 %v7001_v56, %v7133_v21  ;;  %v2863_v10 = vmax.f32 %v2585_v22, 0.0  ;;  %v3578_v22 = vld [vmem:[%s7726_s6 + $0x20] sm:$0xff] }
 0x44e   : > { %v2895_v7 = vmax.f32 %v2745_v13, 0.0  ;;  %v2866_v56 = vmax.f32 %v2600_v19, 0.0  ;;  %v2867_v0 = vmax.f32 %v2605_v27, 0.0  ;;  %v2615_v13 = vadd.f32 %v7133_v21, %v7028_v38 }
 0x44f   : > { %v2315_v42 = vpop.permute.xlu1 %2314  ;;  %4791 = vmatprep.mubr.f32.mxu0 %v2443_v48  ;;  %v2864_v30 = vmax.f32 %v2590_v2, 0.0  ;;  %v2625_v48 = vadd.f32 %v7133_v21, %v7043_v3  ;;  %v2870_v38 = vmax.f32 %v2620_v47, 0.0 }
 0x450   : > { %v2380_v35 = vsel %vm2060_vm2, %v2315_v42, 0.0  ;;  %4873 = vmatprep.mubr.msk.f32.mxu1 %vm2932_vm12, %v2895_v7  ;;  %v2869_v14 = vmax.f32 %v2615_v13, 0.0  ;;  %v2872_v42 = vmax.f32 %v2630_v31, 0.0 }
 0x451   : > { %v2444_v4 = vadd.f32 %v2380_v35, %v1804_v58  ;;  %4874 = vmatmul.mubr.msk.f32.gmra.mrb[14].mxu1 %vm2932_vm12, %v2896_v25  ;;  %v2871_v58 = vmax.f32 %v2625_v48, 0.0  ;;  %v2640_v35 = vadd.f32 %v7061_v23, %v7133_v21  ;;  %v2655_v23 = vadd.f32 %v7133_v21, %v7094_v11 }
 0x452   : > { %v2670_v11 = vadd.f32 %v7111_v62, %v7133_v21  ;;  %v3574_v62 = vld [vmem:[%s7726_s6] sm:$0xff] }
 0x453   : > { %4792 = vmatmul.mubr.f32.gmra.mrb[62].mxu0 %v2444_v4  ;;  %v2874_v60 = vmax.f32 %v2640_v35, 0.0  ;;  %v2650_v4 = vadd.f32 %v7073_v59, %v7133_v21  ;;  %v2878_v59 = vmax.f32 %v2660_v6, 0.0 }
 0x454   : > { %4810 = vmatprep.mubr.msk.f32.mxu0 %vm2932_vm12, %v2853_v17  ;;  %v2875_v17 = vmax.f32 %v2645_v12, 0.0  ;;  %v2880_v26 = vmax.f32 %v2670_v11, 0.0 }
 0x455   : > { %v2876_v18 = vmax.f32 %v2650_v4, 0.0 }
 0x457   : > { %4811 = vmatmul.mubr.msk.f32.vlgmr.msra.gmra.mrb[64].mxu0 %vm2932_vm12, %v2854_v15  ;;  %v2877_v15 = vmax.f32 %v2655_v23, 0.0 }
 0x458   : > { %4813 = vmatprep.mubr.msk.f32.mxu0 %vm2932_vm12, %v2855_v57  ;;  %v2879_v57 = vmax.f32 %v2665_v29, 0.0 }
 0x45b   : > { %4814 = vmatmul.mubr.msk.f32.gmra.mrb[66].mxu0 %vm2932_vm12, %v2856_v40 }
 0x45c   : > { %4816 = vmatprep.mubr.msk.f32.mxu0 %vm2932_vm12, %v2857_v1 }
 0x45d   : > { %v4766_v28 = vpop.f32.mrb[44].mxu0 }
 0x45e   : > { %v2760_v33 = vadd.f32 %v4766_v28, %v7133_v21  ;;  %v2754_v55 = vpop.f32.mrb[45].mxu0 }
 0x45f   : > { %v2755_v24 = vadd.f32 %v7133_v21, %v2754_v55  ;;  %4817 = vmatmul.mubr.msk.f32.gmra.mrb[68].mxu0 %vm2932_vm12, %v2858_v54  ;;  %v3575_v54 = vld [vmem:[%s7726_s6 + $0x8] sm:$0xff]  ;;  %v3576_v55 = vld [vmem:[%s7726_s6 + $0x10] sm:$0xff] }
 0x460   : > { %4819 = vmatprep.mubr.msk.f32.mxu0 %vm2932_vm12, %v2859_v50  ;;  %v2898_v61 = vmax.f32 %v2760_v33, 0.0  ;;  %v5066_v39 = vpack.c.bf16 %v3575_v54, %v3574_v62 }
 0x461   : > { %v2897_v37 = vmax.f32 %v2755_v24, 0.0  ;;  %v3577_v24 = vld [vmem:[%s7726_s6 + $0x18] sm:$0xff] }
 0x462   : > { %5067 = vmatprep.subr.bf16.mxu1 %v5066_v39  ;;  %v5070_v49 = vpack.c.bf16 %v3577_v24, %v3576_v55 }
 0x463   : > { %4820 = vmatmul.mubr.msk.f32.gmra.mrb[70].mxu0 %vm2932_vm12, %v2860_v9  ;;  %4876 = vmatprep.mubr.msk.f32.mxu1 %vm2932_vm12, %v2897_v37 }
 0x464   : > { %4822 = vmatprep.mubr.msk.f32.mxu0 %vm2932_vm12, %v2861_v51  ;;  %4877 = vmatmul.mubr.msk.f32.gmra.mrb[16].mxu1 %vm2932_vm12, %v2898_v61  ;;  %v3579_v61 = vld [vmem:[%s7726_s6 + $0x28] sm:$0xff] }
 0x465   : > { %5069 = vmatpush3.bf16.msra.mxu1 %v5066_v39  ;;  %v5074_v2 = vpack.c.bf16 %v3579_v61, %v3578_v22 }
 0x466   : > { %5071 = vmatprep.subr.bf16.mxu1 %v5070_v49 }
 0x467   : > { %4823 = vmatmul.mubr.msk.f32.gmra.mrb[72].mxu0 %vm2932_vm12, %v2862_v52 }
 0x468   : > { %4825 = vmatprep.mubr.msk.f32.mxu0 %vm2932_vm12, %v2863_v10  ;;  %v3580_v10 = vld [vmem:[%s7726_s6 + $0x30] sm:$0xff] }
 0x469   : > { %5073 = vmatpush3.bf16.msra.mxu1 %v5070_v49 }
 0x46a   : > { %5075 = vmatprep.subr.bf16.mxu1 %v5074_v2 }
 0x46b   : > { %4826 = vmatmul.mubr.msk.f32.gmra.mrb[74].mxu0 %vm2932_vm12, %v2864_v30  ;;  %v5078_v30 = vpack.c.bf16 %v3581_v8, %v3580_v10 }
 0x46c   : > { %4828 = vmatprep.mubr.msk.f32.mxu0 %vm2932_vm12, %v2865_v36 }
 0x46d   : > { %5077 = vmatpush3.bf16.msra.mxu1 %v5074_v2 }
 0x46e   : > { %5079 = vmatprep.subr.bf16.mxu1 %v5078_v30 }
 0x46f   : > { %4829 = vmatmul.mubr.msk.f32.gmra.mrb[76].mxu0 %vm2932_vm12, %v2866_v56 }
 0x470   : > { %4831 = vmatprep.mubr.msk.f32.mxu0 %vm2932_vm12, %v2867_v0 }
 0x471   : > { %5081 = vmatpush3.bf16.msra.mxu1 %v5078_v30 }
 0x473   : > { %v4769_v46 = vpop.f32.mrb[46].mxu0  ;;  %4832 = vmatmul.mubr.msk.f32.gmra.mrb[78].mxu0 %vm2932_vm12, %v2868_v32 }
 0x474   : > { %v2770_v63 = vadd.f32 %v4769_v46, %v7133_v21  ;;  %v2764_v41 = vpop.f32.mrb[47].mxu0  ;;  %4834 = vmatprep.mubr.msk.f32.mxu0 %vm2932_vm12, %v2869_v14 }
 0x475   : > { %v2765_v7 = vadd.f32 %v7133_v21, %v2764_v41 }
 0x476   : > { %v2900_v3 = vmax.f32 %v2770_v63, 0.0 }
 0x477   : > { %v2899_v25 = vmax.f32 %v2765_v7, 0.0  ;;  %4835 = vmatmul.mubr.msk.f32.gmra.mrb[80].mxu0 %vm2932_vm12, %v2870_v38 }
 0x478   : > { %4837 = vmatprep.mubr.msk.f32.mxu0 %vm2932_vm12, %v2871_v58 }
 0x479   : > { %4879 = vmatprep.mubr.msk.f32.mxu1 %vm2932_vm12, %v2899_v25 }
 0x47a   : > { %4880 = vmatmul.mubr.msk.f32.gmra.mrb[18].mxu1 %vm2932_vm12, %v2900_v3 }
 0x47b   : > { %4838 = vmatmul.mubr.msk.f32.gmra.mrb[82].mxu0 %vm2932_vm12, %v2872_v42 }
 0x47c   : > { %4840 = vmatprep.mubr.msk.f32.mxu0 %vm2932_vm12, %v2873_v53 }
 0x47f   : > { %4841 = vmatmul.mubr.msk.f32.gmra.mrb[84].mxu0 %vm2932_vm12, %v2874_v60 }
 0x480   : > { %4843 = vmatprep.mubr.msk.f32.mxu0 %vm2932_vm12, %v2875_v17 }
 0x483   : > { %4844 = vmatmul.mubr.msk.f32.gmra.mrb[86].mxu0 %vm2932_vm12, %v2876_v18 }
 0x484   : > { %4846 = vmatprep.mubr.msk.f32.mxu0 %vm2932_vm12, %v2877_v15 }
 0x487   : > { %4847 = vmatmul.mubr.msk.f32.gmra.mrb[88].mxu0 %vm2932_vm12, %v2878_v59 }
 0x488   : > { %4849 = vmatprep.mubr.msk.f32.mxu0 %vm2932_vm12, %v2879_v57 }
 0x489   : > { %v4772_v40 = vpop.f32.mrb[48].mxu0 }
 0x48a   : > { %v2780_v5 = vadd.f32 %v4772_v40, %v7133_v21  ;;  %v2774_v44 = vpop.f32.mrb[49].mxu0 }
 0x48b   : > { %v2775_v16 = vadd.f32 %v7133_v21, %v2774_v44  ;;  %4850 = vmatmul.mubr.msk.f32.gmra.mrb[90].mxu0 %vm2932_vm12, %v2880_v26 }
 0x48c   : > { %v2902_v43 = vmax.f32 %v2780_v5, 0.0 }
 0x48d   : > { %v2901_v1 = vmax.f32 %v2775_v16, 0.0 }
 0x48f   : > { %4882 = vmatprep.mubr.msk.f32.mxu1 %vm2932_vm12, %v2901_v1 }
 0x490   : > { %4883 = vmatmul.mubr.msk.f32.gmra.mrb[20].mxu1 %vm2932_vm12, %v2902_v43 }
 0x49f   : > { %v4775_v28 = vpop.f32.mrb[50].mxu0 }
 0x4a0   : > { %v2790_v50 = vadd.f32 %v4775_v28, %v7133_v21  ;;  %v2784_v20 = vpop.f32.mrb[51].mxu0 }
 0x4a1   : > { %v2785_v33 = vadd.f32 %v7133_v21, %v2784_v20  ;;  %v7415_v20 = vld [vmem:[%s7725_s5] ss:$0 sm:$0xff] }
 0x4a2   : > { %v2904_v37 = vmax.f32 %v2790_v50, 0.0 }
 0x4a3   : > { %v2903_v9 = vmax.f32 %v2785_v33, 0.0 }
 0x4a5   : > { %4885 = vmatprep.mubr.msk.f32.mxu1 %vm2932_vm12, %v2903_v9 }
 0x4a6   : > { %v7345_v51 = vpop.f32.mrb[0].mxu1  ;;  %4886 = vmatmul.mubr.msk.f32.gmra.mrb[22].mxu1 %vm2932_vm12, %v2904_v37 }
 0x4a7   : > { %v7354_v52 = vpop.f32.mrb[1].mxu1 }
 0x4b5   : > { %v4778_v19 = vpop.f32.mrb[52].mxu0 }
 0x4b6   : > { %v2800_v36 = vadd.f32 %v4778_v19, %v7133_v21  ;;  %v2794_v27 = vpop.f32.mrb[53].mxu0 }
 0x4b7   : > { %v2795_v56 = vadd.f32 %v7133_v21, %v2794_v27 }
 0x4b8   : > { %v7364_v34 = vpop.f32.mrb[2].mxu1  ;;  %v2906_v32 = vmax.f32 %v2800_v36, 0.0 }
 0x4b9   : > { %v2905_v0 = vmax.f32 %v2795_v56, 0.0  ;;  %v7366_v13 = vpop.f32.mrb[3].mxu1 }
 0x4bb   : > { %4888 = vmatprep.mubr.msk.f32.mxu1 %vm2932_vm12, %v2905_v0 }
 0x4bc   : > { %4889 = vmatmul.mubr.msk.f32.gmra.mrb[24].mxu1 %vm2932_vm12, %v2906_v32 }
 0x4ca   : > { %v7370_v47 = vpop.f32.mrb[4].mxu1 }
 0x4cb   : > { %v4781_v14 = vpop.f32.mrb[54].mxu0  ;;  %v7372_v48 = vpop.f32.mrb[5].mxu1 }
 0x4cc   : > { %v2810_v46 = vadd.f32 %v4781_v14, %v7133_v21  ;;  %v2804_v63 = vpop.f32.mrb[55].mxu0 }
 0x4cd   : > { %v2805_v41 = vadd.f32 %v7133_v21, %v2804_v63 }
 0x4ce   : > { %v2908_v31 = vmax.f32 %v2810_v46, 0.0 }
 0x4cf   : > { %v2907_v38 = vmax.f32 %v2805_v41, 0.0 }
 0x4d1   : > { %4891 = vmatprep.mubr.msk.f32.mxu1 %vm2932_vm12, %v2907_v38 }
 0x4d2   : > { %4892 = vmatmul.mubr.msk.f32.gmra.mrb[26].mxu1 %vm2932_vm12, %v2908_v31 }
 0x4dc   : > { %v7378_v7 = vpop.f32.mrb[6].mxu1 }
 0x4dd   : > { %v7380_v58 = vpop.f32.mrb[7].mxu1 }
 0x4e1   : > { %v4784_v45 = vpop.f32.mrb[56].mxu0 }
 0x4e2   : > { %v2820_v25 = vadd.f32 %v4784_v45, %v7133_v21  ;;  %v2814_v3 = vpop.f32.mrb[57].mxu0 }
 0x4e3   : > { %v2815_v42 = vadd.f32 %v7133_v21, %v2814_v3 }
 0x4e4   : > { %v2910_v53 = vmax.f32 %v2820_v25, 0.0 }
 0x4e5   : > { %v2909_v35 = vmax.f32 %v2815_v42, 0.0 }
 0x4e7   : > { %4894 = vmatprep.mubr.msk.f32.mxu1 %vm2932_vm12, %v2909_v35 }
 0x4e8   : > { %4895 = vmatmul.mubr.msk.f32.gmra.mrb[28].mxu1 %vm2932_vm12, %v2910_v53 }
 0x4ee   : > { %v7386_v12 = vpop.f32.mrb[8].mxu1 }
 0x4ef   : > { %v7388_v60 = vpop.f32.mrb[9].mxu1 }
 0x4f7   : > { %v4787_v4 = vpop.f32.mrb[58].mxu0 }
 0x4f8   : > { %v2830_v17 = vadd.f32 %v4787_v4, %v7133_v21  ;;  %v2824_v23 = vpop.f32.mrb[59].mxu0 }
 0x4f9   : > { %v2825_v18 = vadd.f32 %v7133_v21, %v2824_v23 }
 0x4fa   : > { %v2912_v15 = vmax.f32 %v2830_v17, 0.0 }
 0x4fb   : > { %v2911_v6 = vmax.f32 %v2825_v18, 0.0 }
 0x4fd   : > { %4897 = vmatprep.mubr.msk.f32.mxu1 %vm2932_vm12, %v2911_v6 }
 0x4fe   : > { %4898 = vmatmul.mubr.msk.f32.gmra.mrb[30].mxu1 %vm2932_vm12, %v2912_v15 }
 0x500   : > { %v7394_v29 = vpop.f32.mrb[10].mxu1 }
 0x501   : > { %v7396_v59 = vpop.f32.mrb[11].mxu1 }
 0x50d   : > { %v4790_v11 = vpop.f32.mrb[60].mxu0 }
 0x50e   : > { %v2840_v57 = vadd.f32 %v4790_v11, %v7133_v21  ;;  %v2834_v26 = vpop.f32.mrb[61].mxu0 }
 0x50f   : > { %v2835_v40 = vadd.f32 %v7133_v21, %v2834_v26 }
 0x510   : > { %v2914_v44 = vmax.f32 %v2840_v57, 0.0 }
 0x511   : > { %v2913_v5 = vmax.f32 %v2835_v40, 0.0 }
 0x512   : > { %v7400_v16 = vpop.f32.mrb[12].mxu1 }
 0x513   : > { %v7402_v1 = vpop.f32.mrb[13].mxu1  ;;  %4900 = vmatprep.mubr.msk.f32.mxu1 %vm2932_vm12, %v2913_v5 }
 0x514   : > { %4901 = vmatmul.mubr.msk.f32.gmra.mrb[32].mxu1 %vm2932_vm12, %v2914_v44 }
 0x524   : > { %v7406_v43 = vpop.f32.mrb[14].mxu1 }
 0x525   : > { %v7408_v62 = vpop.f32.mrb[15].mxu1 }
 0x526   : > { %v4793_v54 = vpop.f32.mrb[62].mxu0 }
 0x527   : > { %v2850_v39 = vadd.f32 %v4793_v54, %v7133_v21  ;;  %v2844_v28 = vpop.f32.mrb[63].mxu0 }
 0x528   : > { %v2845_v50 = vadd.f32 %v7133_v21, %v2844_v28 }
 0x529   : > { %v2916_v24 = vmax.f32 %v2850_v39, 0.0 }
 0x52a   : > { %v2915_v33 = vmax.f32 %v2845_v50, 0.0  ;;  %v4812_v55 = vpop.f32.mrb[64].mxu0 }
 0x52b   : > { %v3197_v9 = vadd.f32 %v4812_v55, %v7415_v20  ;;  %v3191_v49 = vpop.f32.mrb[65].mxu0 }
 0x52c   : > { %v3192_v37 = vadd.f32 %v7415_v20, %v3191_v49  ;;  %4903 = vmatprep.mubr.msk.f32.mxu1 %vm2932_vm12, %v2915_v33 }
 0x52d   : > { %4904 = vmatmul.mubr.msk.f32.gmra.mrb[34].mxu1 %vm2932_vm12, %v2916_v24  ;;  %v3511_v21 = vmax.f32 %v3197_v9, 0.0 }
 0x52e   : > { %v3510_v22 = vmax.f32 %v3192_v37, 0.0  ;;  %v4815_v61 = vpop.f32.mrb[66].mxu0 }
 0x52f   : > { %v3207_v2 = vadd.f32 %v4815_v61, %v7415_v20  ;;  %v3201_v10 = vpop.f32.mrb[67].mxu0 }
 0x530   : > { %v3202_v8 = vadd.f32 %v7415_v20, %v3201_v10  ;;  %4922 = vmatprep.mubr.msk.f32.mxu1 %vm2932_vm12, %v3510_v22 }
 0x531   : > { %4923 = vmatmul.mubr.msk.f32.vlgmr.msra.gmra.mrb[36].mxu1 %vm2932_vm12, %v3511_v21  ;;  %v3513_v36 = vmax.f32 %v3207_v2, 0.0 }
 0x532   : > { %v3512_v30 = vmax.f32 %v3202_v8, 0.0  ;;  %v4818_v19 = vpop.f32.mrb[68].mxu0 }
 0x533   : > { %v3217_v27 = vadd.f32 %v4818_v19, %v7415_v20  ;;  %v3211_v56 = vpop.f32.mrb[69].mxu0 }
 0x534   : > { %v3212_v0 = vadd.f32 %v7415_v20, %v3211_v56  ;;  %4925 = vmatprep.mubr.msk.f32.mxu1 %vm2932_vm12, %v3512_v30 }
 0x535   : > { %4926 = vmatmul.mubr.msk.f32.gmra.mrb[38].mxu1 %vm2932_vm12, %v3513_v36  ;;  %v3515_v46 = vmax.f32 %v3217_v27, 0.0 }
 0x536   : > { %v3514_v32 = vmax.f32 %v3212_v0, 0.0  ;;  %v4821_v14 = vpop.f32.mrb[70].mxu0 }
 0x537   : > { %v3227_v63 = vadd.f32 %v4821_v14, %v7415_v20  ;;  %v3221_v41 = vpop.f32.mrb[71].mxu0  ;;  %v7430_v38 = vpop.f32.mrb[16].mxu1 }
 0x538   : > { %v3222_v31 = vadd.f32 %v7415_v20, %v3221_v41  ;;  %v7433_v45 = vpop.f32.mrb[17].mxu1  ;;  %4928 = vmatprep.mubr.msk.f32.mxu1 %vm2932_vm12, %v3514_v32 }
 0x539   : > { %4929 = vmatmul.mubr.msk.f32.gmra.mrb[40].mxu1 %vm2932_vm12, %v3515_v46  ;;  %v3517_v42 = vmax.f32 %v3227_v63, 0.0 }
 0x53a   : > { %v3516_v25 = vmax.f32 %v3222_v31, 0.0  ;;  %v4824_v3 = vpop.f32.mrb[72].mxu0 }
 0x53b   : > { %v3237_v35 = vadd.f32 %v4824_v3, %v7415_v20  ;;  %v3231_v53 = vpop.f32.mrb[73].mxu0 }
 0x53c   : > { %v3232_v4 = vadd.f32 %v7415_v20, %v3231_v53  ;;  %4931 = vmatprep.mubr.msk.f32.mxu1 %vm2932_vm12, %v3516_v25 }
 0x53d   : > { %4932 = vmatmul.mubr.msk.f32.gmra.mrb[42].mxu1 %vm2932_vm12, %v3517_v42  ;;  %v3519_v18 = vmax.f32 %v3237_v35, 0.0 }
 0x53e   : > { %v3518_v17 = vmax.f32 %v3232_v4, 0.0  ;;  %v4827_v23 = vpop.f32.mrb[74].mxu0 }
 0x53f   : > { %v3247_v6 = vadd.f32 %v4827_v23, %v7415_v20  ;;  %v3241_v15 = vpop.f32.mrb[75].mxu0 }
 0x540   : > { %v3242_v11 = vadd.f32 %v7415_v20, %v3241_v15  ;;  %4934 = vmatprep.mubr.msk.f32.mxu1 %vm2932_vm12, %v3518_v17 }
 0x541   : > { %4935 = vmatmul.mubr.msk.f32.gmra.mrb[44].mxu1 %vm2932_vm12, %v3519_v18  ;;  %v3521_v40 = vmax.f32 %v3247_v6, 0.0 }
 0x542   : > { %v3520_v57 = vmax.f32 %v3242_v11, 0.0  ;;  %v4830_v26 = vpop.f32.mrb[76].mxu0 }
 0x543   : > { %v3257_v5 = vadd.f32 %v4830_v26, %v7415_v20  ;;  %v3251_v44 = vpop.f32.mrb[77].mxu0 }
 0x544   : > { %v3252_v54 = vadd.f32 %v7415_v20, %v3251_v44  ;;  %4937 = vmatprep.mubr.msk.f32.mxu1 %vm2932_vm12, %v3520_v57  ;;  %v3332_v44 = vadd.f32 %v7415_v20, %v7354_v52 }
 0x545   : > { %4938 = vmatmul.mubr.msk.f32.gmra.mrb[46].mxu1 %vm2932_vm12, %v3521_v40  ;;  %v3523_v50 = vmax.f32 %v3257_v5, 0.0 }
 0x546   : > { %v3522_v39 = vmax.f32 %v3252_v54, 0.0  ;;  %v4833_v28 = vpop.f32.mrb[78].mxu0 }
 0x547   : > { %v3267_v33 = vadd.f32 %v4833_v28, %v7415_v20  ;;  %v3261_v55 = vpop.f32.mrb[79].mxu0  ;;  %v3337_v28 = vadd.f32 %v7345_v51, %v7415_v20  ;;  %v3352_v51 = vadd.f32 %v7415_v20, %v7372_v48  ;;  %v3367_v48 = vadd.f32 %v7378_v7, %v7415_v20 }
 0x548   : > { %v3262_v24 = vadd.f32 %v7415_v20, %v3261_v55  ;;  %4940 = vmatprep.mubr.msk.f32.mxu1 %vm2932_vm12, %v3522_v39  ;;  %v3538_v55 = vmax.f32 %v3332_v44, 0.0 }
 0x549   : > { %4941 = vmatmul.mubr.msk.f32.gmra.mrb[48].mxu1 %vm2932_vm12, %v3523_v50  ;;  %v3525_v37 = vmax.f32 %v3267_v33, 0.0  ;;  %v3539_v52 = vmax.f32 %v3337_v28, 0.0 }
 0x54a   : > { %v3524_v9 = vmax.f32 %v3262_v24, 0.0  ;;  %v4836_v49 = vpop.f32.mrb[80].mxu0  ;;  %v3342_v24 = vadd.f32 %v7415_v20, %v7366_v13 }
 0x54b   : > { %v3277_v22 = vadd.f32 %v4836_v49, %v7415_v20  ;;  %v3271_v61 = vpop.f32.mrb[81].mxu0  ;;  %v3347_v49 = vadd.f32 %v7364_v34, %v7415_v20 }
 0x54c   : > { %v3272_v21 = vadd.f32 %v7415_v20, %v3271_v61  ;;  %4943 = vmatprep.mubr.msk.f32.mxu1 %vm2932_vm12, %v3524_v9  ;;  %v3542_v61 = vmax.f32 %v3352_v51, 0.0 }
 0x54d   : > { %v7456_v2 = vpop.f32.mrb[18].mxu1  ;;  %4944 = vmatmul.mubr.msk.f32.gmra.mrb[50].mxu1 %vm2932_vm12, %v3525_v37  ;;  %v3527_v19 = vmax.f32 %v3277_v22, 0.0  ;;  %v3540_v37 = vmax.f32 %v3342_v24, 0.0  ;;  %v3541_v13 = vmax.f32 %v3347_v49, 0.0  ;;  %v3357_v22 = vadd.f32 %v7370_v47, %v7415_v20 }
 0x54e   : > { %v3526_v10 = vmax.f32 %v3272_v21, 0.0  ;;  %v4839_v8 = vpop.f32.mrb[82].mxu0  ;;  %v7459_v30 = vpop.f32.mrb[19].mxu1  ;;  %v3362_v21 = vadd.f32 %v7415_v20, %v7380_v58  ;;  %v3545_v47 = vmax.f32 %v3367_v48, 0.0  ;;  %v3377_v58 = vadd.f32 %v7386_v12, %v7415_v20 }
 0x54f   : > { %v3287_v36 = vadd.f32 %v4839_v8, %v7415_v20  ;;  %v3281_v27 = vpop.f32.mrb[83].mxu0  ;;  %v3543_v34 = vmax.f32 %v3357_v22, 0.0  ;;  %v3372_v8 = vadd.f32 %v7415_v20, %v7388_v60  ;;  %v3387_v60 = vadd.f32 %v7394_v29, %v7415_v20 }
 0x550   : > { %v3282_v56 = vadd.f32 %v7415_v20, %v3281_v27  ;;  %4946 = vmatprep.mubr.msk.f32.mxu1 %vm2932_vm12, %v3526_v10  ;;  %v3544_v10 = vmax.f32 %v3362_v21, 0.0  ;;  %v3547_v7 = vmax.f32 %v3377_v58, 0.0 }
 0x551   : > { %4947 = vmatmul.mubr.msk.f32.gmra.mrb[52].mxu1 %vm2932_vm12, %v3527_v19  ;;  %v3529_v14 = vmax.f32 %v3287_v36, 0.0  ;;  %v3546_v19 = vmax.f32 %v3372_v8, 0.0  ;;  %v3382_v36 = vadd.f32 %v7415_v20, %v7396_v59  ;;  %v3397_v59 = vadd.f32 %v7400_v16, %v7415_v20 }
 0x552   : > { %v3528_v0 = vmax.f32 %v3282_v56, 0.0  ;;  %v4842_v32 = vpop.f32.mrb[84].mxu0  ;;  %v3392_v56 = vadd.f32 %v7415_v20, %v7402_v1  ;;  %v3407_v1 = vadd.f32 %v7406_v43, %v7415_v20 }
 0x553   : > { %v3297_v46 = vadd.f32 %v4842_v32, %v7415_v20  ;;  %v3291_v63 = vpop.f32.mrb[85].mxu0  ;;  %v3548_v27 = vmax.f32 %v3382_v36, 0.0  ;;  %v3549_v32 = vmax.f32 %v3387_v60, 0.0  ;;  %v3551_v29 = vmax.f32 %v3397_v59, 0.0  ;;  %v7579_v60 = vld [vmem:[%s7727_s7] ss:$0 sm:$0xff] }
 0x554   : > { %v3292_v41 = vadd.f32 %v7415_v20, %v3291_v63  ;;  %4949 = vmatprep.mubr.msk.f32.mxu1 %vm2932_vm12, %v3528_v0  ;;  %v3553_v16 = vmax.f32 %v3407_v1, 0.0 }
 0x555   : > { %4950 = vmatmul.mubr.msk.f32.gmra.mrb[54].mxu1 %vm2932_vm12, %v3529_v14  ;;  %v3531_v3 = vmax.f32 %v3297_v46, 0.0  ;;  %v3550_v14 = vmax.f32 %v3392_v56, 0.0  ;;  %v3402_v46 = vadd.f32 %v7415_v20, %v7408_v62  ;;  %v3417_v62 = vadd.f32 %v7430_v38, %v7415_v20 }
 0x556   : > { %v3530_v31 = vmax.f32 %v3292_v41, 0.0  ;;  %v4845_v25 = vpop.f32.mrb[86].mxu0  ;;  %v3412_v41 = vadd.f32 %v7415_v20, %v7433_v45  ;;  %v3427_v45 = vadd.f32 %v7456_v2, %v7415_v20 }
 0x557   : > { %v3307_v42 = vadd.f32 %v4845_v25, %v7415_v20  ;;  %v3301_v35 = vpop.f32.mrb[87].mxu0  ;;  %v3552_v63 = vmax.f32 %v3402_v46, 0.0  ;;  %v3422_v25 = vadd.f32 %v7415_v20, %v7459_v30  ;;  %v3555_v43 = vmax.f32 %v3417_v62, 0.0 }
 0x558   : > { %v3302_v53 = vadd.f32 %v7415_v20, %v3301_v35  ;;  %4952 = vmatprep.mubr.msk.f32.mxu1 %vm2932_vm12, %v3530_v31  ;;  %v3554_v31 = vmax.f32 %v3412_v41, 0.0  ;;  %v3557_v38 = vmax.f32 %v3427_v45, 0.0 }
 0x559   : > { %4953 = vmatmul.mubr.msk.f32.gmra.mrb[56].mxu1 %vm2932_vm12, %v3531_v3  ;;  %v3533_v23 = vmax.f32 %v3307_v42, 0.0  ;;  %v3556_v3 = vmax.f32 %v3422_v25, 0.0 }
 0x55a   : > { %v3532_v4 = vmax.f32 %v3302_v53, 0.0  ;;  %v4848_v17 = vpop.f32.mrb[88].mxu0 }
 0x55b   : > { %v3317_v18 = vadd.f32 %v4848_v17, %v7415_v20  ;;  %v3311_v6 = vpop.f32.mrb[89].mxu0 }
 0x55c   : > { %v3312_v15 = vadd.f32 %v7415_v20, %v3311_v6  ;;  %4955 = vmatprep.mubr.msk.f32.mxu1 %vm2932_vm12, %v3532_v4 }
 0x55d   : > { %4956 = vmatmul.mubr.msk.f32.gmra.mrb[58].mxu1 %vm2932_vm12, %v3533_v23  ;;  %v3535_v26 = vmax.f32 %v3317_v18, 0.0 }
 0x55e   : > { %v3534_v11 = vmax.f32 %v3312_v15, 0.0  ;;  %v4851_v57 = vpop.f32.mrb[90].mxu0 }
 0x55f   : > { %v3327_v40 = vadd.f32 %v4851_v57, %v7415_v20  ;;  %v3321_v5 = vpop.f32.mrb[91].mxu0 }
 0x560   : > { %v3322_v54 = vadd.f32 %v7415_v20, %v3321_v5  ;;  %4958 = vmatprep.mubr.msk.f32.mxu1 %vm2932_vm12, %v3534_v11 }
 0x561   : > { %4959 = vmatmul.mubr.msk.f32.gmra.mrb[60].mxu1 %vm2932_vm12, %v3535_v26  ;;  %v3537_v50 = vmax.f32 %v3327_v40, 0.0 }
 0x562   : > { %v3536_v39 = vmax.f32 %v3322_v54, 0.0 }
 0x563   : > { %v7485_v33 = vpop.f32.mrb[20].mxu1 }
 0x564   : > { %v3431_v9 = vpop.f32.mrb[21].mxu1  ;;  %4961 = vmatprep.mubr.msk.f32.mxu1 %vm2932_vm12, %v3536_v39  ;;  %v3437_v35 = vadd.f32 %v7485_v33, %v7415_v20 }
 0x565   : > { %4962 = vmatmul.mubr.msk.f32.gmra.mrb[62].mxu1 %vm2932_vm12, %v3537_v50  ;;  %v3432_v42 = vadd.f32 %v7415_v20, %v3431_v9 }
 0x566   : > { %4964 = vmatprep.mubr.msk.f32.mxu1 %vm2932_vm12, %v3538_v55  ;;  %v3559_v4 = vmax.f32 %v3437_v35, 0.0 }
 0x567   : > { %v3558_v30 = vmax.f32 %v3432_v42, 0.0 }
 0x569   : > { %4965 = vmatmul.mubr.msk.f32.gmra.mrb[64].mxu1 %vm2932_vm12, %v3539_v52 }
 0x56a   : > { %4967 = vmatprep.mubr.msk.f32.mxu1 %vm2932_vm12, %v3540_v37 }
 0x56d   : > { %4968 = vmatmul.mubr.msk.f32.gmra.mrb[66].mxu1 %vm2932_vm12, %v3541_v13 }
 0x56e   : > { %4970 = vmatprep.mubr.msk.f32.mxu1 %vm2932_vm12, %v3542_v61 }
 0x571   : > { %4971 = vmatmul.mubr.msk.f32.gmra.mrb[68].mxu1 %vm2932_vm12, %v3543_v34 }
 0x572   : > { %4973 = vmatprep.mubr.msk.f32.mxu1 %vm2932_vm12, %v3544_v10 }
 0x575   : > { %4974 = vmatmul.mubr.msk.f32.gmra.mrb[70].mxu1 %vm2932_vm12, %v3545_v47 }
 0x576   : > { %4976 = vmatprep.mubr.msk.f32.mxu1 %vm2932_vm12, %v3546_v19 }
 0x579   : > { %v4887_v0 = vpop.f32.mrb[22].mxu1  ;;  %4977 = vmatmul.mubr.msk.f32.gmra.mrb[72].mxu1 %vm2932_vm12, %v3547_v7 }
 0x57a   : > { %v3441_v12 = vpop.f32.mrb[23].mxu1  ;;  %4979 = vmatprep.mubr.msk.f32.mxu1 %vm2932_vm12, %v3548_v27  ;;  %v3447_v2 = vadd.f32 %v4887_v0, %v7415_v20 }
 0x57b   : > { %v3442_v53 = vadd.f32 %v7415_v20, %v3441_v12 }
 0x57c   : > { %v3561_v15 = vmax.f32 %v3447_v2, 0.0 }
 0x57d   : > { %4980 = vmatmul.mubr.msk.f32.gmra.mrb[74].mxu1 %vm2932_vm12, %v3549_v32  ;;  %v3560_v23 = vmax.f32 %v3442_v53, 0.0 }
 0x57e   : > { %4982 = vmatprep.mubr.msk.f32.mxu1 %vm2932_vm12, %v3550_v14 }
 0x581   : > { %4983 = vmatmul.mubr.msk.f32.gmra.mrb[76].mxu1 %vm2932_vm12, %v3551_v29 }
 0x582   : > { %4985 = vmatprep.mubr.msk.f32.mxu1 %vm2932_vm12, %v3552_v63 }
 0x585   : > { %4986 = vmatmul.mubr.msk.f32.gmra.mrb[78].mxu1 %vm2932_vm12, %v3553_v16 }
 0x586   : > { %4988 = vmatprep.mubr.msk.f32.mxu1 %vm2932_vm12, %v3554_v31 }
 0x589   : > { %4989 = vmatmul.mubr.msk.f32.gmra.mrb[80].mxu1 %vm2932_vm12, %v3555_v43 }
 0x58a   : > { %4991 = vmatprep.mubr.msk.f32.mxu1 %vm2932_vm12, %v3556_v3 }
 0x58d   : > { %4992 = vmatmul.mubr.msk.f32.gmra.mrb[82].mxu1 %vm2932_vm12, %v3557_v38 }
 0x58e   : > { %4994 = vmatprep.mubr.msk.f32.mxu1 %vm2932_vm12, %v3558_v30 }
 0x58f   : > { %v4890_v17 = vpop.f32.mrb[24].mxu1 }
 0x590   : > { %v3451_v18 = vpop.f32.mrb[25].mxu1  ;;  %v3457_v11 = vadd.f32 %v4890_v17, %v7415_v20 }
 0x591   : > { %v3452_v6 = vadd.f32 %v7415_v20, %v3451_v18  ;;  %4995 = vmatmul.mubr.msk.f32.gmra.mrb[84].mxu1 %vm2932_vm12, %v3559_v4 }
 0x592   : > { %4997 = vmatprep.mubr.msk.f32.mxu1 %vm2932_vm12, %v3560_v23  ;;  %v3563_v26 = vmax.f32 %v3457_v11, 0.0 }
 0x593   : > { %v3562_v57 = vmax.f32 %v3452_v6, 0.0 }
 0x595   : > { %4998 = vmatmul.mubr.msk.f32.gmra.mrb[86].mxu1 %vm2932_vm12, %v3561_v15 }
 0x596   : > { %5000 = vmatprep.mubr.msk.f32.mxu1 %vm2932_vm12, %v3562_v57 }
 0x599   : > { %5001 = vmatmul.mubr.msk.f32.gmra.mrb[88].mxu1 %vm2932_vm12, %v3563_v26 }
 0x5a5   : > { %v4893_v40 = vpop.f32.mrb[26].mxu1 }
 0x5a6   : > { %v3467_v5 = vadd.f32 %v4893_v40, %v7415_v20  ;;  %v3461_v44 = vpop.f32.mrb[27].mxu1 }
 0x5a7   : > { %v3462_v54 = vadd.f32 %v7415_v20, %v3461_v44 }
 0x5a8   : > { %v3565_v28 = vmax.f32 %v3467_v5, 0.0 }
 0x5a9   : > { %v3564_v39 = vmax.f32 %v3462_v54, 0.0 }
 0x5ab   : > { %5003 = vmatprep.mubr.msk.f32.mxu1 %vm2932_vm12, %v3564_v39 }
 0x5ac   : > { %5004 = vmatmul.mubr.msk.f32.gmra.mrb[90].mxu1 %vm2932_vm12, %v3565_v28 }
 0x5bb   : > { %v4896_v50 = vpop.f32.mrb[28].mxu1 }
 0x5bc   : > { %v3477_v33 = vadd.f32 %v4896_v50, %v7415_v20  ;;  %v3471_v55 = vpop.f32.mrb[29].mxu1 }
 0x5bd   : > { %v3472_v24 = vadd.f32 %v7415_v20, %v3471_v55 }
 0x5be   : > { %v3567_v52 = vmax.f32 %v3477_v33, 0.0 }
 0x5bf   : > { %v3566_v9 = vmax.f32 %v3472_v24, 0.0 }
 0x5c1   : > { %5006 = vmatprep.mubr.msk.f32.mxu1 %vm2932_vm12, %v3566_v9 }
 0x5c2   : > { %5007 = vmatmul.mubr.msk.f32.gmra.mrb[92].mxu1 %vm2932_vm12, %v3567_v52 }
 0x5d1   : > { %v4899_v49 = vpop.f32.mrb[30].mxu1 }
 0x5d2   : > { %v3487_v37 = vadd.f32 %v4899_v49, %v7415_v20  ;;  %v3481_v51 = vpop.f32.mrb[31].mxu1 }
 0x5d3   : > { %v3482_v13 = vadd.f32 %v7415_v20, %v3481_v51 }
 0x5d4   : > { %v3569_v61 = vmax.f32 %v3487_v37, 0.0 }
 0x5d5   : > { %v3568_v22 = vmax.f32 %v3482_v13, 0.0 }
 0x5d7   : > { %5009 = vmatprep.mubr.msk.f32.mxu1 %vm2932_vm12, %v3568_v22 }
 0x5d8   : > { %5010 = vmatmul.mubr.msk.f32.gmra.mrb[94].mxu1 %vm2932_vm12, %v3569_v61 }
 0x5e7   : > { %v4902_v21 = vpop.f32.mrb[32].mxu1 }
 0x5e8   : > { %v3497_v34 = vadd.f32 %v4902_v21, %v7415_v20  ;;  %v3491_v48 = vpop.f32.mrb[33].mxu1 }
 0x5e9   : > { %v3492_v10 = vadd.f32 %v7415_v20, %v3491_v48 }
 0x5ea   : > { %v3571_v47 = vmax.f32 %v3497_v34, 0.0 }
 0x5eb   : > { %v3570_v8 = vmax.f32 %v3492_v10, 0.0 }
 0x5ed   : > { %5012 = vmatprep.mubr.msk.f32.mxu1 %vm2932_vm12, %v3570_v8 }
 0x5ee   : > { %5013 = vmatmul.mubr.msk.f32.gmra.mrb[96].mxu1 %vm2932_vm12, %v3571_v47 }
 0x600   : > { %v4905_v58 = vpop.f32.mrb[34].mxu1 }
 0x601   : > { %v3507_v19 = vadd.f32 %v4905_v58, %v7415_v20  ;;  %v3501_v36 = vpop.f32.mrb[35].mxu1 }
 0x602   : > { %v3502_v7 = vadd.f32 %v7415_v20, %v3501_v36 }
 0x603   : > { %v3573_v0 = vmax.f32 %v3507_v19, 0.0 }
 0x604   : > { %v3572_v27 = vmax.f32 %v3502_v7, 0.0  ;;  %v4924_v56 = vpop.f32.mrb[36].mxu1 }
 0x605   : > { %v3853_v12 = vadd.f32 %v4924_v56, %v7579_v60  ;;  %v3847_v20 = vpop.f32.mrb[37].mxu1 }
 0x606   : > { %v3848_v32 = vadd.f32 %v7579_v60, %v3847_v20  ;;  %5015 = vmatprep.mubr.msk.f32.mxu1 %vm2932_vm12, %v3572_v27 }
 0x607   : > { %4167 = vst [vmem:[%s7585_s9 + $0x8] sm:$0xff] %v3853_v12  ;;  %5016 = vmatmul.mubr.msk.f32.gmra.mrb[98].mxu1 %vm2932_vm12, %v3573_v0 }
 0x608   : > { %4166 = vst [vmem:[%s7585_s9] sm:$0xff] %v3848_v32  ;;  %v4927_v59 = vpop.f32.mrb[38].mxu1 }
 0x609   : > { %v3863_v14 = vadd.f32 %v4927_v59, %v7579_v60  ;;  %v3857_v46 = vpop.f32.mrb[39].mxu1 }
 0x60a   : > { %v3858_v29 = vadd.f32 %v7579_v60, %v3857_v46 }
 0x60b   : > { %4169 = vst [vmem:[%s7585_s9 + $0x18] sm:$0xff] %v3863_v14 }
 0x60c   : > { %4168 = vst [vmem:[%s7585_s9 + $0x10] sm:$0xff] %v3858_v29  ;;  %v4930_v1 = vpop.f32.mrb[40].mxu1 }
 0x60d   : > { %v3873_v63 = vadd.f32 %v4930_v1, %v7579_v60  ;;  %v3867_v41 = vpop.f32.mrb[41].mxu1 }
 0x60e   : > { %v3868_v16 = vadd.f32 %v7579_v60, %v3867_v41 }
 0x60f   : > { %4171 = vst [vmem:[%s7585_s9 + $0x28] sm:$0xff] %v3873_v63 }
 0x610   : > { %4170 = vst [vmem:[%s7585_s9 + $0x20] sm:$0xff] %v3868_v16  ;;  %v4933_v62 = vpop.f32.mrb[42].mxu1 }
 0x611   : > { %v3883_v31 = vadd.f32 %v4933_v62, %v7579_v60  ;;  %v3877_v25 = vpop.f32.mrb[43].mxu1 }
 0x612   : > { %v3878_v43 = vadd.f32 %v7579_v60, %v3877_v25 }
 0x613   : > { %4173 = vst [vmem:[%s7585_s9 + $0x38] sm:$0xff] %v3883_v31 }
 0x614   : > { %4172 = vst [vmem:[%s7585_s9 + $0x30] sm:$0xff] %v3878_v43  ;;  %v4936_v45 = vpop.f32.mrb[44].mxu1 }
 0x615   : > { %v3893_v3 = vadd.f32 %v4936_v45, %v7579_v60  ;;  %v3887_v42 = vpop.f32.mrb[45].mxu1 }
 0x616   : > { %v3888_v38 = vadd.f32 %v7579_v60, %v3887_v42 }
 0x617   : > { %4175 = vst [vmem:[%s7585_s9 + $0x48] sm:$0xff] %v3893_v3 }
 0x618   : > { %4174 = vst [vmem:[%s7585_s9 + $0x40] sm:$0xff] %v3888_v38  ;;  %v4939_v35 = vpop.f32.mrb[46].mxu1 }
 0x619   : > { %v3903_v30 = vadd.f32 %v4939_v35, %v7579_v60  ;;  %v3897_v53 = vpop.f32.mrb[47].mxu1 }
 0x61a   : > { %v3898_v4 = vadd.f32 %v7579_v60, %v3897_v53 }
 0x61b   : > { %4177 = vst [vmem:[%s7585_s9 + $0x58] sm:$0xff] %v3903_v30 }
 0x61c   : > { %4176 = vst [vmem:[%s7585_s9 + $0x50] sm:$0xff] %v3898_v4  ;;  %v4942_v2 = vpop.f32.mrb[48].mxu1 }
 0x61d   : > { %v3913_v17 = vadd.f32 %v4942_v2, %v7579_v60  ;;  %v3907_v23 = vpop.f32.mrb[49].mxu1 }
 0x61e   : > { %v3908_v18 = vadd.f32 %v7579_v60, %v3907_v23 }
 0x61f   : > { %4179 = vst [vmem:[%s7585_s9 + $0x68] sm:$0xff] %v3913_v17 }
 0x620   : > { %4178 = vst [vmem:[%s7585_s9 + $0x60] sm:$0xff] %v3908_v18  ;;  %v4945_v6 = vpop.f32.mrb[50].mxu1 }
 0x621   : > { %v3923_v15 = vadd.f32 %v4945_v6, %v7579_v60  ;;  %v3917_v11 = vpop.f32.mrb[51].mxu1 }
 0x622   : > { %v3918_v57 = vadd.f32 %v7579_v60, %v3917_v11 }
 0x623   : > { %4181 = vst [vmem:[%s7585_s9 + $0x78] sm:$0xff] %v3923_v15 }
 0x624   : > { %4180 = vst [vmem:[%s7585_s9 + $0x70] sm:$0xff] %v3918_v57  ;;  %v4948_v26 = vpop.f32.mrb[52].mxu1 }
 0x625   : > { %v3933_v40 = vadd.f32 %v4948_v26, %v7579_v60  ;;  %v3927_v5 = vpop.f32.mrb[53].mxu1 }
 0x626   : > { %v3928_v44 = vadd.f32 %v7579_v60, %v3927_v5 }
 0x627   : > { %4183 = vst [vmem:[%s7585_s9 + $0x88] sm:$0xff] %v3933_v40 }
 0x628   : > { %4182 = vst [vmem:[%s7585_s9 + $0x80] sm:$0xff] %v3928_v44  ;;  %v4951_v54 = vpop.f32.mrb[54].mxu1 }
 0x629   : > { %v3943_v39 = vadd.f32 %v4951_v54, %v7579_v60  ;;  %v3937_v28 = vpop.f32.mrb[55].mxu1 }
 0x62a   : > { %v3938_v50 = vadd.f32 %v7579_v60, %v3937_v28 }
 0x62b   : > { %4185 = vst [vmem:[%s7585_s9 + $0x98] sm:$0xff] %v3943_v39 }
 0x62c   : > { %4184 = vst [vmem:[%s7585_s9 + $0x90] sm:$0xff] %v3938_v50  ;;  %v4954_v33 = vpop.f32.mrb[56].mxu1 }
 0x62d   : > { %v3953_v55 = vadd.f32 %v4954_v33, %v7579_v60  ;;  %v3947_v24 = vpop.f32.mrb[57].mxu1 }
 0x62e   : > { %v3948_v9 = vadd.f32 %v7579_v60, %v3947_v24 }
 0x62f   : > { %4187 = vst [vmem:[%s7585_s9 + $0xa8] sm:$0xff] %v3953_v55 }
 0x630   : > { %4186 = vst [vmem:[%s7585_s9 + $0xa0] sm:$0xff] %v3948_v9  ;;  %v4957_v52 = vpop.f32.mrb[58].mxu1 }
 0x631   : > { %v3963_v49 = vadd.f32 %v4957_v52, %v7579_v60  ;;  %v3957_v37 = vpop.f32.mrb[59].mxu1 }
 0x632   : > { %v3958_v51 = vadd.f32 %v7579_v60, %v3957_v37 }
 0x633   : > { %4189 = vst [vmem:[%s7585_s9 + $0xb8] sm:$0xff] %v3963_v49 }
 0x634   : > { %4188 = vst [vmem:[%s7585_s9 + $0xb0] sm:$0xff] %v3958_v51  ;;  %v4960_v13 = vpop.f32.mrb[60].mxu1 }
 0x635   : > { %v3973_v22 = vadd.f32 %v4960_v13, %v7579_v60  ;;  %v3967_v61 = vpop.f32.mrb[61].mxu1 }
 0x636   : > { %v3968_v21 = vadd.f32 %v7579_v60, %v3967_v61 }
 0x637   : > { %4191 = vst [vmem:[%s7585_s9 + $0xc8] sm:$0xff] %v3973_v22 }
 0x638   : > { %4190 = vst [vmem:[%s7585_s9 + $0xc0] sm:$0xff] %v3968_v21  ;;  %v4963_v34 = vpop.f32.mrb[62].mxu1 }
 0x639   : > { %v3983_v48 = vadd.f32 %v4963_v34, %v7579_v60  ;;  %v3977_v10 = vpop.f32.mrb[63].mxu1 }
 0x63a   : > { %v3978_v8 = vadd.f32 %v7579_v60, %v3977_v10 }
 0x63b   : > { %4193 = vst [vmem:[%s7585_s9 + $0xd8] sm:$0xff] %v3983_v48 }
 0x63c   : > { %4192 = vst [vmem:[%s7585_s9 + $0xd0] sm:$0xff] %v3978_v8  ;;  %v4966_v47 = vpop.f32.mrb[64].mxu1 }
 0x63d   : > { %v3993_v58 = vadd.f32 %v4966_v47, %v7579_v60  ;;  %v3987_v19 = vpop.f32.mrb[65].mxu1 }
 0x63e   : > { %v3988_v36 = vadd.f32 %v7579_v60, %v3987_v19 }
 0x63f   : > { %4195 = vst [vmem:[%s7585_s9 + $0xe8] sm:$0xff] %v3993_v58 }
 0x640   : > { %4194 = vst [vmem:[%s7585_s9 + $0xe0] sm:$0xff] %v3988_v36  ;;  %v4969_v7 = vpop.f32.mrb[66].mxu1 }
 0x641   : > { %v4003_v27 = vadd.f32 %v4969_v7, %v7579_v60  ;;  %v3997_v56 = vpop.f32.mrb[67].mxu1 }
 0x642   : > { %v3998_v0 = vadd.f32 %v7579_v60, %v3997_v56 }
 0x643   : > { %4197 = vst [vmem:[%s7585_s9 + $0xf8] sm:$0xff] %v4003_v27 }
 0x644   : > { %4196 = vst [vmem:[%s7585_s9 + $0xf0] sm:$0xff] %v3998_v0  ;;  %v4972_v12 = vpop.f32.mrb[68].mxu1 }
 0x645   : > { %v4013_v20 = vadd.f32 %v4972_v12, %v7579_v60  ;;  %v4007_v32 = vpop.f32.mrb[69].mxu1 }
 0x646   : > { %v4008_v59 = vadd.f32 %v7579_v60, %v4007_v32 }
 0x647   : > { %4199 = vst [vmem:[%s7585_s9 + $0x108] sm:$0xff] %v4013_v20 }
 0x648   : > { %4198 = vst [vmem:[%s7585_s9 + $0x100] sm:$0xff] %v4008_v59  ;;  %v4975_v14 = vpop.f32.mrb[70].mxu1 }
 0x649   : > { %v4023_v46 = vadd.f32 %v4975_v14, %v7579_v60  ;;  %v4017_v29 = vpop.f32.mrb[71].mxu1 }
 0x64a   : > { %v4018_v1 = vadd.f32 %v7579_v60, %v4017_v29 }
 0x64b   : > { %4201 = vst [vmem:[%s7585_s9 + $0x118] sm:$0xff] %v4023_v46 }
 0x64c   : > { %4200 = vst [vmem:[%s7585_s9 + $0x110] sm:$0xff] %v4018_v1  ;;  %v4978_v63 = vpop.f32.mrb[72].mxu1 }
 0x64d   : > { %v4033_v41 = vadd.f32 %v4978_v63, %v7579_v60  ;;  %v4027_v16 = vpop.f32.mrb[73].mxu1 }
 0x64e   : > { %v4028_v62 = vadd.f32 %v7579_v60, %v4027_v16 }
 0x64f   : > { %4203 = vst [vmem:[%s7585_s9 + $0x128] sm:$0xff] %v4033_v41 }
 0x650   : > { %4202 = vst [vmem:[%s7585_s9 + $0x120] sm:$0xff] %v4028_v62  ;;  %v4981_v31 = vpop.f32.mrb[74].mxu1 }
 0x651   : > { %v4043_v25 = vadd.f32 %v4981_v31, %v7579_v60  ;;  %v4037_v43 = vpop.f32.mrb[75].mxu1 }
 0x652   : > { %v4038_v45 = vadd.f32 %v7579_v60, %v4037_v43 }
 0x653   : > { %4205 = vst [vmem:[%s7585_s9 + $0x138] sm:$0xff] %v4043_v25 }
 0x654   : > { %4204 = vst [vmem:[%s7585_s9 + $0x130] sm:$0xff] %v4038_v45  ;;  %v4984_v3 = vpop.f32.mrb[76].mxu1 }
 0x655   : > { %v4053_v42 = vadd.f32 %v4984_v3, %v7579_v60  ;;  %v4047_v38 = vpop.f32.mrb[77].mxu1 }
 0x656   : > { %v4048_v35 = vadd.f32 %v7579_v60, %v4047_v38 }
 0x657   : > { %4207 = vst [vmem:[%s7585_s9 + $0x148] sm:$0xff] %v4053_v42 }
 0x658   : > { %4206 = vst [vmem:[%s7585_s9 + $0x140] sm:$0xff] %v4048_v35  ;;  %v4987_v30 = vpop.f32.mrb[78].mxu1 }
 0x659   : > { %v4063_v53 = vadd.f32 %v4987_v30, %v7579_v60  ;;  %v4057_v4 = vpop.f32.mrb[79].mxu1 }
 0x65a   : > { %v4058_v2 = vadd.f32 %v7579_v60, %v4057_v4 }
 0x65b   : > { %4209 = vst [vmem:[%s7585_s9 + $0x158] sm:$0xff] %v4063_v53 }
 0x65c   : > { %4208 = vst [vmem:[%s7585_s9 + $0x150] sm:$0xff] %v4058_v2  ;;  %v4990_v17 = vpop.f32.mrb[80].mxu1 }
 0x65d   : > { %v4073_v23 = vadd.f32 %v4990_v17, %v7579_v60  ;;  %v4067_v18 = vpop.f32.mrb[81].mxu1 }
 0x65e   : > { %v4068_v6 = vadd.f32 %v7579_v60, %v4067_v18 }
 0x65f   : > { %4211 = vst [vmem:[%s7585_s9 + $0x168] sm:$0xff] %v4073_v23 }
 0x660   : > { %4210 = vst [vmem:[%s7585_s9 + $0x160] sm:$0xff] %v4068_v6  ;;  %v4993_v15 = vpop.f32.mrb[82].mxu1 }
 0x661   : > { %v4083_v11 = vadd.f32 %v4993_v15, %v7579_v60  ;;  %v4077_v57 = vpop.f32.mrb[83].mxu1 }
 0x662   : > { %v4078_v26 = vadd.f32 %v7579_v60, %v4077_v57 }
 0x663   : > { %4213 = vst [vmem:[%s7585_s9 + $0x178] sm:$0xff] %v4083_v11 }
 0x664   : > { %4212 = vst [vmem:[%s7585_s9 + $0x170] sm:$0xff] %v4078_v26  ;;  %v4996_v40 = vpop.f32.mrb[84].mxu1 }
 0x665   : > { %v4093_v5 = vadd.f32 %v4996_v40, %v7579_v60  ;;  %v4087_v44 = vpop.f32.mrb[85].mxu1 }
 0x666   : > { %v4088_v54 = vadd.f32 %v7579_v60, %v4087_v44 }
 0x667   : > { %4215 = vst [vmem:[%s7585_s9 + $0x188] sm:$0xff] %v4093_v5 }
 0x668   : > { %4214 = vst [vmem:[%s7585_s9 + $0x180] sm:$0xff] %v4088_v54  ;;  %v4999_v39 = vpop.f32.mrb[86].mxu1 }
 0x669   : > { %v4103_v28 = vadd.f32 %v4999_v39, %v7579_v60  ;;  %v4097_v50 = vpop.f32.mrb[87].mxu1 }
 0x66a   : > { %v4098_v33 = vadd.f32 %v7579_v60, %v4097_v50 }
 0x66b   : > { %4217 = vst [vmem:[%s7585_s9 + $0x198] sm:$0xff] %v4103_v28 }
 0x66c   : > { %4216 = vst [vmem:[%s7585_s9 + $0x190] sm:$0xff] %v4098_v33  ;;  %v5002_v55 = vpop.f32.mrb[88].mxu1 }
 0x66d   : > { %v4113_v24 = vadd.f32 %v5002_v55, %v7579_v60  ;;  %v4107_v9 = vpop.f32.mrb[89].mxu1 }
 0x66e   : > { %v4108_v52 = vadd.f32 %v7579_v60, %v4107_v9 }
 0x66f   : > { %4219 = vst [vmem:[%s7585_s9 + $0x1a8] sm:$0xff] %v4113_v24 }
 0x670   : > { %4218 = vst [vmem:[%s7585_s9 + $0x1a0] sm:$0xff] %v4108_v52 }
 0x67f   : > { %v5005_v49 = vpop.f32.mrb[90].mxu1 }
 0x680   : > { %v4123_v37 = vadd.f32 %v5005_v49, %v7579_v60  ;;  %v4117_v51 = vpop.f32.mrb[91].mxu1 }
 0x681   : > { %v4118_v13 = vadd.f32 %v7579_v60, %v4117_v51 }
 0x682   : > { %4221 = vst [vmem:[%s7585_s9 + $0x1b8] sm:$0xff] %v4123_v37 }
 0x683   : > { %4220 = vst [vmem:[%s7585_s9 + $0x1b0] sm:$0xff] %v4118_v13 }
 0x695   : > { %v5008_v22 = vpop.f32.mrb[92].mxu1 }
 0x696   : > { %v4133_v61 = vadd.f32 %v5008_v22, %v7579_v60  ;;  %v4127_v21 = vpop.f32.mrb[93].mxu1 }
 0x697   : > { %v4128_v34 = vadd.f32 %v7579_v60, %v4127_v21 }
 0x698   : > { %4223 = vst [vmem:[%s7585_s9 + $0x1c8] sm:$0xff] %v4133_v61 }
 0x699   : > { %4222 = vst [vmem:[%s7585_s9 + $0x1c0] sm:$0xff] %v4128_v34 }
 0x6ab   : > { %v5011_v48 = vpop.f32.mrb[94].mxu1 }
 0x6ac   : > { %v4143_v10 = vadd.f32 %v5011_v48, %v7579_v60  ;;  %v4137_v8 = vpop.f32.mrb[95].mxu1 }
 0x6ad   : > { %v4138_v47 = vadd.f32 %v7579_v60, %v4137_v8 }
 0x6ae   : > { %4225 = vst [vmem:[%s7585_s9 + $0x1d8] sm:$0xff] %v4143_v10 }
 0x6af   : > { %4224 = vst [vmem:[%s7585_s9 + $0x1d0] sm:$0xff] %v4138_v47 }
 0x6c1   : > { %v5014_v58 = vpop.f32.mrb[96].mxu1 }
 0x6c2   : > { %v4153_v19 = vadd.f32 %v5014_v58, %v7579_v60  ;;  %v4147_v36 = vpop.f32.mrb[97].mxu1 }
 0x6c3   : > { %v4148_v7 = vadd.f32 %v7579_v60, %v4147_v36 }
 0x6c4   : > { %4227 = vst [vmem:[%s7585_s9 + $0x1e8] sm:$0xff] %v4153_v19 }
 0x6c5   : > { %4226 = vst [vmem:[%s7585_s9 + $0x1e0] sm:$0xff] %v4148_v7 }
 0x6da   : > { %v5017_v27 = vpop.f32.mrb[98].mxu1 }
 0x6db   : > { %v4163_v56 = vadd.f32 %v5017_v27, %v7579_v60  ;;  %v4157_v0 = vpop.f32.mrb[99].mxu1 }
 0x6dc   : > { %v4158_v12 = vadd.f32 %v7579_v60, %v4157_v0 }
 0x6dd   : > { %4229 = vst [vmem:[%s7585_s9 + $0x1f8] sm:$0xff] %v4163_v56 }
 0x6de   : > { %4228 = vst [vmem:[%s7585_s9 + $0x1f0] sm:$0xff] %v4158_v12 }
 0x6df PF: > { %s18_s27 = sadd.s32 1, %s5274_s27  }
 0x6e0   : > { %p15_p4 = scmp.ge.s32.totalorder %s18_s27, 6  }
 0x6e2   :  { %17 = sbr.rel (!%p15_p4) target bundleno = 1 (0x1), region = 85 }

</bundles_post_ra>
